<compile_context>
chip_gen: v5e
topology: v5e:2x2
jax: 0.10.0
libtpu: 0.0.40
codegen_flags: <defaults>
</compile_context>

<pallas_src>
import numpy as np
import jax
import jax.numpy as jnp
from jax.experimental import pallas as pl
from jax.experimental.pallas import tpu as pltpu

# ---------------- synthetic hyper-parameters (small) ----------------
UNI_NUM = 16          # vocab size (tied output linear)
UNIGRAM_DIM = 16      # embedding dim (must equal FEATURE_DIM: torch code cats them on time axis)
FEATURE_DIM = 16
WINDOW_SIZE = 1
MAX_SEGMENT = 4
HRATE = 0.1
EOS = 4
LOGINF = 1.0e6

B = 2                 # batch
T = 8                 # maxT after trimming WINDOW_SIZE from both ends
S = MAX_SEGMENT
F = FEATURE_DIM
V = UNI_NUM
TP = T + S            # time padding so static shifted views never go OOB
TB = T * B            # all T segment-starts stacked into the batch dimension

# ---------------- packed-parameter row offsets (all blocks padded to 4F lanes) ----------------
R_WIH_CELL = 0 * F
R_WHH_CELL = 1 * F
R_WIH_L0   = 2 * F
R_WHH_L0   = 3 * F
R_WIH_L1   = 4 * F
R_WHH_L1   = 5 * F
R_Y0W      = 6 * F
R_HW       = 7 * F
R_OUTW     = 8 * F
R_BIAS     = 9 * F          # 8-row bias / y_start block (sublane aligned)
PACK_ROWS  = 9 * F + 8      # 152


# ---------------------------- Pallas kernel ----------------------------
def _log_softmax(logits):
    m = jnp.max(logits, axis=-1, keepdims=True)
    z = logits - m
    return z - jnp.log(jnp.sum(jnp.exp(z), axis=-1, keepdims=True))


def npmt_kernel(xsh_ref, ids_ref, wpk_ref, logpy_ref, alpha_ref, drop_ref):
    # ---- load & unpack all parameters once (hoisted out of the unrolled loops) ----
    wpk = wpk_ref[...]                                          # (152, 4F)
    w_ih_cell = wpk[R_WIH_CELL:R_WIH_CELL + F, :]
    w_hh_cell = wpk[R_WHH_CELL:R_WHH_CELL + F, :]
    w_ih_l0 = wpk[R_WIH_L0:R_WIH_L0 + F, :]
    w_hh_l0 = wpk[R_WHH_L0:R_WHH_L0 + F, :]
    w_ih_l1 = wpk[R_WIH_L1:R_WIH_L1 + F, :]
    w_hh_l1 = wpk[R_WHH_L1:R_WHH_L1 + F, :]
    y0_w = wpk[R_Y0W:R_Y0W + F, 0:F]
    h_w = wpk[R_HW:R_HW + F, 0:2 * F]
    out_w = wpk[R_OUTW:R_OUTW + F, 0:V]
    bias = wpk[R_BIAS:R_BIAS + 8, :]
    b_cell = bias[0:1, :]
    b_l0 = bias[1:2, :]
    b_l1 = bias[2:3, :]
    y0_b = bias[3:4, 0:F]
    h_b = bias[4:5, 0:2 * F]
    out_b = bias[5:6, 0:V]
    y_start = bias[6:7, 0:F]

    xsh = xsh_ref[...]                                          # (S*TB, F)
    ids_all = ids_ref[...]                                      # (S*TB, 1) int32

    def gates(g, c):
        # PyTorch gate order i, f, g, o
        i_g = jax.nn.sigmoid(g[:, 0:F])
        f_g = jax.nn.sigmoid(g[:, F:2 * F])
        g_g = jnp.tanh(g[:, 2 * F:3 * F])
        o_g = jax.nn.sigmoid(g[:, 3 * F:4 * F])
        c2 = f_g * c + i_g * g_g
        return o_g * jnp.tanh(c2), c2

    # ---- phase 1: outer LSTMCell over the T segment starts ----
    # input-to-hidden half hoisted: one (TB,F)@(F,4F) dot; per step only h@W_hh remains.
    y_start_b = jnp.broadcast_to(y_start, (B, F))
    x1 = jnp.concatenate([y_start_b, xsh[0:(T - 1) * B, :]], axis=0)            # (TB, F)
    xg1 = jnp.dot(x1, w_ih_cell, preferred_element_type=jnp.float32) + b_cell   # (TB, 4F)
    h = jnp.zeros((B, F), jnp.float32)
    c = jnp.zeros((B, F), jnp.float32)
    for j in range(T):
        g = xg1[j * B:(j + 1) * B, :] + jnp.dot(
            h, w_hh_cell, preferred_element_type=jnp.float32)
        h, c = gates(g, c)
        drop_ref[j * B:(j + 1) * B, :] = HRATE * h              # stack into VMEM scratch
    drop = drop_ref[...]                                        # (TB, F), block j = segment j

    # ---- phase 2: T independent inner 2-layer segment LSTMs batched into TB rows ----
    y_in0 = jnp.dot(drop, y0_w, preferred_element_type=jnp.float32) + y0_b      # (TB, F)
    h_init = jnp.tanh(jnp.dot(drop, h_w, preferred_element_type=jnp.float32) + h_b)
    h0 = h_init[:, 0:F]
    h1 = h_init[:, F:2 * F]
    c0 = jnp.zeros((TB, F), jnp.float32)
    c1 = jnp.zeros((TB, F), jnp.float32)

    # layer-0 input-to-hidden for all S+1 steps in one ((S+1)*TB, F)@(F, 4F) dot
    in_all = jnp.concatenate([y_in0, xsh], axis=0)                              # ((S+1)*TB, F)
    xg0 = jnp.dot(in_all, w_ih_l0, preferred_element_type=jnp.float32) + b_l0   # ((S+1)*TB, 4F)

    row_ids = jax.lax.broadcasted_iota(jnp.int32, (TB, 1), 0)   # row = j*B + b
    iota_v = jax.lax.broadcasted_iota(jnp.int32, (TB, V), 1)
    t_vec = jnp.zeros((TB, 1), jnp.float32)
    cols = [jnp.full((TB, 1), -LOGINF, jnp.float32)]            # logpy[:, 0] stays at -loginf
    for m in range(S + 1):
        g0 = xg0[m * TB:(m + 1) * TB, :] + jnp.dot(
            h0, w_hh_l0, preferred_element_type=jnp.float32)
        h0, c0 = gates(g0, c0)
        g1 = (jnp.dot(h0, w_ih_l1, preferred_element_type=jnp.float32)
              + jnp.dot(h1, w_hh_l1, preferred_element_type=jnp.float32) + b_l1)
        h1, c1 = gates(g1, c1)
        logits = jnp.dot(h1, out_w, preferred_element_type=jnp.float32) + out_b
        lp = _log_softmax(logits)                               # (TB, V)
        if m >= 1:
            # valid while m <= j_len == min(S, T - j)   <=>   row < (T - m + 1) * B
            col = t_vec + lp[:, EOS:EOS + 1]
            cols.append(jnp.where(row_ids < (T - m + 1) * B, col, -LOGINF))
        if m <= S - 1:
            # accumulate log p(y[j + m]) while m < j_len   <=>   row < (T - m) * B
            tgt_id = ids_all[m * TB:(m + 1) * TB, :]            # (TB, 1) int32
            tgt = jnp.sum(jnp.where(iota_v == tgt_id, lp, 0.0), axis=-1, keepdims=True)
            t_vec = t_vec + jnp.where(row_ids < (T - m) * B, tgt, 0.0)

    logpy_ref[...] = jnp.concatenate(cols, axis=1)              # one bulk (TB, S+1) store

    # ---- phase 3: alpha forward DP, one vectorized max/exp/sum/log per position ----
    alphas = [jnp.zeros((B, 1), jnp.float32)]
    for j in range(1, T + 1):
        cands = []
        for j_start in range(max(1, j - S + 1), j + 1):
            m = j - j_start + 1
            r0 = (j_start - 1) * B
            cands.append(alphas[j_start - 1] + cols[m][r0:r0 + B, :])
        mx = cands[0]
        for cand in cands[1:]:
            mx = jnp.maximum(mx, cand)
        ssum = jnp.exp(cands[0] - mx)
        for cand in cands[1:]:
            ssum = ssum + jnp.exp(cand - mx)
        alphas.append(mx + jnp.log(ssum))
    alpha_ref[...] = jnp.concatenate(alphas, axis=1)            # one bulk (B, T+1) store


# ---------------------------- wrapper ----------------------------
def npmt_forward(x_sh_flat, ids_flat, w_pack):
    # single invocation, no grid: total working set is a few KB, everything VMEM resident
    return pl.pallas_call(
        npmt_kernel,
        out_shape=(jax.ShapeDtypeStruct((TB, S + 1), jnp.float32),
                   jax.ShapeDtypeStruct((B, T + 1), jnp.float32)),
        in_specs=[pl.BlockSpec(memory_space=pltpu.MemorySpace.VMEM)] * 3,
        out_specs=(pl.BlockSpec(memory_space=pltpu.MemorySpace.VMEM),
                   pl.BlockSpec(memory_space=pltpu.MemorySpace.VMEM)),
        scratch_shapes=[pltpu.VMEM((TB, F), jnp.float32)],
    )(x_sh_flat, ids_flat, w_pack)


# ---------------------------- glue: parameter packing ----------------------------
def pack_params(emb, cell_wih, cell_whh, cell_bih, cell_bhh, y_start,
                y0_w, y0_b, hl_w, hl_b,
                l0_wih, l0_whh, l0_bih, l0_bhh,
                l1_wih, l1_whh, l1_bih, l1_bhh, out_b):
    """Pack every parameter into one (PACK_ROWS, 4F) slab; a single HBM->VMEM DMA."""
    def padc(a):
        return jnp.pad(a, ((0, 0), (0, 4 * F - a.shape[1])))
    bias = jnp.zeros((8, 4 * F), jnp.float32)
    bias = bias.at[0, :].set(cell_bih + cell_bhh)
    bias = bias.at[1, :].set(l0_bih + l0_bhh)
    bias = bias.at[2, :].set(l1_bih + l1_bhh)
    bias = bias.at[3, :F].set(y0_b)
    bias = bias.at[4, :2 * F].set(hl_b)
    bias = bias.at[5, :V].set(out_b)
    bias = bias.at[6, :F].set(y_start[0])
    w_pack = jnp.concatenate([
        cell_wih.T, cell_whh.T,
        l0_wih.T, l0_whh.T,
        l1_wih.T, l1_whh.T,
        padc(y0_w.T), padc(hl_w.T), padc(emb.T),
        bias], axis=0)
    assert w_pack.shape == (PACK_ROWS, 4 * F)
    return w_pack


# ---------------------------- numpy reference (eval-mode torch semantics) ----------------------------
def _sigmoid_np(x):
    return 1.0 / (1.0 + np.exp(-x))


def _log_softmax_np(x):
    m = x.max(axis=-1, keepdims=True)
    z = x - m
    return z - np.log(np.exp(z).sum(axis=-1, keepdims=True))


def _lstm_cell_np(inp, h, c, wih, whh, bih, bhh):
    g = inp @ wih.T + bih + h @ whh.T + bhh
    i = _sigmoid_np(g[:, 0:F]); f = _sigmoid_np(g[:, F:2 * F])
    gg = np.tanh(g[:, 2 * F:3 * F]); o = _sigmoid_np(g[:, 3 * F:4 * F])
    c2 = f * c + i * gg
    return o * np.tanh(c2), c2


def reference_forward(emb, ids, y_start, cell, y0, hlin, lstm_layers, out_b):
    emb = np.asarray(emb, np.float32)
    ids = np.asarray(ids)
    x = emb[ids]                                              # (B, T, F)
    logpy = np.full((T, S + 1, B), -LOGINF, np.float32)
    h = np.zeros((B, F), np.float32)
    c = np.zeros((B, F), np.float32)
    for j_start in range(T):
        j_len = min(S, T - j_start)
        if j_start == 0:
            inp = np.repeat(np.asarray(y_start, np.float32), B, axis=0)
            h = np.zeros((B, F), np.float32)
            c = np.zeros((B, F), np.float32)
        else:
            inp = x[:, j_start - 1, :]
        h, c = _lstm_cell_np(inp, h, c, *cell)
        drop_h = HRATE * h
        y_input0 = drop_h @ np.asarray(y0[0]).T + np.asarray(y0[1])
        h_start = np.tanh(drop_h @ np.asarray(hlin[0]).T + np.asarray(hlin[1]))
        hs = [h_start[:, 0:F], h_start[:, F:2 * F]]
        cs = [np.zeros((B, F), np.float32), np.zeros((B, F), np.float32)]
        seq = [y_input0] + [x[:, k, :] for k in range(j_start, j_start + j_len)]
        lps = []
        for step_in in seq:
            hs[0], cs[0] = _lstm_cell_np(step_in, hs[0], cs[0], *lstm_layers[0])
            hs[1], cs[1] = _lstm_cell_np(hs[0], hs[1], cs[1], *lstm_layers[1])
            logits = hs[1] @ emb.T + np.asarray(out_b)
            lps.append(_log_softmax_np(logits))
        t_vec = np.zeros((B,), np.float32)
        for k in range(j_len):
            t_vec = t_vec + lps[k][np.arange(B), ids[:, j_start + k]]
            logpy[j_start, k + 1] = t_vec + lps[k + 1][:, EOS]
    alpha = np.full((T + 1, B), -LOGINF, np.float32)
    alpha[0] = 0.0
    for j in range(T + 1):
        for j_start in range(max(1, j - S + 1), j + 1):
            lp = alpha[j_start - 1] + logpy[j_start - 1, j - j_start + 1]
            m = np.maximum(alpha[j], lp)
            alpha[j] = m + np.log(np.exp(alpha[j] - m) + np.exp(lp - m))
    return logpy, alpha


def print_best_path(ylen, yref, i, logpy, vocab):
    alpha = [-LOGINF] * (ylen + 1)
    prev = [-1] * (ylen + 1)
    alpha[0] = 0.0
    for j in range(ylen + 1):
        for j_start in range(max(1, j - S + 1), j + 1):
            logprob = alpha[j_start - 1] + float(logpy[j_start - 1, j - j_start + 1, i])
            if logprob > alpha[j]:
                alpha[j] = logprob
                prev[j] = j_start - 1
    j = ylen
    out = '|'
    while j > 0:
        pj = prev[j]
        for k in range(j, pj, -1):
            out = vocab[int(yref[k - 1])] + out
        out = '|' + out
        j = pj
    return out


# ---------------------------- main ----------------------------
if __name__ == "__main__":
    key = jax.random.PRNGKey(0)
    keys = jax.random.split(key, 24)

    def rnd(i, shape, scale=0.4):
        return scale * jax.random.normal(keys[i], shape, dtype=jnp.float32)

    # raw (PyTorch-layout) parameters, deterministic init
    emb      = rnd(0, (V, F))                                   # uni_embedding.weight (tied output)
    cell_wih = rnd(1, (4 * F, F)); cell_whh = rnd(2, (4 * F, F))
    cell_bih = rnd(3, (4 * F,), 0.1); cell_bhh = rnd(4, (4 * F,), 0.1)
    y_start  = rnd(5, (1, F))
    y0_w     = rnd(6, (F, F)); y0_b = rnd(7, (F,), 0.1)
    hl_w     = rnd(8, (2 * F, F)); hl_b = rnd(9, (2 * F,), 0.1)
    l0_wih   = rnd(10, (4 * F, F)); l0_whh = rnd(11, (4 * F, F))
    l0_bih   = rnd(12, (4 * F,), 0.1); l0_bhh = rnd(13, (4 * F,), 0.1)
    l1_wih   = rnd(14, (4 * F, F)); l1_whh = rnd(15, (4 * F, F))
    l1_bih   = rnd(16, (4 * F,), 0.1); l1_bhh = rnd(17, (4 * F,), 0.1)
    out_b    = rnd(18, (V,), 0.1)

    ids_full = jax.random.randint(keys[19], (B, T + 2 * WINDOW_SIZE), 0, V, dtype=jnp.int32)
    lens = [T, 6]

    # ---- glue: embedding lookup, segment-stacked input slab + int32 target-id slab ----
    ids = ids_full[:, WINDOW_SIZE:-WINDOW_SIZE]                 # (B, T) token ids
    x_emb = jnp.take(emb, ids, axis=0)                          # (B, T, F)
    x_tm = jnp.transpose(x_emb, (1, 0, 2))                      # (T, B, F)
    x_pad = jnp.concatenate([x_tm, jnp.zeros((S, B, F), jnp.float32)], axis=0)    # (TP, B, F)
    ids_tm = jnp.transpose(ids, (1, 0))                         # (T, B)
    ids_pad = jnp.concatenate([ids_tm, jnp.zeros((S, B), jnp.int32)], axis=0)     # (TP, B)
    # slab k stacks x_pad[k + j] (resp. ids_pad[k + j]) for every segment start j into TB rows
    x_sh_flat = jnp.concatenate([x_pad[k:k + T].reshape(TB, F) for k in range(S)], axis=0)
    ids_flat = jnp.concatenate([ids_pad[k:k + T].reshape(TB, 1) for k in range(S)], axis=0)

    # ---- glue: pack every parameter into one slab (single HBM->VMEM DMA) ----
    w_pack = pack_params(emb, cell_wih, cell_whh, cell_bih, cell_bhh, y_start,
                         y0_w, y0_b, hl_w, hl_b,
                         l0_wih, l0_whh, l0_bih, l0_bhh,
                         l1_wih, l1_whh, l1_bih, l1_bhh, out_b)

    # ---- Pallas kernel (single launch: outer LSTMCell + segment LSTMs + logpy + alpha DP) ----
    logpy_flat, alpha = npmt_forward(x_sh_flat, ids_flat, w_pack)
    jax.block_until_ready((logpy_flat, alpha))

    logpy_np = np.asarray(logpy_flat).reshape(T, B, S + 1).transpose(0, 2, 1)  # (T, S+1, B)
    alpha_np = np.asarray(alpha).T                                             # (T+1, B)

    # eval-mode outputs: ret = sum_i -alpha[lens[i]][i], plus best segmentation strings
    ret = -sum(float(alpha_np[lens[i], i]) for i in range(B))
    vocab = [f"w{i}" for i in range(V)]
    ids_np = np.asarray(ids)
    out_str = [print_best_path(lens[i], ids_np[i], i, logpy_np, vocab) for i in range(B)]

    # correctness check against pure-numpy eval-mode reference
    ref_logpy, ref_alpha = reference_forward(
        emb, ids, y_start,
        (np.asarray(cell_wih), np.asarray(cell_whh), np.asarray(cell_bih), np.asarray(cell_bhh)),
        (y0_w, y0_b), (hl_w, hl_b),
        [(np.asarray(l0_wih), np.asarray(l0_whh), np.asarray(l0_bih), np.asarray(l0_bhh)),
         (np.asarray(l1_wih), np.asarray(l1_whh), np.asarray(l1_bih), np.asarray(l1_bhh))],
        out_b)
    np.testing.assert_allclose(logpy_np, ref_logpy, rtol=2e-3, atol=2e-3)
    np.testing.assert_allclose(alpha_np, ref_alpha, rtol=2e-3, atol=2e-3)
    assert np.isfinite(ret)
    assert len(out_str) == B

    print("KERNEL_OK")
</pallas_src>

<mosaic_0001>
module attributes {stable_mosaic.version = 11 : i64} {
  func.func @npmt_kernel(%arg0: memref<64x16xf32, #tpu.memory_space<vmem>>, %arg1: memref<64x1xi32, #tpu.memory_space<vmem>>, %arg2: memref<152x64xf32, #tpu.memory_space<vmem>>, %arg3: memref<16x5xf32, #tpu.memory_space<vmem>>, %arg4: memref<2x9xf32, #tpu.memory_space<vmem>>, %arg5: memref<16x16xf32, #tpu.memory_space<vmem>>) attributes {dimension_semantics = [], scalar_prefetch = 0 : i64, scratch_operands = 1 : i64, tpu.core_type = #tpu.core_type<tc>} {
    %c0 = arith.constant 0 : index
    %c0_0 = arith.constant 0 : index
    %0 = vector.load %arg2[%c0, %c0_0] : memref<152x64xf32, #tpu.memory_space<vmem>>, vector<152x64xf32>
    %1 = vector.extract_strided_slice %0 {offsets = [0, 0], sizes = [16, 64], strides = [1, 1]} : vector<152x64xf32> to vector<16x64xf32>
    %2 = vector.extract_strided_slice %0 {offsets = [16, 0], sizes = [16, 64], strides = [1, 1]} : vector<152x64xf32> to vector<16x64xf32>
    %3 = vector.extract_strided_slice %0 {offsets = [32, 0], sizes = [16, 64], strides = [1, 1]} : vector<152x64xf32> to vector<16x64xf32>
    %4 = vector.extract_strided_slice %0 {offsets = [48, 0], sizes = [16, 64], strides = [1, 1]} : vector<152x64xf32> to vector<16x64xf32>
    %5 = vector.extract_strided_slice %0 {offsets = [64, 0], sizes = [16, 64], strides = [1, 1]} : vector<152x64xf32> to vector<16x64xf32>
    %6 = vector.extract_strided_slice %0 {offsets = [80, 0], sizes = [16, 64], strides = [1, 1]} : vector<152x64xf32> to vector<16x64xf32>
    %7 = vector.extract_strided_slice %0 {offsets = [96, 0], sizes = [16, 16], strides = [1, 1]} : vector<152x64xf32> to vector<16x16xf32>
    %8 = vector.extract_strided_slice %0 {offsets = [112, 0], sizes = [16, 32], strides = [1, 1]} : vector<152x64xf32> to vector<16x32xf32>
    %9 = vector.extract_strided_slice %0 {offsets = [128, 0], sizes = [16, 16], strides = [1, 1]} : vector<152x64xf32> to vector<16x16xf32>
    %10 = vector.extract_strided_slice %0 {offsets = [144, 0], sizes = [8, 64], strides = [1, 1]} : vector<152x64xf32> to vector<8x64xf32>
    %11 = vector.extract_strided_slice %10 {offsets = [0, 0], sizes = [1, 64], strides = [1, 1]} : vector<8x64xf32> to vector<1x64xf32>
    %12 = vector.extract_strided_slice %10 {offsets = [1, 0], sizes = [1, 64], strides = [1, 1]} : vector<8x64xf32> to vector<1x64xf32>
    %13 = vector.extract_strided_slice %10 {offsets = [2, 0], sizes = [1, 64], strides = [1, 1]} : vector<8x64xf32> to vector<1x64xf32>
    %14 = vector.extract_strided_slice %10 {offsets = [3, 0], sizes = [1, 16], strides = [1, 1]} : vector<8x64xf32> to vector<1x16xf32>
    %15 = vector.extract_strided_slice %10 {offsets = [4, 0], sizes = [1, 32], strides = [1, 1]} : vector<8x64xf32> to vector<1x32xf32>
    %16 = vector.extract_strided_slice %10 {offsets = [5, 0], sizes = [1, 16], strides = [1, 1]} : vector<8x64xf32> to vector<1x16xf32>
    %17 = vector.extract_strided_slice %10 {offsets = [6, 0], sizes = [1, 16], strides = [1, 1]} : vector<8x64xf32> to vector<1x16xf32>
    %c0_1 = arith.constant 0 : index
    %c0_2 = arith.constant 0 : index
    %18 = vector.load %arg0[%c0_1, %c0_2] : memref<64x16xf32, #tpu.memory_space<vmem>>, vector<64x16xf32>
    %c0_3 = arith.constant 0 : index
    %c0_4 = arith.constant 0 : index
    %19 = vector.load %arg1[%c0_3, %c0_4] : memref<64x1xi32, #tpu.memory_space<vmem>>, vector<64x1xi32>
    %20 = vector.shape_cast %17 : vector<1x16xf32> to vector<1x16xf32>
    %21 = vector.broadcast %20 : vector<1x16xf32> to vector<2x16xf32>
    %22 = vector.extract_strided_slice %18 {offsets = [0, 0], sizes = [14, 16], strides = [1, 1]} : vector<64x16xf32> to vector<14x16xf32>
    %23 = tpu.concatenate %21, %22 in 0 : vector<2x16xf32>, vector<14x16xf32> -> vector<16x16xf32>
    %cst = arith.constant dense<0.000000e+00> : vector<16x64xf32>
    %24 = tpu.matmul %23, %1, %cst {dimension_numbers = #tpu.dot_dimension_numbers<[1], [0], [0], [1], [0, 0, 1, 1], [], []>} : vector<16x16xf32>, vector<16x64xf32>, vector<16x64xf32> -> vector<16x64xf32>
    %25 = vector.broadcast %11 : vector<1x64xf32> to vector<16x64xf32>
    %26 = arith.addf %24, %25 : vector<16x64xf32>
    %cst_5 = arith.constant 0.000000e+00 : f32
    %27 = vector.broadcast %cst_5 : f32 to vector<2x16xf32>
    %cst_6 = arith.constant 0.000000e+00 : f32
    %28 = vector.broadcast %cst_6 : f32 to vector<2x16xf32>
    %29 = vector.extract_strided_slice %26 {offsets = [0, 0], sizes = [2, 64], strides = [1, 1]} : vector<16x64xf32> to vector<2x64xf32>
    %cst_7 = arith.constant dense<0.000000e+00> : vector<2x64xf32>
    %30 = tpu.matmul %27, %2, %cst_7 {dimension_numbers = #tpu.dot_dimension_numbers<[1], [0], [0], [1], [0, 0, 1, 1], [], []>} : vector<2x16xf32>, vector<16x64xf32>, vector<2x64xf32> -> vector<2x64xf32>
    %31 = arith.addf %29, %30 : vector<2x64xf32>
    %32 = vector.extract_strided_slice %31 {offsets = [0, 0], sizes = [2, 16], strides = [1, 1]} : vector<2x64xf32> to vector<2x16xf32>
    %33 = arith.negf %32 : vector<2x16xf32>
    %34 = math.exp %33 : vector<2x16xf32>
    %cst_8 = arith.constant 1.000000e+00 : f32
    %35 = vector.broadcast %cst_8 : f32 to vector<2x16xf32>
    %36 = arith.addf %35, %34 : vector<2x16xf32>
    %37 = arith.divf %35, %36 : vector<2x16xf32>
    %38 = vector.extract_strided_slice %31 {offsets = [0, 16], sizes = [2, 16], strides = [1, 1]} : vector<2x64xf32> to vector<2x16xf32>
    %39 = arith.negf %38 : vector<2x16xf32>
    %40 = math.exp %39 : vector<2x16xf32>
    %cst_9 = arith.constant 1.000000e+00 : f32
    %41 = vector.broadcast %cst_9 : f32 to vector<2x16xf32>
    %42 = arith.addf %41, %40 : vector<2x16xf32>
    %43 = arith.divf %41, %42 : vector<2x16xf32>
    %44 = vector.extract_strided_slice %31 {offsets = [0, 32], sizes = [2, 16], strides = [1, 1]} : vector<2x64xf32> to vector<2x16xf32>
    %45 = math.tanh %44 : vector<2x16xf32>
    %46 = vector.extract_strided_slice %31 {offsets = [0, 48], sizes = [2, 16], strides = [1, 1]} : vector<2x64xf32> to vector<2x16xf32>
    %47 = arith.negf %46 : vector<2x16xf32>
    %48 = math.exp %47 : vector<2x16xf32>
    %cst_10 = arith.constant 1.000000e+00 : f32
    %49 = vector.broadcast %cst_10 : f32 to vector<2x16xf32>
    %50 = arith.addf %49, %48 : vector<2x16xf32>
    %51 = arith.divf %49, %50 : vector<2x16xf32>
    %52 = arith.mulf %43, %28 : vector<2x16xf32>
    %53 = arith.mulf %37, %45 : vector<2x16xf32>
    %54 = arith.addf %52, %53 : vector<2x16xf32>
    %55 = math.tanh %54 : vector<2x16xf32>
    %56 = arith.mulf %51, %55 : vector<2x16xf32>
    %cst_11 = arith.constant 1.000000e-01 : f32
    %57 = vector.broadcast %cst_11 : f32 to vector<2x16xf32>
    %58 = arith.mulf %57, %56 : vector<2x16xf32>
    %c0_12 = arith.constant 0 : index
    %c0_13 = arith.constant 0 : index
    %59 = vector.load %arg5[%c0_12, %c0_13] : memref<16x16xf32, #tpu.memory_space<vmem>>, vector<2x16xf32>
    tpu.vector_store %arg5[%c0_12, %c0_13], %58 {strides = array<i32>} : memref<16x16xf32, #tpu.memory_space<vmem>>, vector<2x16xf32>,
    %60 = vector.extract_strided_slice %26 {offsets = [2, 0], sizes = [2, 64], strides = [1, 1]} : vector<16x64xf32> to vector<2x64xf32>
    %cst_14 = arith.constant dense<0.000000e+00> : vector<2x64xf32>
    %61 = tpu.matmul %56, %2, %cst_14 {dimension_numbers = #tpu.dot_dimension_numbers<[1], [0], [0], [1], [0, 0, 1, 1], [], []>} : vector<2x16xf32>, vector<16x64xf32>, vector<2x64xf32> -> vector<2x64xf32>
    %62 = arith.addf %60, %61 : vector<2x64xf32>
    %63 = vector.extract_strided_slice %62 {offsets = [0, 0], sizes = [2, 16], strides = [1, 1]} : vector<2x64xf32> to vector<2x16xf32>
    %64 = arith.negf %63 : vector<2x16xf32>
    %65 = math.exp %64 : vector<2x16xf32>
    %cst_15 = arith.constant 1.000000e+00 : f32
    %66 = vector.broadcast %cst_15 : f32 to vector<2x16xf32>
    %67 = arith.addf %66, %65 : vector<2x16xf32>
    %68 = arith.divf %66, %67 : vector<2x16xf32>
    %69 = vector.extract_strided_slice %62 {offsets = [0, 16], sizes = [2, 16], strides = [1, 1]} : vector<2x64xf32> to vector<2x16xf32>
    %70 = arith.negf %69 : vector<2x16xf32>
    %71 = math.exp %70 : vector<2x16xf32>
    %cst_16 = arith.constant 1.000000e+00 : f32
    %72 = vector.broadcast %cst_16 : f32 to vector<2x16xf32>
    %73 = arith.addf %72, %71 : vector<2x16xf32>
    %74 = arith.divf %72, %73 : vector<2x16xf32>
    %75 = vector.extract_strided_slice %62 {offsets = [0, 32], sizes = [2, 16], strides = [1, 1]} : vector<2x64xf32> to vector<2x16xf32>
    %76 = math.tanh %75 : vector<2x16xf32>
    %77 = vector.extract_strided_slice %62 {offsets = [0, 48], sizes = [2, 16], strides = [1, 1]} : vector<2x64xf32> to vector<2x16xf32>
    %78 = arith.negf %77 : vector<2x16xf32>
    %79 = math.exp %78 : vector<2x16xf32>
    %cst_17 = arith.constant 1.000000e+00 : f32
    %80 = vector.broadcast %cst_17 : f32 to vector<2x16xf32>
    %81 = arith.addf %80, %79 : vector<2x16xf32>
    %82 = arith.divf %80, %81 : vector<2x16xf32>
    %83 = arith.mulf %74, %54 : vector<2x16xf32>
    %84 = arith.mulf %68, %76 : vector<2x16xf32>
    %85 = arith.addf %83, %84 : vector<2x16xf32>
    %86 = math.tanh %85 : vector<2x16xf32>
    %87 = arith.mulf %82, %86 : vector<2x16xf32>
    %cst_18 = arith.constant 1.000000e-01 : f32
    %88 = vector.broadcast %cst_18 : f32 to vector<2x16xf32>
    %89 = arith.mulf %88, %87 : vector<2x16xf32>
    %c2 = arith.constant 2 : index
    %c0_19 = arith.constant 0 : index
    %90 = vector.load %arg5[%c2, %c0_19] : memref<16x16xf32, #tpu.memory_space<vmem>>, vector<2x16xf32>
    tpu.vector_store %arg5[%c2, %c0_19], %89 {strides = array<i32>} : memref<16x16xf32, #tpu.memory_space<vmem>>, vector<2x16xf32>,
    %91 = vector.extract_strided_slice %26 {offsets = [4, 0], sizes = [2, 64], strides = [1, 1]} : vector<16x64xf32> to vector<2x64xf32>
    %cst_20 = arith.constant dense<0.000000e+00> : vector<2x64xf32>
    %92 = tpu.matmul %87, %2, %cst_20 {dimension_numbers = #tpu.dot_dimension_numbers<[1], [0], [0], [1], [0, 0, 1, 1], [], []>} : vector<2x16xf32>, vector<16x64xf32>, vector<2x64xf32> -> vector<2x64xf32>
    %93 = arith.addf %91, %92 : vector<2x64xf32>
    %94 = vector.extract_strided_slice %93 {offsets = [0, 0], sizes = [2, 16], strides = [1, 1]} : vector<2x64xf32> to vector<2x16xf32>
    %95 = arith.negf %94 : vector<2x16xf32>
    %96 = math.exp %95 : vector<2x16xf32>
    %cst_21 = arith.constant 1.000000e+00 : f32
    %97 = vector.broadcast %cst_21 : f32 to vector<2x16xf32>
    %98 = arith.addf %97, %96 : vector<2x16xf32>
    %99 = arith.divf %97, %98 : vector<2x16xf32>
    %100 = vector.extract_strided_slice %93 {offsets = [0, 16], sizes = [2, 16], strides = [1, 1]} : vector<2x64xf32> to vector<2x16xf32>
    %101 = arith.negf %100 : vector<2x16xf32>
    %102 = math.exp %101 : vector<2x16xf32>
    %cst_22 = arith.constant 1.000000e+00 : f32
    %103 = vector.broadcast %cst_22 : f32 to vector<2x16xf32>
    %104 = arith.addf %103, %102 : vector<2x16xf32>
    %105 = arith.divf %103, %104 : vector<2x16xf32>
    %106 = vector.extract_strided_slice %93 {offsets = [0, 32], sizes = [2, 16], strides = [1, 1]} : vector<2x64xf32> to vector<2x16xf32>
    %107 = math.tanh %106 : vector<2x16xf32>
    %108 = vector.extract_strided_slice %93 {offsets = [0, 48], sizes = [2, 16], strides = [1, 1]} : vector<2x64xf32> to vector<2x16xf32>
    %109 = arith.negf %108 : vector<2x16xf32>
    %110 = math.exp %109 : vector<2x16xf32>
    %cst_23 = arith.constant 1.000000e+00 : f32
    %111 = vector.broadcast %cst_23 : f32 to vector<2x16xf32>
    %112 = arith.addf %111, %110 : vector<2x16xf32>
    %113 = arith.divf %111, %112 : vector<2x16xf32>
    %114 = arith.mulf %105, %85 : vector<2x16xf32>
    %115 = arith.mulf %99, %107 : vector<2x16xf32>
    %116 = arith.addf %114, %115 : vector<2x16xf32>
    %117 = math.tanh %116 : vector<2x16xf32>
    %118 = arith.mulf %113, %117 : vector<2x16xf32>
    %cst_24 = arith.constant 1.000000e-01 : f32
    %119 = vector.broadcast %cst_24 : f32 to vector<2x16xf32>
    %120 = arith.mulf %119, %118 : vector<2x16xf32>
    %c4 = arith.constant 4 : index
    %c0_25 = arith.constant 0 : index
    %121 = vector.load %arg5[%c4, %c0_25] : memref<16x16xf32, #tpu.memory_space<vmem>>, vector<2x16xf32>
    tpu.vector_store %arg5[%c4, %c0_25], %120 {strides = array<i32>} : memref<16x16xf32, #tpu.memory_space<vmem>>, vector<2x16xf32>,
    %122 = vector.extract_strided_slice %26 {offsets = [6, 0], sizes = [2, 64], strides = [1, 1]} : vector<16x64xf32> to vector<2x64xf32>
    %cst_26 = arith.constant dense<0.000000e+00> : vector<2x64xf32>
    %123 = tpu.matmul %118, %2, %cst_26 {dimension_numbers = #tpu.dot_dimension_numbers<[1], [0], [0], [1], [0, 0, 1, 1], [], []>} : vector<2x16xf32>, vector<16x64xf32>, vector<2x64xf32> -> vector<2x64xf32>
    %124 = arith.addf %122, %123 : vector<2x64xf32>
    %125 = vector.extract_strided_slice %124 {offsets = [0, 0], sizes = [2, 16], strides = [1, 1]} : vector<2x64xf32> to vector<2x16xf32>
    %126 = arith.negf %125 : vector<2x16xf32>
    %127 = math.exp %126 : vector<2x16xf32>
    %cst_27 = arith.constant 1.000000e+00 : f32
    %128 = vector.broadcast %cst_27 : f32 to vector<2x16xf32>
    %129 = arith.addf %128, %127 : vector<2x16xf32>
    %130 = arith.divf %128, %129 : vector<2x16xf32>
    %131 = vector.extract_strided_slice %124 {offsets = [0, 16], sizes = [2, 16], strides = [1, 1]} : vector<2x64xf32> to vector<2x16xf32>
    %132 = arith.negf %131 : vector<2x16xf32>
    %133 = math.exp %132 : vector<2x16xf32>
    %cst_28 = arith.constant 1.000000e+00 : f32
    %134 = vector.broadcast %cst_28 : f32 to vector<2x16xf32>
    %135 = arith.addf %134, %133 : vector<2x16xf32>
    %136 = arith.divf %134, %135 : vector<2x16xf32>
    %137 = vector.extract_strided_slice %124 {offsets = [0, 32], sizes = [2, 16], strides = [1, 1]} : vector<2x64xf32> to vector<2x16xf32>
    %138 = math.tanh %137 : vector<2x16xf32>
    %139 = vector.extract_strided_slice %124 {offsets = [0, 48], sizes = [2, 16], strides = [1, 1]} : vector<2x64xf32> to vector<2x16xf32>
    %140 = arith.negf %139 : vector<2x16xf32>
    %141 = math.exp %140 : vector<2x16xf32>
    %cst_29 = arith.constant 1.000000e+00 : f32
    %142 = vector.broadcast %cst_29 : f32 to vector<2x16xf32>
    %143 = arith.addf %142, %141 : vector<2x16xf32>
    %144 = arith.divf %142, %143 : vector<2x16xf32>
    %145 = arith.mulf %136, %116 : vector<2x16xf32>
    %146 = arith.mulf %130, %138 : vector<2x16xf32>
    %147 = arith.addf %145, %146 : vector<2x16xf32>
    %148 = math.tanh %147 : vector<2x16xf32>
    %149 = arith.mulf %144, %148 : vector<2x16xf32>
    %cst_30 = arith.constant 1.000000e-01 : f32
    %150 = vector.broadcast %cst_30 : f32 to vector<2x16xf32>
    %151 = arith.mulf %150, %149 : vector<2x16xf32>
    %c6 = arith.constant 6 : index
    %c0_31 = arith.constant 0 : index
    %152 = vector.load %arg5[%c6, %c0_31] : memref<16x16xf32, #tpu.memory_space<vmem>>, vector<2x16xf32>
    tpu.vector_store %arg5[%c6, %c0_31], %151 {strides = array<i32>} : memref<16x16xf32, #tpu.memory_space<vmem>>, vector<2x16xf32>,
    %153 = vector.extract_strided_slice %26 {offsets = [8, 0], sizes = [2, 64], strides = [1, 1]} : vector<16x64xf32> to vector<2x64xf32>
    %cst_32 = arith.constant dense<0.000000e+00> : vector<2x64xf32>
    %154 = tpu.matmul %149, %2, %cst_32 {dimension_numbers = #tpu.dot_dimension_numbers<[1], [0], [0], [1], [0, 0, 1, 1], [], []>} : vector<2x16xf32>, vector<16x64xf32>, vector<2x64xf32> -> vector<2x64xf32>
    %155 = arith.addf %153, %154 : vector<2x64xf32>
    %156 = vector.extract_strided_slice %155 {offsets = [0, 0], sizes = [2, 16], strides = [1, 1]} : vector<2x64xf32> to vector<2x16xf32>
    %157 = arith.negf %156 : vector<2x16xf32>
    %158 = math.exp %157 : vector<2x16xf32>
    %cst_33 = arith.constant 1.000000e+00 : f32
    %159 = vector.broadcast %cst_33 : f32 to vector<2x16xf32>
    %160 = arith.addf %159, %158 : vector<2x16xf32>
    %161 = arith.divf %159, %160 : vector<2x16xf32>
    %162 = vector.extract_strided_slice %155 {offsets = [0, 16], sizes = [2, 16], strides = [1, 1]} : vector<2x64xf32> to vector<2x16xf32>
    %163 = arith.negf %162 : vector<2x16xf32>
    %164 = math.exp %163 : vector<2x16xf32>
    %cst_34 = arith.constant 1.000000e+00 : f32
    %165 = vector.broadcast %cst_34 : f32 to vector<2x16xf32>
    %166 = arith.addf %165, %164 : vector<2x16xf32>
    %167 = arith.divf %165, %166 : vector<2x16xf32>
    %168 = vector.extract_strided_slice %155 {offsets = [0, 32], sizes = [2, 16], strides = [1, 1]} : vector<2x64xf32> to vector<2x16xf32>
    %169 = math.tanh %168 : vector<2x16xf32>
    %170 = vector.extract_strided_slice %155 {offsets = [0, 48], sizes = [2, 16], strides = [1, 1]} : vector<2x64xf32> to vector<2x16xf32>
    %171 = arith.negf %170 : vector<2x16xf32>
    %172 = math.exp %171 : vector<2x16xf32>
    %cst_35 = arith.constant 1.000000e+00 : f32
    %173 = vector.broadcast %cst_35 : f32 to vector<2x16xf32>
    %174 = arith.addf %173, %172 : vector<2x16xf32>
    %175 = arith.divf %173, %174 : vector<2x16xf32>
    %176 = arith.mulf %167, %147 : vector<2x16xf32>
    %177 = arith.mulf %161, %169 : vector<2x16xf32>
    %178 = arith.addf %176, %177 : vector<2x16xf32>
    %179 = math.tanh %178 : vector<2x16xf32>
    %180 = arith.mulf %175, %179 : vector<2x16xf32>
    %cst_36 = arith.constant 1.000000e-01 : f32
    %181 = vector.broadcast %cst_36 : f32 to vector<2x16xf32>
    %182 = arith.mulf %181, %180 : vector<2x16xf32>
    %c8 = arith.constant 8 : index
    %c0_37 = arith.constant 0 : index
    %183 = vector.load %arg5[%c8, %c0_37] : memref<16x16xf32, #tpu.memory_space<vmem>>, vector<2x16xf32>
    tpu.vector_store %arg5[%c8, %c0_37], %182 {strides = array<i32>} : memref<16x16xf32, #tpu.memory_space<vmem>>, vector<2x16xf32>,
    %184 = vector.extract_strided_slice %26 {offsets = [10, 0], sizes = [2, 64], strides = [1, 1]} : vector<16x64xf32> to vector<2x64xf32>
    %cst_38 = arith.constant dense<0.000000e+00> : vector<2x64xf32>
    %185 = tpu.matmul %180, %2, %cst_38 {dimension_numbers = #tpu.dot_dimension_numbers<[1], [0], [0], [1], [0, 0, 1, 1], [], []>} : vector<2x16xf32>, vector<16x64xf32>, vector<2x64xf32> -> vector<2x64xf32>
    %186 = arith.addf %184, %185 : vector<2x64xf32>
    %187 = vector.extract_strided_slice %186 {offsets = [0, 0], sizes = [2, 16], strides = [1, 1]} : vector<2x64xf32> to vector<2x16xf32>
    %188 = arith.negf %187 : vector<2x16xf32>
    %189 = math.exp %188 : vector<2x16xf32>
    %cst_39 = arith.constant 1.000000e+00 : f32
    %190 = vector.broadcast %cst_39 : f32 to vector<2x16xf32>
    %191 = arith.addf %190, %189 : vector<2x16xf32>
    %192 = arith.divf %190, %191 : vector<2x16xf32>
    %193 = vector.extract_strided_slice %186 {offsets = [0, 16], sizes = [2, 16], strides = [1, 1]} : vector<2x64xf32> to vector<2x16xf32>
    %194 = arith.negf %193 : vector<2x16xf32>
    %195 = math.exp %194 : vector<2x16xf32>
    %cst_40 = arith.constant 1.000000e+00 : f32
    %196 = vector.broadcast %cst_40 : f32 to vector<2x16xf32>
    %197 = arith.addf %196, %195 : vector<2x16xf32>
    %198 = arith.divf %196, %197 : vector<2x16xf32>
    %199 = vector.extract_strided_slice %186 {offsets = [0, 32], sizes = [2, 16], strides = [1, 1]} : vector<2x64xf32> to vector<2x16xf32>
    %200 = math.tanh %199 : vector<2x16xf32>
    %201 = vector.extract_strided_slice %186 {offsets = [0, 48], sizes = [2, 16], strides = [1, 1]} : vector<2x64xf32> to vector<2x16xf32>
    %202 = arith.negf %201 : vector<2x16xf32>
    %203 = math.exp %202 : vector<2x16xf32>
    %cst_41 = arith.constant 1.000000e+00 : f32
    %204 = vector.broadcast %cst_41 : f32 to vector<2x16xf32>
    %205 = arith.addf %204, %203 : vector<2x16xf32>
    %206 = arith.divf %204, %205 : vector<2x16xf32>
    %207 = arith.mulf %198, %178 : vector<2x16xf32>
    %208 = arith.mulf %192, %200 : vector<2x16xf32>
    %209 = arith.addf %207, %208 : vector<2x16xf32>
    %210 = math.tanh %209 : vector<2x16xf32>
    %211 = arith.mulf %206, %210 : vector<2x16xf32>
    %cst_42 = arith.constant 1.000000e-01 : f32
    %212 = vector.broadcast %cst_42 : f32 to vector<2x16xf32>
    %213 = arith.mulf %212, %211 : vector<2x16xf32>
    %c10 = arith.constant 10 : index
    %c0_43 = arith.constant 0 : index
    %214 = vector.load %arg5[%c10, %c0_43] : memref<16x16xf32, #tpu.memory_space<vmem>>, vector<2x16xf32>
    tpu.vector_store %arg5[%c10, %c0_43], %213 {strides = array<i32>} : memref<16x16xf32, #tpu.memory_space<vmem>>, vector<2x16xf32>,
    %215 = vector.extract_strided_slice %26 {offsets = [12, 0], sizes = [2, 64], strides = [1, 1]} : vector<16x64xf32> to vector<2x64xf32>
    %cst_44 = arith.constant dense<0.000000e+00> : vector<2x64xf32>
    %216 = tpu.matmul %211, %2, %cst_44 {dimension_numbers = #tpu.dot_dimension_numbers<[1], [0], [0], [1], [0, 0, 1, 1], [], []>} : vector<2x16xf32>, vector<16x64xf32>, vector<2x64xf32> -> vector<2x64xf32>
    %217 = arith.addf %215, %216 : vector<2x64xf32>
    %218 = vector.extract_strided_slice %217 {offsets = [0, 0], sizes = [2, 16], strides = [1, 1]} : vector<2x64xf32> to vector<2x16xf32>
    %219 = arith.negf %218 : vector<2x16xf32>
    %220 = math.exp %219 : vector<2x16xf32>
    %cst_45 = arith.constant 1.000000e+00 : f32
    %221 = vector.broadcast %cst_45 : f32 to vector<2x16xf32>
    %222 = arith.addf %221, %220 : vector<2x16xf32>
    %223 = arith.divf %221, %222 : vector<2x16xf32>
    %224 = vector.extract_strided_slice %217 {offsets = [0, 16], sizes = [2, 16], strides = [1, 1]} : vector<2x64xf32> to vector<2x16xf32>
    %225 = arith.negf %224 : vector<2x16xf32>
    %226 = math.exp %225 : vector<2x16xf32>
    %cst_46 = arith.constant 1.000000e+00 : f32
    %227 = vector.broadcast %cst_46 : f32 to vector<2x16xf32>
    %228 = arith.addf %227, %226 : vector<2x16xf32>
    %229 = arith.divf %227, %228 : vector<2x16xf32>
    %230 = vector.extract_strided_slice %217 {offsets = [0, 32], sizes = [2, 16], strides = [1, 1]} : vector<2x64xf32> to vector<2x16xf32>
    %231 = math.tanh %230 : vector<2x16xf32>
    %232 = vector.extract_strided_slice %217 {offsets = [0, 48], sizes = [2, 16], strides = [1, 1]} : vector<2x64xf32> to vector<2x16xf32>
    %233 = arith.negf %232 : vector<2x16xf32>
    %234 = math.exp %233 : vector<2x16xf32>
    %cst_47 = arith.constant 1.000000e+00 : f32
    %235 = vector.broadcast %cst_47 : f32 to vector<2x16xf32>
    %236 = arith.addf %235, %234 : vector<2x16xf32>
    %237 = arith.divf %235, %236 : vector<2x16xf32>
    %238 = arith.mulf %229, %209 : vector<2x16xf32>
    %239 = arith.mulf %223, %231 : vector<2x16xf32>
    %240 = arith.addf %238, %239 : vector<2x16xf32>
    %241 = math.tanh %240 : vector<2x16xf32>
    %242 = arith.mulf %237, %241 : vector<2x16xf32>
    %cst_48 = arith.constant 1.000000e-01 : f32
    %243 = vector.broadcast %cst_48 : f32 to vector<2x16xf32>
    %244 = arith.mulf %243, %242 : vector<2x16xf32>
    %c12 = arith.constant 12 : index
    %c0_49 = arith.constant 0 : index
    %245 = vector.load %arg5[%c12, %c0_49] : memref<16x16xf32, #tpu.memory_space<vmem>>, vector<2x16xf32>
    tpu.vector_store %arg5[%c12, %c0_49], %244 {strides = array<i32>} : memref<16x16xf32, #tpu.memory_space<vmem>>, vector<2x16xf32>,
    %246 = vector.extract_strided_slice %26 {offsets = [14, 0], sizes = [2, 64], strides = [1, 1]} : vector<16x64xf32> to vector<2x64xf32>
    %cst_50 = arith.constant dense<0.000000e+00> : vector<2x64xf32>
    %247 = tpu.matmul %242, %2, %cst_50 {dimension_numbers = #tpu.dot_dimension_numbers<[1], [0], [0], [1], [0, 0, 1, 1], [], []>} : vector<2x16xf32>, vector<16x64xf32>, vector<2x64xf32> -> vector<2x64xf32>
    %248 = arith.addf %246, %247 : vector<2x64xf32>
    %249 = vector.extract_strided_slice %248 {offsets = [0, 0], sizes = [2, 16], strides = [1, 1]} : vector<2x64xf32> to vector<2x16xf32>
    %250 = arith.negf %249 : vector<2x16xf32>
    %251 = math.exp %250 : vector<2x16xf32>
    %cst_51 = arith.constant 1.000000e+00 : f32
    %252 = vector.broadcast %cst_51 : f32 to vector<2x16xf32>
    %253 = arith.addf %252, %251 : vector<2x16xf32>
    %254 = arith.divf %252, %253 : vector<2x16xf32>
    %255 = vector.extract_strided_slice %248 {offsets = [0, 16], sizes = [2, 16], strides = [1, 1]} : vector<2x64xf32> to vector<2x16xf32>
    %256 = arith.negf %255 : vector<2x16xf32>
    %257 = math.exp %256 : vector<2x16xf32>
    %cst_52 = arith.constant 1.000000e+00 : f32
    %258 = vector.broadcast %cst_52 : f32 to vector<2x16xf32>
    %259 = arith.addf %258, %257 : vector<2x16xf32>
    %260 = arith.divf %258, %259 : vector<2x16xf32>
    %261 = vector.extract_strided_slice %248 {offsets = [0, 32], sizes = [2, 16], strides = [1, 1]} : vector<2x64xf32> to vector<2x16xf32>
    %262 = math.tanh %261 : vector<2x16xf32>
    %263 = vector.extract_strided_slice %248 {offsets = [0, 48], sizes = [2, 16], strides = [1, 1]} : vector<2x64xf32> to vector<2x16xf32>
    %264 = arith.negf %263 : vector<2x16xf32>
    %265 = math.exp %264 : vector<2x16xf32>
    %cst_53 = arith.constant 1.000000e+00 : f32
    %266 = vector.broadcast %cst_53 : f32 to vector<2x16xf32>
    %267 = arith.addf %266, %265 : vector<2x16xf32>
    %268 = arith.divf %266, %267 : vector<2x16xf32>
    %269 = arith.mulf %260, %240 : vector<2x16xf32>
    %270 = arith.mulf %254, %262 : vector<2x16xf32>
    %271 = arith.addf %269, %270 : vector<2x16xf32>
    %272 = math.tanh %271 : vector<2x16xf32>
    %273 = arith.mulf %268, %272 : vector<2x16xf32>
    %cst_54 = arith.constant 1.000000e-01 : f32
    %274 = vector.broadcast %cst_54 : f32 to vector<2x16xf32>
    %275 = arith.mulf %274, %273 : vector<2x16xf32>
    %c14 = arith.constant 14 : index
    %c0_55 = arith.constant 0 : index
    %276 = vector.load %arg5[%c14, %c0_55] : memref<16x16xf32, #tpu.memory_space<vmem>>, vector<2x16xf32>
    tpu.vector_store %arg5[%c14, %c0_55], %275 {strides = array<i32>} : memref<16x16xf32, #tpu.memory_space<vmem>>, vector<2x16xf32>,
    %c0_56 = arith.constant 0 : index
    %c0_57 = arith.constant 0 : index
    %277 = vector.load %arg5[%c0_56, %c0_57] : memref<16x16xf32, #tpu.memory_space<vmem>>, vector<16x16xf32>
    %cst_58 = arith.constant dense<0.000000e+00> : vector<16x16xf32>
    %278 = tpu.matmul %277, %7, %cst_58 {dimension_numbers = #tpu.dot_dimension_numbers<[1], [0], [0], [1], [0, 0, 1, 1], [], []>} : vector<16x16xf32>, vector<16x16xf32>, vector<16x16xf32> -> vector<16x16xf32>
    %279 = vector.broadcast %14 : vector<1x16xf32> to vector<16x16xf32>
    %280 = arith.addf %278, %279 : vector<16x16xf32>
    %cst_59 = arith.constant dense<0.000000e+00> : vector<16x32xf32>
    %281 = tpu.matmul %277, %8, %cst_59 {dimension_numbers = #tpu.dot_dimension_numbers<[1], [0], [0], [1], [0, 0, 1, 1], [], []>} : vector<16x16xf32>, vector<16x32xf32>, vector<16x32xf32> -> vector<16x32xf32>
    %282 = vector.broadcast %15 : vector<1x32xf32> to vector<16x32xf32>
    %283 = arith.addf %281, %282 : vector<16x32xf32>
    %284 = math.tanh %283 : vector<16x32xf32>
    %285 = vector.extract_strided_slice %284 {offsets = [0, 0], sizes = [16, 16], strides = [1, 1]} : vector<16x32xf32> to vector<16x16xf32>
    %286 = vector.extract_strided_slice %284 {offsets = [0, 16], sizes = [16, 16], strides = [1, 1]} : vector<16x32xf32> to vector<16x16xf32>
    %cst_60 = arith.constant 0.000000e+00 : f32
    %287 = vector.broadcast %cst_60 : f32 to vector<16x16xf32>
    %cst_61 = arith.constant 0.000000e+00 : f32
    %288 = vector.broadcast %cst_61 : f32 to vector<16x16xf32>
    %289 = tpu.concatenate %280, %18 in 0 : vector<16x16xf32>, vector<64x16xf32> -> vector<80x16xf32>
    %cst_62 = arith.constant dense<0.000000e+00> : vector<80x64xf32>
    %290 = tpu.matmul %289, %3, %cst_62 {dimension_numbers = #tpu.dot_dimension_numbers<[1], [0], [0], [1], [0, 0, 1, 1], [], []>} : vector<80x16xf32>, vector<16x64xf32>, vector<80x64xf32> -> vector<80x64xf32>
    %291 = vector.broadcast %12 : vector<1x64xf32> to vector<80x64xf32>
    %292 = arith.addf %290, %291 : vector<80x64xf32>
    %293 = tpu.iota {dimensions = array<i32: 0>} : vector<16x1xi32>
    %294 = tpu.iota {dimensions = array<i32: 1>} : vector<16x16xi32>
    %cst_63 = arith.constant 0.000000e+00 : f32
    %295 = vector.broadcast %cst_63 : f32 to vector<16x1xf32>
    %cst_64 = arith.constant -1.000000e+06 : f32
    %296 = vector.broadcast %cst_64 : f32 to vector<16x1xf32>
    %297 = vector.extract_strided_slice %292 {offsets = [0, 0], sizes = [16, 64], strides = [1, 1]} : vector<80x64xf32> to vector<16x64xf32>
    %cst_65 = arith.constant dense<0.000000e+00> : vector<16x64xf32>
    %298 = tpu.matmul %285, %4, %cst_65 {dimension_numbers = #tpu.dot_dimension_numbers<[1], [0], [0], [1], [0, 0, 1, 1], [], []>} : vector<16x16xf32>, vector<16x64xf32>, vector<16x64xf32> -> vector<16x64xf32>
    %299 = arith.addf %297, %298 : vector<16x64xf32>
    %300 = vector.extract_strided_slice %299 {offsets = [0, 0], sizes = [16, 16], strides = [1, 1]} : vector<16x64xf32> to vector<16x16xf32>
    %301 = arith.negf %300 : vector<16x16xf32>
    %302 = math.exp %301 : vector<16x16xf32>
    %cst_66 = arith.constant 1.000000e+00 : f32
    %303 = vector.broadcast %cst_66 : f32 to vector<16x16xf32>
    %304 = arith.addf %303, %302 : vector<16x16xf32>
    %305 = arith.divf %303, %304 : vector<16x16xf32>
    %306 = vector.extract_strided_slice %299 {offsets = [0, 16], sizes = [16, 16], strides = [1, 1]} : vector<16x64xf32> to vector<16x16xf32>
    %307 = arith.negf %306 : vector<16x16xf32>
    %308 = math.exp %307 : vector<16x16xf32>
    %cst_67 = arith.constant 1.000000e+00 : f32
    %309 = vector.broadcast %cst_67 : f32 to vector<16x16xf32>
    %310 = arith.addf %309, %308 : vector<16x16xf32>
    %311 = arith.divf %309, %310 : vector<16x16xf32>
    %312 = vector.extract_strided_slice %299 {offsets = [0, 32], sizes = [16, 16], strides = [1, 1]} : vector<16x64xf32> to vector<16x16xf32>
    %313 = math.tanh %312 : vector<16x16xf32>
    %314 = vector.extract_strided_slice %299 {offsets = [0, 48], sizes = [16, 16], strides = [1, 1]} : vector<16x64xf32> to vector<16x16xf32>
    %315 = arith.negf %314 : vector<16x16xf32>
    %316 = math.exp %315 : vector<16x16xf32>
    %cst_68 = arith.constant 1.000000e+00 : f32
    %317 = vector.broadcast %cst_68 : f32 to vector<16x16xf32>
    %318 = arith.addf %317, %316 : vector<16x16xf32>
    %319 = arith.divf %317, %318 : vector<16x16xf32>
    %320 = arith.mulf %311, %287 : vector<16x16xf32>
    %321 = arith.mulf %305, %313 : vector<16x16xf32>
    %322 = arith.addf %320, %321 : vector<16x16xf32>
    %323 = math.tanh %322 : vector<16x16xf32>
    %324 = arith.mulf %319, %323 : vector<16x16xf32>
    %cst_69 = arith.constant dense<0.000000e+00> : vector<16x64xf32>
    %325 = tpu.matmul %324, %5, %cst_69 {dimension_numbers = #tpu.dot_dimension_numbers<[1], [0], [0], [1], [0, 0, 1, 1], [], []>} : vector<16x16xf32>, vector<16x64xf32>, vector<16x64xf32> -> vector<16x64xf32>
    %cst_70 = arith.constant dense<0.000000e+00> : vector<16x64xf32>
    %326 = tpu.matmul %286, %6, %cst_70 {dimension_numbers = #tpu.dot_dimension_numbers<[1], [0], [0], [1], [0, 0, 1, 1], [], []>} : vector<16x16xf32>, vector<16x64xf32>, vector<16x64xf32> -> vector<16x64xf32>
    %327 = arith.addf %325, %326 : vector<16x64xf32>
    %328 = vector.broadcast %13 : vector<1x64xf32> to vector<16x64xf32>
    %329 = arith.addf %327, %328 : vector<16x64xf32>
    %330 = vector.extract_strided_slice %329 {offsets = [0, 0], sizes = [16, 16], strides = [1, 1]} : vector<16x64xf32> to vector<16x16xf32>
    %331 = arith.negf %330 : vector<16x16xf32>
    %332 = math.exp %331 : vector<16x16xf32>
    %cst_71 = arith.constant 1.000000e+00 : f32
    %333 = vector.broadcast %cst_71 : f32 to vector<16x16xf32>
    %334 = arith.addf %333, %332 : vector<16x16xf32>
    %335 = arith.divf %333, %334 : vector<16x16xf32>
    %336 = vector.extract_strided_slice %329 {offsets = [0, 16], sizes = [16, 16], strides = [1, 1]} : vector<16x64xf32> to vector<16x16xf32>
    %337 = arith.negf %336 : vector<16x16xf32>
    %338 = math.exp %337 : vector<16x16xf32>
    %cst_72 = arith.constant 1.000000e+00 : f32
    %339 = vector.broadcast %cst_72 : f32 to vector<16x16xf32>
    %340 = arith.addf %339, %338 : vector<16x16xf32>
    %341 = arith.divf %339, %340 : vector<16x16xf32>
    %342 = vector.extract_strided_slice %329 {offsets = [0, 32], sizes = [16, 16], strides = [1, 1]} : vector<16x64xf32> to vector<16x16xf32>
    %343 = math.tanh %342 : vector<16x16xf32>
    %344 = vector.extract_strided_slice %329 {offsets = [0, 48], sizes = [16, 16], strides = [1, 1]} : vector<16x64xf32> to vector<16x16xf32>
    %345 = arith.negf %344 : vector<16x16xf32>
    %346 = math.exp %345 : vector<16x16xf32>
    %cst_73 = arith.constant 1.000000e+00 : f32
    %347 = vector.broadcast %cst_73 : f32 to vector<16x16xf32>
    %348 = arith.addf %347, %346 : vector<16x16xf32>
    %349 = arith.divf %347, %348 : vector<16x16xf32>
    %350 = arith.mulf %341, %288 : vector<16x16xf32>
    %351 = arith.mulf %335, %343 : vector<16x16xf32>
    %352 = arith.addf %350, %351 : vector<16x16xf32>
    %353 = math.tanh %352 : vector<16x16xf32>
    %354 = arith.mulf %349, %353 : vector<16x16xf32>
    %cst_74 = arith.constant dense<0.000000e+00> : vector<16x16xf32>
    %355 = tpu.matmul %354, %9, %cst_74 {dimension_numbers = #tpu.dot_dimension_numbers<[1], [0], [0], [1], [0, 0, 1, 1], [], []>} : vector<16x16xf32>, vector<16x16xf32>, vector<16x16xf32> -> vector<16x16xf32>
    %356 = vector.broadcast %16 : vector<1x16xf32> to vector<16x16xf32>
    %357 = arith.addf %355, %356 : vector<16x16xf32>
    %cst_75 = arith.constant dense<0xFF800000> : vector<16xf32>
    %358 = vector.multi_reduction <maximumf>, %357, %cst_75 [1] : vector<16x16xf32> to vector<16xf32>
    %359 = vector.shape_cast %358 : vector<16xf32> to vector<16x1xf32>
    %360 = vector.broadcast %359 : vector<16x1xf32> to vector<16x16xf32>
    %361 = arith.subf %357, %360 : vector<16x16xf32>
    %362 = math.exp %361 : vector<16x16xf32>
    %cst_76 = arith.constant dense<0.000000e+00> : vector<16xf32>
    %363 = vector.multi_reduction <add>, %362, %cst_76 [1] : vector<16x16xf32> to vector<16xf32>
    %364 = vector.shape_cast %363 : vector<16xf32> to vector<16x1xf32>
    %365 = math.log %364 : vector<16x1xf32>
    %366 = vector.broadcast %365 : vector<16x1xf32> to vector<16x16xf32>
    %367 = arith.subf %361, %366 : vector<16x16xf32>
    %368 = vector.extract_strided_slice %19 {offsets = [0, 0], sizes = [16, 1], strides = [1, 1]} : vector<64x1xi32> to vector<16x1xi32>
    %369 = vector.broadcast %368 : vector<16x1xi32> to vector<16x16xi32>
    %370 = arith.cmpi eq, %294, %369 : vector<16x16xi32>
    %cst_77 = arith.constant 0.000000e+00 : f32
    %371 = vector.broadcast %cst_77 : f32 to vector<16x16xf32>
    %372 = arith.select %370, %367, %371 : vector<16x16xi1>, vector<16x16xf32>
    %cst_78 = arith.constant dense<0.000000e+00> : vector<16xf32>
    %373 = vector.multi_reduction <add>, %372, %cst_78 [1] : vector<16x16xf32> to vector<16xf32>
    %374 = vector.shape_cast %373 : vector<16xf32> to vector<16x1xf32>
    %c16_i32 = arith.constant 16 : i32
    %375 = vector.broadcast %c16_i32 : i32 to vector<16x1xi32>
    %376 = arith.cmpi slt, %293, %375 : vector<16x1xi32>
    %cst_79 = arith.constant 0.000000e+00 : f32
    %377 = vector.broadcast %cst_79 : f32 to vector<16x1xf32>
    %378 = arith.select %376, %374, %377 : vector<16x1xi1>, vector<16x1xf32>
    %379 = arith.addf %295, %378 : vector<16x1xf32>
    %380 = vector.extract_strided_slice %292 {offsets = [16, 0], sizes = [16, 64], strides = [1, 1]} : vector<80x64xf32> to vector<16x64xf32>
    %cst_80 = arith.constant dense<0.000000e+00> : vector<16x64xf32>
    %381 = tpu.matmul %324, %4, %cst_80 {dimension_numbers = #tpu.dot_dimension_numbers<[1], [0], [0], [1], [0, 0, 1, 1], [], []>} : vector<16x16xf32>, vector<16x64xf32>, vector<16x64xf32> -> vector<16x64xf32>
    %382 = arith.addf %380, %381 : vector<16x64xf32>
    %383 = vector.extract_strided_slice %382 {offsets = [0, 0], sizes = [16, 16], strides = [1, 1]} : vector<16x64xf32> to vector<16x16xf32>
    %384 = arith.negf %383 : vector<16x16xf32>
    %385 = math.exp %384 : vector<16x16xf32>
    %cst_81 = arith.constant 1.000000e+00 : f32
    %386 = vector.broadcast %cst_81 : f32 to vector<16x16xf32>
    %387 = arith.addf %386, %385 : vector<16x16xf32>
    %388 = arith.divf %386, %387 : vector<16x16xf32>
    %389 = vector.extract_strided_slice %382 {offsets = [0, 16], sizes = [16, 16], strides = [1, 1]} : vector<16x64xf32> to vector<16x16xf32>
    %390 = arith.negf %389 : vector<16x16xf32>
    %391 = math.exp %390 : vector<16x16xf32>
    %cst_82 = arith.constant 1.000000e+00 : f32
    %392 = vector.broadcast %cst_82 : f32 to vector<16x16xf32>
    %393 = arith.addf %392, %391 : vector<16x16xf32>
    %394 = arith.divf %392, %393 : vector<16x16xf32>
    %395 = vector.extract_strided_slice %382 {offsets = [0, 32], sizes = [16, 16], strides = [1, 1]} : vector<16x64xf32> to vector<16x16xf32>
    %396 = math.tanh %395 : vector<16x16xf32>
    %397 = vector.extract_strided_slice %382 {offsets = [0, 48], sizes = [16, 16], strides = [1, 1]} : vector<16x64xf32> to vector<16x16xf32>
    %398 = arith.negf %397 : vector<16x16xf32>
    %399 = math.exp %398 : vector<16x16xf32>
    %cst_83 = arith.constant 1.000000e+00 : f32
    %400 = vector.broadcast %cst_83 : f32 to vector<16x16xf32>
    %401 = arith.addf %400, %399 : vector<16x16xf32>
    %402 = arith.divf %400, %401 : vector<16x16xf32>
    %403 = arith.mulf %394, %322 : vector<16x16xf32>
    %404 = arith.mulf %388, %396 : vector<16x16xf32>
    %405 = arith.addf %403, %404 : vector<16x16xf32>
    %406 = math.tanh %405 : vector<16x16xf32>
    %407 = arith.mulf %402, %406 : vector<16x16xf32>
    %cst_84 = arith.constant dense<0.000000e+00> : vector<16x64xf32>
    %408 = tpu.matmul %407, %5, %cst_84 {dimension_numbers = #tpu.dot_dimension_numbers<[1], [0], [0], [1], [0, 0, 1, 1], [], []>} : vector<16x16xf32>, vector<16x64xf32>, vector<16x64xf32> -> vector<16x64xf32>
    %cst_85 = arith.constant dense<0.000000e+00> : vector<16x64xf32>
    %409 = tpu.matmul %354, %6, %cst_85 {dimension_numbers = #tpu.dot_dimension_numbers<[1], [0], [0], [1], [0, 0, 1, 1], [], []>} : vector<16x16xf32>, vector<16x64xf32>, vector<16x64xf32> -> vector<16x64xf32>
    %410 = arith.addf %408, %409 : vector<16x64xf32>
    %411 = vector.broadcast %13 : vector<1x64xf32> to vector<16x64xf32>
    %412 = arith.addf %410, %411 : vector<16x64xf32>
    %413 = vector.extract_strided_slice %412 {offsets = [0, 0], sizes = [16, 16], strides = [1, 1]} : vector<16x64xf32> to vector<16x16xf32>
    %414 = arith.negf %413 : vector<16x16xf32>
    %415 = math.exp %414 : vector<16x16xf32>
    %cst_86 = arith.constant 1.000000e+00 : f32
    %416 = vector.broadcast %cst_86 : f32 to vector<16x16xf32>
    %417 = arith.addf %416, %415 : vector<16x16xf32>
    %418 = arith.divf %416, %417 : vector<16x16xf32>
    %419 = vector.extract_strided_slice %412 {offsets = [0, 16], sizes = [16, 16], strides = [1, 1]} : vector<16x64xf32> to vector<16x16xf32>
    %420 = arith.negf %419 : vector<16x16xf32>
    %421 = math.exp %420 : vector<16x16xf32>
    %cst_87 = arith.constant 1.000000e+00 : f32
    %422 = vector.broadcast %cst_87 : f32 to vector<16x16xf32>
    %423 = arith.addf %422, %421 : vector<16x16xf32>
    %424 = arith.divf %422, %423 : vector<16x16xf32>
    %425 = vector.extract_strided_slice %412 {offsets = [0, 32], sizes = [16, 16], strides = [1, 1]} : vector<16x64xf32> to vector<16x16xf32>
    %426 = math.tanh %425 : vector<16x16xf32>
    %427 = vector.extract_strided_slice %412 {offsets = [0, 48], sizes = [16, 16], strides = [1, 1]} : vector<16x64xf32> to vector<16x16xf32>
    %428 = arith.negf %427 : vector<16x16xf32>
    %429 = math.exp %428 : vector<16x16xf32>
    %cst_88 = arith.constant 1.000000e+00 : f32
    %430 = vector.broadcast %cst_88 : f32 to vector<16x16xf32>
    %431 = arith.addf %430, %429 : vector<16x16xf32>
    %432 = arith.divf %430, %431 : vector<16x16xf32>
    %433 = arith.mulf %424, %352 : vector<16x16xf32>
    %434 = arith.mulf %418, %426 : vector<16x16xf32>
    %435 = arith.addf %433, %434 : vector<16x16xf32>
    %436 = math.tanh %435 : vector<16x16xf32>
    %437 = arith.mulf %432, %436 : vector<16x16xf32>
    %cst_89 = arith.constant dense<0.000000e+00> : vector<16x16xf32>
    %438 = tpu.matmul %437, %9, %cst_89 {dimension_numbers = #tpu.dot_dimension_numbers<[1], [0], [0], [1], [0, 0, 1, 1], [], []>} : vector<16x16xf32>, vector<16x16xf32>, vector<16x16xf32> -> vector<16x16xf32>
    %439 = vector.broadcast %16 : vector<1x16xf32> to vector<16x16xf32>
    %440 = arith.addf %438, %439 : vector<16x16xf32>
    %cst_90 = arith.constant dense<0xFF800000> : vector<16xf32>
    %441 = vector.multi_reduction <maximumf>, %440, %cst_90 [1] : vector<16x16xf32> to vector<16xf32>
    %442 = vector.shape_cast %441 : vector<16xf32> to vector<16x1xf32>
    %443 = vector.broadcast %442 : vector<16x1xf32> to vector<16x16xf32>
    %444 = arith.subf %440, %443 : vector<16x16xf32>
    %445 = math.exp %444 : vector<16x16xf32>
    %cst_91 = arith.constant dense<0.000000e+00> : vector<16xf32>
    %446 = vector.multi_reduction <add>, %445, %cst_91 [1] : vector<16x16xf32> to vector<16xf32>
    %447 = vector.shape_cast %446 : vector<16xf32> to vector<16x1xf32>
    %448 = math.log %447 : vector<16x1xf32>
    %449 = vector.broadcast %448 : vector<16x1xf32> to vector<16x16xf32>
    %450 = arith.subf %444, %449 : vector<16x16xf32>
    %451 = vector.extract_strided_slice %450 {offsets = [0, 4], sizes = [16, 1], strides = [1, 1]} : vector<16x16xf32> to vector<16x1xf32>
    %452 = arith.addf %379, %451 : vector<16x1xf32>
    %c16_i32_92 = arith.constant 16 : i32
    %453 = vector.broadcast %c16_i32_92 : i32 to vector<16x1xi32>
    %454 = arith.cmpi slt, %293, %453 : vector<16x1xi32>
    %cst_93 = arith.constant -1.000000e+06 : f32
    %455 = vector.broadcast %cst_93 : f32 to vector<16x1xf32>
    %456 = arith.select %454, %452, %455 : vector<16x1xi1>, vector<16x1xf32>
    %457 = vector.extract_strided_slice %19 {offsets = [16, 0], sizes = [16, 1], strides = [1, 1]} : vector<64x1xi32> to vector<16x1xi32>
    %458 = vector.broadcast %457 : vector<16x1xi32> to vector<16x16xi32>
    %459 = arith.cmpi eq, %294, %458 : vector<16x16xi32>
    %cst_94 = arith.constant 0.000000e+00 : f32
    %460 = vector.broadcast %cst_94 : f32 to vector<16x16xf32>
    %461 = arith.select %459, %450, %460 : vector<16x16xi1>, vector<16x16xf32>
    %cst_95 = arith.constant dense<0.000000e+00> : vector<16xf32>
    %462 = vector.multi_reduction <add>, %461, %cst_95 [1] : vector<16x16xf32> to vector<16xf32>
    %463 = vector.shape_cast %462 : vector<16xf32> to vector<16x1xf32>
    %c14_i32 = arith.constant 14 : i32
    %464 = vector.broadcast %c14_i32 : i32 to vector<16x1xi32>
    %465 = arith.cmpi slt, %293, %464 : vector<16x1xi32>
    %cst_96 = arith.constant 0.000000e+00 : f32
    %466 = vector.broadcast %cst_96 : f32 to vector<16x1xf32>
    %467 = arith.select %465, %463, %466 : vector<16x1xi1>, vector<16x1xf32>
    %468 = arith.addf %379, %467 : vector<16x1xf32>
    %469 = vector.extract_strided_slice %292 {offsets = [32, 0], sizes = [16, 64], strides = [1, 1]} : vector<80x64xf32> to vector<16x64xf32>
    %cst_97 = arith.constant dense<0.000000e+00> : vector<16x64xf32>
    %470 = tpu.matmul %407, %4, %cst_97 {dimension_numbers = #tpu.dot_dimension_numbers<[1], [0], [0], [1], [0, 0, 1, 1], [], []>} : vector<16x16xf32>, vector<16x64xf32>, vector<16x64xf32> -> vector<16x64xf32>
    %471 = arith.addf %469, %470 : vector<16x64xf32>
    %472 = vector.extract_strided_slice %471 {offsets = [0, 0], sizes = [16, 16], strides = [1, 1]} : vector<16x64xf32> to vector<16x16xf32>
    %473 = arith.negf %472 : vector<16x16xf32>
    %474 = math.exp %473 : vector<16x16xf32>
    %cst_98 = arith.constant 1.000000e+00 : f32
    %475 = vector.broadcast %cst_98 : f32 to vector<16x16xf32>
    %476 = arith.addf %475, %474 : vector<16x16xf32>
    %477 = arith.divf %475, %476 : vector<16x16xf32>
    %478 = vector.extract_strided_slice %471 {offsets = [0, 16], sizes = [16, 16], strides = [1, 1]} : vector<16x64xf32> to vector<16x16xf32>
    %479 = arith.negf %478 : vector<16x16xf32>
    %480 = math.exp %479 : vector<16x16xf32>
    %cst_99 = arith.constant 1.000000e+00 : f32
    %481 = vector.broadcast %cst_99 : f32 to vector<16x16xf32>
    %482 = arith.addf %481, %480 : vector<16x16xf32>
    %483 = arith.divf %481, %482 : vector<16x16xf32>
    %484 = vector.extract_strided_slice %471 {offsets = [0, 32], sizes = [16, 16], strides = [1, 1]} : vector<16x64xf32> to vector<16x16xf32>
    %485 = math.tanh %484 : vector<16x16xf32>
    %486 = vector.extract_strided_slice %471 {offsets = [0, 48], sizes = [16, 16], strides = [1, 1]} : vector<16x64xf32> to vector<16x16xf32>
    %487 = arith.negf %486 : vector<16x16xf32>
    %488 = math.exp %487 : vector<16x16xf32>
    %cst_100 = arith.constant 1.000000e+00 : f32
    %489 = vector.broadcast %cst_100 : f32 to vector<16x16xf32>
    %490 = arith.addf %489, %488 : vector<16x16xf32>
    %491 = arith.divf %489, %490 : vector<16x16xf32>
    %492 = arith.mulf %483, %405 : vector<16x16xf32>
    %493 = arith.mulf %477, %485 : vector<16x16xf32>
    %494 = arith.addf %492, %493 : vector<16x16xf32>
    %495 = math.tanh %494 : vector<16x16xf32>
    %496 = arith.mulf %491, %495 : vector<16x16xf32>
    %cst_101 = arith.constant dense<0.000000e+00> : vector<16x64xf32>
    %497 = tpu.matmul %496, %5, %cst_101 {dimension_numbers = #tpu.dot_dimension_numbers<[1], [0], [0], [1], [0, 0, 1, 1], [], []>} : vector<16x16xf32>, vector<16x64xf32>, vector<16x64xf32> -> vector<16x64xf32>
    %cst_102 = arith.constant dense<0.000000e+00> : vector<16x64xf32>
    %498 = tpu.matmul %437, %6, %cst_102 {dimension_numbers = #tpu.dot_dimension_numbers<[1], [0], [0], [1], [0, 0, 1, 1], [], []>} : vector<16x16xf32>, vector<16x64xf32>, vector<16x64xf32> -> vector<16x64xf32>
    %499 = arith.addf %497, %498 : vector<16x64xf32>
    %500 = vector.broadcast %13 : vector<1x64xf32> to vector<16x64xf32>
    %501 = arith.addf %499, %500 : vector<16x64xf32>
    %502 = vector.extract_strided_slice %501 {offsets = [0, 0], sizes = [16, 16], strides = [1, 1]} : vector<16x64xf32> to vector<16x16xf32>
    %503 = arith.negf %502 : vector<16x16xf32>
    %504 = math.exp %503 : vector<16x16xf32>
    %cst_103 = arith.constant 1.000000e+00 : f32
    %505 = vector.broadcast %cst_103 : f32 to vector<16x16xf32>
    %506 = arith.addf %505, %504 : vector<16x16xf32>
    %507 = arith.divf %505, %506 : vector<16x16xf32>
    %508 = vector.extract_strided_slice %501 {offsets = [0, 16], sizes = [16, 16], strides = [1, 1]} : vector<16x64xf32> to vector<16x16xf32>
    %509 = arith.negf %508 : vector<16x16xf32>
    %510 = math.exp %509 : vector<16x16xf32>
    %cst_104 = arith.constant 1.000000e+00 : f32
    %511 = vector.broadcast %cst_104 : f32 to vector<16x16xf32>
    %512 = arith.addf %511, %510 : vector<16x16xf32>
    %513 = arith.divf %511, %512 : vector<16x16xf32>
    %514 = vector.extract_strided_slice %501 {offsets = [0, 32], sizes = [16, 16], strides = [1, 1]} : vector<16x64xf32> to vector<16x16xf32>
    %515 = math.tanh %514 : vector<16x16xf32>
    %516 = vector.extract_strided_slice %501 {offsets = [0, 48], sizes = [16, 16], strides = [1, 1]} : vector<16x64xf32> to vector<16x16xf32>
    %517 = arith.negf %516 : vector<16x16xf32>
    %518 = math.exp %517 : vector<16x16xf32>
    %cst_105 = arith.constant 1.000000e+00 : f32
    %519 = vector.broadcast %cst_105 : f32 to vector<16x16xf32>
    %520 = arith.addf %519, %518 : vector<16x16xf32>
    %521 = arith.divf %519, %520 : vector<16x16xf32>
    %522 = arith.mulf %513, %435 : vector<16x16xf32>
    %523 = arith.mulf %507, %515 : vector<16x16xf32>
    %524 = arith.addf %522, %523 : vector<16x16xf32>
    %525 = math.tanh %524 : vector<16x16xf32>
    %526 = arith.mulf %521, %525 : vector<16x16xf32>
    %cst_106 = arith.constant dense<0.000000e+00> : vector<16x16xf32>
    %527 = tpu.matmul %526, %9, %cst_106 {dimension_numbers = #tpu.dot_dimension_numbers<[1], [0], [0], [1], [0, 0, 1, 1], [], []>} : vector<16x16xf32>, vector<16x16xf32>, vector<16x16xf32> -> vector<16x16xf32>
    %528 = vector.broadcast %16 : vector<1x16xf32> to vector<16x16xf32>
    %529 = arith.addf %527, %528 : vector<16x16xf32>
    %cst_107 = arith.constant dense<0xFF800000> : vector<16xf32>
    %530 = vector.multi_reduction <maximumf>, %529, %cst_107 [1] : vector<16x16xf32> to vector<16xf32>
    %531 = vector.shape_cast %530 : vector<16xf32> to vector<16x1xf32>
    %532 = vector.broadcast %531 : vector<16x1xf32> to vector<16x16xf32>
    %533 = arith.subf %529, %532 : vector<16x16xf32>
    %534 = math.exp %533 : vector<16x16xf32>
    %cst_108 = arith.constant dense<0.000000e+00> : vector<16xf32>
    %535 = vector.multi_reduction <add>, %534, %cst_108 [1] : vector<16x16xf32> to vector<16xf32>
    %536 = vector.shape_cast %535 : vector<16xf32> to vector<16x1xf32>
    %537 = math.log %536 : vector<16x1xf32>
    %538 = vector.broadcast %537 : vector<16x1xf32> to vector<16x16xf32>
    %539 = arith.subf %533, %538 : vector<16x16xf32>
    %540 = vector.extract_strided_slice %539 {offsets = [0, 4], sizes = [16, 1], strides = [1, 1]} : vector<16x16xf32> to vector<16x1xf32>
    %541 = arith.addf %468, %540 : vector<16x1xf32>
    %c14_i32_109 = arith.constant 14 : i32
    %542 = vector.broadcast %c14_i32_109 : i32 to vector<16x1xi32>
    %543 = arith.cmpi slt, %293, %542 : vector<16x1xi32>
    %cst_110 = arith.constant -1.000000e+06 : f32
    %544 = vector.broadcast %cst_110 : f32 to vector<16x1xf32>
    %545 = arith.select %543, %541, %544 : vector<16x1xi1>, vector<16x1xf32>
    %546 = vector.extract_strided_slice %19 {offsets = [32, 0], sizes = [16, 1], strides = [1, 1]} : vector<64x1xi32> to vector<16x1xi32>
    %547 = vector.broadcast %546 : vector<16x1xi32> to vector<16x16xi32>
    %548 = arith.cmpi eq, %294, %547 : vector<16x16xi32>
    %cst_111 = arith.constant 0.000000e+00 : f32
    %549 = vector.broadcast %cst_111 : f32 to vector<16x16xf32>
    %550 = arith.select %548, %539, %549 : vector<16x16xi1>, vector<16x16xf32>
    %cst_112 = arith.constant dense<0.000000e+00> : vector<16xf32>
    %551 = vector.multi_reduction <add>, %550, %cst_112 [1] : vector<16x16xf32> to vector<16xf32>
    %552 = vector.shape_cast %551 : vector<16xf32> to vector<16x1xf32>
    %c12_i32 = arith.constant 12 : i32
    %553 = vector.broadcast %c12_i32 : i32 to vector<16x1xi32>
    %554 = arith.cmpi slt, %293, %553 : vector<16x1xi32>
    %cst_113 = arith.constant 0.000000e+00 : f32
    %555 = vector.broadcast %cst_113 : f32 to vector<16x1xf32>
    %556 = arith.select %554, %552, %555 : vector<16x1xi1>, vector<16x1xf32>
    %557 = arith.addf %468, %556 : vector<16x1xf32>
    %558 = vector.extract_strided_slice %292 {offsets = [48, 0], sizes = [16, 64], strides = [1, 1]} : vector<80x64xf32> to vector<16x64xf32>
    %cst_114 = arith.constant dense<0.000000e+00> : vector<16x64xf32>
    %559 = tpu.matmul %496, %4, %cst_114 {dimension_numbers = #tpu.dot_dimension_numbers<[1], [0], [0], [1], [0, 0, 1, 1], [], []>} : vector<16x16xf32>, vector<16x64xf32>, vector<16x64xf32> -> vector<16x64xf32>
    %560 = arith.addf %558, %559 : vector<16x64xf32>
    %561 = vector.extract_strided_slice %560 {offsets = [0, 0], sizes = [16, 16], strides = [1, 1]} : vector<16x64xf32> to vector<16x16xf32>
    %562 = arith.negf %561 : vector<16x16xf32>
    %563 = math.exp %562 : vector<16x16xf32>
    %cst_115 = arith.constant 1.000000e+00 : f32
    %564 = vector.broadcast %cst_115 : f32 to vector<16x16xf32>
    %565 = arith.addf %564, %563 : vector<16x16xf32>
    %566 = arith.divf %564, %565 : vector<16x16xf32>
    %567 = vector.extract_strided_slice %560 {offsets = [0, 16], sizes = [16, 16], strides = [1, 1]} : vector<16x64xf32> to vector<16x16xf32>
    %568 = arith.negf %567 : vector<16x16xf32>
    %569 = math.exp %568 : vector<16x16xf32>
    %cst_116 = arith.constant 1.000000e+00 : f32
    %570 = vector.broadcast %cst_116 : f32 to vector<16x16xf32>
    %571 = arith.addf %570, %569 : vector<16x16xf32>
    %572 = arith.divf %570, %571 : vector<16x16xf32>
    %573 = vector.extract_strided_slice %560 {offsets = [0, 32], sizes = [16, 16], strides = [1, 1]} : vector<16x64xf32> to vector<16x16xf32>
    %574 = math.tanh %573 : vector<16x16xf32>
    %575 = vector.extract_strided_slice %560 {offsets = [0, 48], sizes = [16, 16], strides = [1, 1]} : vector<16x64xf32> to vector<16x16xf32>
    %576 = arith.negf %575 : vector<16x16xf32>
    %577 = math.exp %576 : vector<16x16xf32>
    %cst_117 = arith.constant 1.000000e+00 : f32
    %578 = vector.broadcast %cst_117 : f32 to vector<16x16xf32>
    %579 = arith.addf %578, %577 : vector<16x16xf32>
    %580 = arith.divf %578, %579 : vector<16x16xf32>
    %581 = arith.mulf %572, %494 : vector<16x16xf32>
    %582 = arith.mulf %566, %574 : vector<16x16xf32>
    %583 = arith.addf %581, %582 : vector<16x16xf32>
    %584 = math.tanh %583 : vector<16x16xf32>
    %585 = arith.mulf %580, %584 : vector<16x16xf32>
    %cst_118 = arith.constant dense<0.000000e+00> : vector<16x64xf32>
    %586 = tpu.matmul %585, %5, %cst_118 {dimension_numbers = #tpu.dot_dimension_numbers<[1], [0], [0], [1], [0, 0, 1, 1], [], []>} : vector<16x16xf32>, vector<16x64xf32>, vector<16x64xf32> -> vector<16x64xf32>
    %cst_119 = arith.constant dense<0.000000e+00> : vector<16x64xf32>
    %587 = tpu.matmul %526, %6, %cst_119 {dimension_numbers = #tpu.dot_dimension_numbers<[1], [0], [0], [1], [0, 0, 1, 1], [], []>} : vector<16x16xf32>, vector<16x64xf32>, vector<16x64xf32> -> vector<16x64xf32>
    %588 = arith.addf %586, %587 : vector<16x64xf32>
    %589 = vector.broadcast %13 : vector<1x64xf32> to vector<16x64xf32>
    %590 = arith.addf %588, %589 : vector<16x64xf32>
    %591 = vector.extract_strided_slice %590 {offsets = [0, 0], sizes = [16, 16], strides = [1, 1]} : vector<16x64xf32> to vector<16x16xf32>
    %592 = arith.negf %591 : vector<16x16xf32>
    %593 = math.exp %592 : vector<16x16xf32>
    %cst_120 = arith.constant 1.000000e+00 : f32
    %594 = vector.broadcast %cst_120 : f32 to vector<16x16xf32>
    %595 = arith.addf %594, %593 : vector<16x16xf32>
    %596 = arith.divf %594, %595 : vector<16x16xf32>
    %597 = vector.extract_strided_slice %590 {offsets = [0, 16], sizes = [16, 16], strides = [1, 1]} : vector<16x64xf32> to vector<16x16xf32>
    %598 = arith.negf %597 : vector<16x16xf32>
    %599 = math.exp %598 : vector<16x16xf32>
    %cst_121 = arith.constant 1.000000e+00 : f32
    %600 = vector.broadcast %cst_121 : f32 to vector<16x16xf32>
    %601 = arith.addf %600, %599 : vector<16x16xf32>
    %602 = arith.divf %600, %601 : vector<16x16xf32>
    %603 = vector.extract_strided_slice %590 {offsets = [0, 32], sizes = [16, 16], strides = [1, 1]} : vector<16x64xf32> to vector<16x16xf32>
    %604 = math.tanh %603 : vector<16x16xf32>
    %605 = vector.extract_strided_slice %590 {offsets = [0, 48], sizes = [16, 16], strides = [1, 1]} : vector<16x64xf32> to vector<16x16xf32>
    %606 = arith.negf %605 : vector<16x16xf32>
    %607 = math.exp %606 : vector<16x16xf32>
    %cst_122 = arith.constant 1.000000e+00 : f32
    %608 = vector.broadcast %cst_122 : f32 to vector<16x16xf32>
    %609 = arith.addf %608, %607 : vector<16x16xf32>
    %610 = arith.divf %608, %609 : vector<16x16xf32>
    %611 = arith.mulf %602, %524 : vector<16x16xf32>
    %612 = arith.mulf %596, %604 : vector<16x16xf32>
    %613 = arith.addf %611, %612 : vector<16x16xf32>
    %614 = math.tanh %613 : vector<16x16xf32>
    %615 = arith.mulf %610, %614 : vector<16x16xf32>
    %cst_123 = arith.constant dense<0.000000e+00> : vector<16x16xf32>
    %616 = tpu.matmul %615, %9, %cst_123 {dimension_numbers = #tpu.dot_dimension_numbers<[1], [0], [0], [1], [0, 0, 1, 1], [], []>} : vector<16x16xf32>, vector<16x16xf32>, vector<16x16xf32> -> vector<16x16xf32>
    %617 = vector.broadcast %16 : vector<1x16xf32> to vector<16x16xf32>
    %618 = arith.addf %616, %617 : vector<16x16xf32>
    %cst_124 = arith.constant dense<0xFF800000> : vector<16xf32>
    %619 = vector.multi_reduction <maximumf>, %618, %cst_124 [1] : vector<16x16xf32> to vector<16xf32>
    %620 = vector.shape_cast %619 : vector<16xf32> to vector<16x1xf32>
    %621 = vector.broadcast %620 : vector<16x1xf32> to vector<16x16xf32>
    %622 = arith.subf %618, %621 : vector<16x16xf32>
    %623 = math.exp %622 : vector<16x16xf32>
    %cst_125 = arith.constant dense<0.000000e+00> : vector<16xf32>
    %624 = vector.multi_reduction <add>, %623, %cst_125 [1] : vector<16x16xf32> to vector<16xf32>
    %625 = vector.shape_cast %624 : vector<16xf32> to vector<16x1xf32>
    %626 = math.log %625 : vector<16x1xf32>
    %627 = vector.broadcast %626 : vector<16x1xf32> to vector<16x16xf32>
    %628 = arith.subf %622, %627 : vector<16x16xf32>
    %629 = vector.extract_strided_slice %628 {offsets = [0, 4], sizes = [16, 1], strides = [1, 1]} : vector<16x16xf32> to vector<16x1xf32>
    %630 = arith.addf %557, %629 : vector<16x1xf32>
    %c12_i32_126 = arith.constant 12 : i32
    %631 = vector.broadcast %c12_i32_126 : i32 to vector<16x1xi32>
    %632 = arith.cmpi slt, %293, %631 : vector<16x1xi32>
    %cst_127 = arith.constant -1.000000e+06 : f32
    %633 = vector.broadcast %cst_127 : f32 to vector<16x1xf32>
    %634 = arith.select %632, %630, %633 : vector<16x1xi1>, vector<16x1xf32>
    %635 = vector.extract_strided_slice %19 {offsets = [48, 0], sizes = [16, 1], strides = [1, 1]} : vector<64x1xi32> to vector<16x1xi32>
    %636 = vector.broadcast %635 : vector<16x1xi32> to vector<16x16xi32>
    %637 = arith.cmpi eq, %294, %636 : vector<16x16xi32>
    %cst_128 = arith.constant 0.000000e+00 : f32
    %638 = vector.broadcast %cst_128 : f32 to vector<16x16xf32>
    %639 = arith.select %637, %628, %638 : vector<16x16xi1>, vector<16x16xf32>
    %cst_129 = arith.constant dense<0.000000e+00> : vector<16xf32>
    %640 = vector.multi_reduction <add>, %639, %cst_129 [1] : vector<16x16xf32> to vector<16xf32>
    %641 = vector.shape_cast %640 : vector<16xf32> to vector<16x1xf32>
    %c10_i32 = arith.constant 10 : i32
    %642 = vector.broadcast %c10_i32 : i32 to vector<16x1xi32>
    %643 = arith.cmpi slt, %293, %642 : vector<16x1xi32>
    %cst_130 = arith.constant 0.000000e+00 : f32
    %644 = vector.broadcast %cst_130 : f32 to vector<16x1xf32>
    %645 = arith.select %643, %641, %644 : vector<16x1xi1>, vector<16x1xf32>
    %646 = arith.addf %557, %645 : vector<16x1xf32>
    %647 = vector.extract_strided_slice %292 {offsets = [64, 0], sizes = [16, 64], strides = [1, 1]} : vector<80x64xf32> to vector<16x64xf32>
    %cst_131 = arith.constant dense<0.000000e+00> : vector<16x64xf32>
    %648 = tpu.matmul %585, %4, %cst_131 {dimension_numbers = #tpu.dot_dimension_numbers<[1], [0], [0], [1], [0, 0, 1, 1], [], []>} : vector<16x16xf32>, vector<16x64xf32>, vector<16x64xf32> -> vector<16x64xf32>
    %649 = arith.addf %647, %648 : vector<16x64xf32>
    %650 = vector.extract_strided_slice %649 {offsets = [0, 0], sizes = [16, 16], strides = [1, 1]} : vector<16x64xf32> to vector<16x16xf32>
    %651 = arith.negf %650 : vector<16x16xf32>
    %652 = math.exp %651 : vector<16x16xf32>
    %cst_132 = arith.constant 1.000000e+00 : f32
    %653 = vector.broadcast %cst_132 : f32 to vector<16x16xf32>
    %654 = arith.addf %653, %652 : vector<16x16xf32>
    %655 = arith.divf %653, %654 : vector<16x16xf32>
    %656 = vector.extract_strided_slice %649 {offsets = [0, 16], sizes = [16, 16], strides = [1, 1]} : vector<16x64xf32> to vector<16x16xf32>
    %657 = arith.negf %656 : vector<16x16xf32>
    %658 = math.exp %657 : vector<16x16xf32>
    %cst_133 = arith.constant 1.000000e+00 : f32
    %659 = vector.broadcast %cst_133 : f32 to vector<16x16xf32>
    %660 = arith.addf %659, %658 : vector<16x16xf32>
    %661 = arith.divf %659, %660 : vector<16x16xf32>
    %662 = vector.extract_strided_slice %649 {offsets = [0, 32], sizes = [16, 16], strides = [1, 1]} : vector<16x64xf32> to vector<16x16xf32>
    %663 = math.tanh %662 : vector<16x16xf32>
    %664 = vector.extract_strided_slice %649 {offsets = [0, 48], sizes = [16, 16], strides = [1, 1]} : vector<16x64xf32> to vector<16x16xf32>
    %665 = arith.negf %664 : vector<16x16xf32>
    %666 = math.exp %665 : vector<16x16xf32>
    %cst_134 = arith.constant 1.000000e+00 : f32
    %667 = vector.broadcast %cst_134 : f32 to vector<16x16xf32>
    %668 = arith.addf %667, %666 : vector<16x16xf32>
    %669 = arith.divf %667, %668 : vector<16x16xf32>
    %670 = arith.mulf %661, %583 : vector<16x16xf32>
    %671 = arith.mulf %655, %663 : vector<16x16xf32>
    %672 = arith.addf %670, %671 : vector<16x16xf32>
    %673 = math.tanh %672 : vector<16x16xf32>
    %674 = arith.mulf %669, %673 : vector<16x16xf32>
    %cst_135 = arith.constant dense<0.000000e+00> : vector<16x64xf32>
    %675 = tpu.matmul %674, %5, %cst_135 {dimension_numbers = #tpu.dot_dimension_numbers<[1], [0], [0], [1], [0, 0, 1, 1], [], []>} : vector<16x16xf32>, vector<16x64xf32>, vector<16x64xf32> -> vector<16x64xf32>
    %cst_136 = arith.constant dense<0.000000e+00> : vector<16x64xf32>
    %676 = tpu.matmul %615, %6, %cst_136 {dimension_numbers = #tpu.dot_dimension_numbers<[1], [0], [0], [1], [0, 0, 1, 1], [], []>} : vector<16x16xf32>, vector<16x64xf32>, vector<16x64xf32> -> vector<16x64xf32>
    %677 = arith.addf %675, %676 : vector<16x64xf32>
    %678 = vector.broadcast %13 : vector<1x64xf32> to vector<16x64xf32>
    %679 = arith.addf %677, %678 : vector<16x64xf32>
    %680 = vector.extract_strided_slice %679 {offsets = [0, 0], sizes = [16, 16], strides = [1, 1]} : vector<16x64xf32> to vector<16x16xf32>
    %681 = arith.negf %680 : vector<16x16xf32>
    %682 = math.exp %681 : vector<16x16xf32>
    %cst_137 = arith.constant 1.000000e+00 : f32
    %683 = vector.broadcast %cst_137 : f32 to vector<16x16xf32>
    %684 = arith.addf %683, %682 : vector<16x16xf32>
    %685 = arith.divf %683, %684 : vector<16x16xf32>
    %686 = vector.extract_strided_slice %679 {offsets = [0, 16], sizes = [16, 16], strides = [1, 1]} : vector<16x64xf32> to vector<16x16xf32>
    %687 = arith.negf %686 : vector<16x16xf32>
    %688 = math.exp %687 : vector<16x16xf32>
    %cst_138 = arith.constant 1.000000e+00 : f32
    %689 = vector.broadcast %cst_138 : f32 to vector<16x16xf32>
    %690 = arith.addf %689, %688 : vector<16x16xf32>
    %691 = arith.divf %689, %690 : vector<16x16xf32>
    %692 = vector.extract_strided_slice %679 {offsets = [0, 32], sizes = [16, 16], strides = [1, 1]} : vector<16x64xf32> to vector<16x16xf32>
    %693 = math.tanh %692 : vector<16x16xf32>
    %694 = vector.extract_strided_slice %679 {offsets = [0, 48], sizes = [16, 16], strides = [1, 1]} : vector<16x64xf32> to vector<16x16xf32>
    %695 = arith.negf %694 : vector<16x16xf32>
    %696 = math.exp %695 : vector<16x16xf32>
    %cst_139 = arith.constant 1.000000e+00 : f32
    %697 = vector.broadcast %cst_139 : f32 to vector<16x16xf32>
    %698 = arith.addf %697, %696 : vector<16x16xf32>
    %699 = arith.divf %697, %698 : vector<16x16xf32>
    %700 = arith.mulf %691, %613 : vector<16x16xf32>
    %701 = arith.mulf %685, %693 : vector<16x16xf32>
    %702 = arith.addf %700, %701 : vector<16x16xf32>
    %703 = math.tanh %702 : vector<16x16xf32>
    %704 = arith.mulf %699, %703 : vector<16x16xf32>
    %cst_140 = arith.constant dense<0.000000e+00> : vector<16x16xf32>
    %705 = tpu.matmul %704, %9, %cst_140 {dimension_numbers = #tpu.dot_dimension_numbers<[1], [0], [0], [1], [0, 0, 1, 1], [], []>} : vector<16x16xf32>, vector<16x16xf32>, vector<16x16xf32> -> vector<16x16xf32>
    %706 = vector.broadcast %16 : vector<1x16xf32> to vector<16x16xf32>
    %707 = arith.addf %705, %706 : vector<16x16xf32>
    %cst_141 = arith.constant dense<0xFF800000> : vector<16xf32>
    %708 = vector.multi_reduction <maximumf>, %707, %cst_141 [1] : vector<16x16xf32> to vector<16xf32>
    %709 = vector.shape_cast %708 : vector<16xf32> to vector<16x1xf32>
    %710 = vector.broadcast %709 : vector<16x1xf32> to vector<16x16xf32>
    %711 = arith.subf %707, %710 : vector<16x16xf32>
    %712 = math.exp %711 : vector<16x16xf32>
    %cst_142 = arith.constant dense<0.000000e+00> : vector<16xf32>
    %713 = vector.multi_reduction <add>, %712, %cst_142 [1] : vector<16x16xf32> to vector<16xf32>
    %714 = vector.shape_cast %713 : vector<16xf32> to vector<16x1xf32>
    %715 = math.log %714 : vector<16x1xf32>
    %716 = vector.broadcast %715 : vector<16x1xf32> to vector<16x16xf32>
    %717 = arith.subf %711, %716 : vector<16x16xf32>
    %718 = vector.extract_strided_slice %717 {offsets = [0, 4], sizes = [16, 1], strides = [1, 1]} : vector<16x16xf32> to vector<16x1xf32>
    %719 = arith.addf %646, %718 : vector<16x1xf32>
    %c10_i32_143 = arith.constant 10 : i32
    %720 = vector.broadcast %c10_i32_143 : i32 to vector<16x1xi32>
    %721 = arith.cmpi slt, %293, %720 : vector<16x1xi32>
    %cst_144 = arith.constant -1.000000e+06 : f32
    %722 = vector.broadcast %cst_144 : f32 to vector<16x1xf32>
    %723 = arith.select %721, %719, %722 : vector<16x1xi1>, vector<16x1xf32>
    %724 = tpu.concatenate %296, %456, %545, %634, %723 in 1 : vector<16x1xf32>, vector<16x1xf32>, vector<16x1xf32>, vector<16x1xf32>, vector<16x1xf32> -> vector<16x5xf32>
    %c0_145 = arith.constant 0 : index
    %c0_146 = arith.constant 0 : index
    %725 = vector.load %arg3[%c0_145, %c0_146] : memref<16x5xf32, #tpu.memory_space<vmem>>, vector<16x5xf32>
    tpu.vector_store %arg3[%c0_145, %c0_146], %724 {strides = array<i32>} : memref<16x5xf32, #tpu.memory_space<vmem>>, vector<16x5xf32>,
    %cst_147 = arith.constant 0.000000e+00 : f32
    %726 = vector.broadcast %cst_147 : f32 to vector<2x1xf32>
    %727 = vector.extract_strided_slice %456 {offsets = [0, 0], sizes = [2, 1], strides = [1, 1]} : vector<16x1xf32> to vector<2x1xf32>
    %728 = arith.addf %726, %727 : vector<2x1xf32>
    %729 = arith.subf %728, %728 : vector<2x1xf32>
    %730 = math.exp %729 : vector<2x1xf32>
    %731 = math.log %730 : vector<2x1xf32>
    %732 = arith.addf %728, %731 : vector<2x1xf32>
    %733 = vector.extract_strided_slice %545 {offsets = [0, 0], sizes = [2, 1], strides = [1, 1]} : vector<16x1xf32> to vector<2x1xf32>
    %734 = arith.addf %726, %733 : vector<2x1xf32>
    %735 = vector.extract_strided_slice %456 {offsets = [2, 0], sizes = [2, 1], strides = [1, 1]} : vector<16x1xf32> to vector<2x1xf32>
    %736 = arith.addf %732, %735 : vector<2x1xf32>
    %737 = arith.maximumf %734, %736 : vector<2x1xf32>
    %738 = arith.subf %734, %737 : vector<2x1xf32>
    %739 = math.exp %738 : vector<2x1xf32>
    %740 = arith.subf %736, %737 : vector<2x1xf32>
    %741 = math.exp %740 : vector<2x1xf32>
    %742 = arith.addf %739, %741 : vector<2x1xf32>
    %743 = math.log %742 : vector<2x1xf32>
    %744 = arith.addf %737, %743 : vector<2x1xf32>
    %745 = vector.extract_strided_slice %634 {offsets = [0, 0], sizes = [2, 1], strides = [1, 1]} : vector<16x1xf32> to vector<2x1xf32>
    %746 = arith.addf %726, %745 : vector<2x1xf32>
    %747 = vector.extract_strided_slice %545 {offsets = [2, 0], sizes = [2, 1], strides = [1, 1]} : vector<16x1xf32> to vector<2x1xf32>
    %748 = arith.addf %732, %747 : vector<2x1xf32>
    %749 = vector.extract_strided_slice %456 {offsets = [4, 0], sizes = [2, 1], strides = [1, 1]} : vector<16x1xf32> to vector<2x1xf32>
    %750 = arith.addf %744, %749 : vector<2x1xf32>
    %751 = arith.maximumf %746, %748 : vector<2x1xf32>
    %752 = arith.maximumf %751, %750 : vector<2x1xf32>
    %753 = arith.subf %746, %752 : vector<2x1xf32>
    %754 = math.exp %753 : vector<2x1xf32>
    %755 = arith.subf %748, %752 : vector<2x1xf32>
    %756 = math.exp %755 : vector<2x1xf32>
    %757 = arith.addf %754, %756 : vector<2x1xf32>
    %758 = arith.subf %750, %752 : vector<2x1xf32>
    %759 = math.exp %758 : vector<2x1xf32>
    %760 = arith.addf %757, %759 : vector<2x1xf32>
    %761 = math.log %760 : vector<2x1xf32>
    %762 = arith.addf %752, %761 : vector<2x1xf32>
    %763 = vector.extract_strided_slice %723 {offsets = [0, 0], sizes = [2, 1], strides = [1, 1]} : vector<16x1xf32> to vector<2x1xf32>
    %764 = arith.addf %726, %763 : vector<2x1xf32>
    %765 = vector.extract_strided_slice %634 {offsets = [2, 0], sizes = [2, 1], strides = [1, 1]} : vector<16x1xf32> to vector<2x1xf32>
    %766 = arith.addf %732, %765 : vector<2x1xf32>
    %767 = vector.extract_strided_slice %545 {offsets = [4, 0], sizes = [2, 1], strides = [1, 1]} : vector<16x1xf32> to vector<2x1xf32>
    %768 = arith.addf %744, %767 : vector<2x1xf32>
    %769 = vector.extract_strided_slice %456 {offsets = [6, 0], sizes = [2, 1], strides = [1, 1]} : vector<16x1xf32> to vector<2x1xf32>
    %770 = arith.addf %762, %769 : vector<2x1xf32>
    %771 = arith.maximumf %764, %766 : vector<2x1xf32>
    %772 = arith.maximumf %771, %768 : vector<2x1xf32>
    %773 = arith.maximumf %772, %770 : vector<2x1xf32>
    %774 = arith.subf %764, %773 : vector<2x1xf32>
    %775 = math.exp %774 : vector<2x1xf32>
    %776 = arith.subf %766, %773 : vector<2x1xf32>
    %777 = math.exp %776 : vector<2x1xf32>
    %778 = arith.addf %775, %777 : vector<2x1xf32>
    %779 = arith.subf %768, %773 : vector<2x1xf32>
    %780 = math.exp %779 : vector<2x1xf32>
    %781 = arith.addf %778, %780 : vector<2x1xf32>
    %782 = arith.subf %770, %773 : vector<2x1xf32>
    %783 = math.exp %782 : vector<2x1xf32>
    %784 = arith.addf %781, %783 : vector<2x1xf32>
    %785 = math.log %784 : vector<2x1xf32>
    %786 = arith.addf %773, %785 : vector<2x1xf32>
    %787 = vector.extract_strided_slice %723 {offsets = [2, 0], sizes = [2, 1], strides = [1, 1]} : vector<16x1xf32> to vector<2x1xf32>
    %788 = arith.addf %732, %787 : vector<2x1xf32>
    %789 = vector.extract_strided_slice %634 {offsets = [4, 0], sizes = [2, 1], strides = [1, 1]} : vector<16x1xf32> to vector<2x1xf32>
    %790 = arith.addf %744, %789 : vector<2x1xf32>
    %791 = vector.extract_strided_slice %545 {offsets = [6, 0], sizes = [2, 1], strides = [1, 1]} : vector<16x1xf32> to vector<2x1xf32>
    %792 = arith.addf %762, %791 : vector<2x1xf32>
    %793 = vector.extract_strided_slice %456 {offsets = [8, 0], sizes = [2, 1], strides = [1, 1]} : vector<16x1xf32> to vector<2x1xf32>
    %794 = arith.addf %786, %793 : vector<2x1xf32>
    %795 = arith.maximumf %788, %790 : vector<2x1xf32>
    %796 = arith.maximumf %795, %792 : vector<2x1xf32>
    %797 = arith.maximumf %796, %794 : vector<2x1xf32>
    %798 = arith.subf %788, %797 : vector<2x1xf32>
    %799 = math.exp %798 : vector<2x1xf32>
    %800 = arith.subf %790, %797 : vector<2x1xf32>
    %801 = math.exp %800 : vector<2x1xf32>
    %802 = arith.addf %799, %801 : vector<2x1xf32>
    %803 = arith.subf %792, %797 : vector<2x1xf32>
    %804 = math.exp %803 : vector<2x1xf32>
    %805 = arith.addf %802, %804 : vector<2x1xf32>
    %806 = arith.subf %794, %797 : vector<2x1xf32>
    %807 = math.exp %806 : vector<2x1xf32>
    %808 = arith.addf %805, %807 : vector<2x1xf32>
    %809 = math.log %808 : vector<2x1xf32>
    %810 = arith.addf %797, %809 : vector<2x1xf32>
    %811 = vector.extract_strided_slice %723 {offsets = [4, 0], sizes = [2, 1], strides = [1, 1]} : vector<16x1xf32> to vector<2x1xf32>
    %812 = arith.addf %744, %811 : vector<2x1xf32>
    %813 = vector.extract_strided_slice %634 {offsets = [6, 0], sizes = [2, 1], strides = [1, 1]} : vector<16x1xf32> to vector<2x1xf32>
    %814 = arith.addf %762, %813 : vector<2x1xf32>
    %815 = vector.extract_strided_slice %545 {offsets = [8, 0], sizes = [2, 1], strides = [1, 1]} : vector<16x1xf32> to vector<2x1xf32>
    %816 = arith.addf %786, %815 : vector<2x1xf32>
    %817 = vector.extract_strided_slice %456 {offsets = [10, 0], sizes = [2, 1], strides = [1, 1]} : vector<16x1xf32> to vector<2x1xf32>
    %818 = arith.addf %810, %817 : vector<2x1xf32>
    %819 = arith.maximumf %812, %814 : vector<2x1xf32>
    %820 = arith.maximumf %819, %816 : vector<2x1xf32>
    %821 = arith.maximumf %820, %818 : vector<2x1xf32>
    %822 = arith.subf %812, %821 : vector<2x1xf32>
    %823 = math.exp %822 : vector<2x1xf32>
    %824 = arith.subf %814, %821 : vector<2x1xf32>
    %825 = math.exp %824 : vector<2x1xf32>
    %826 = arith.addf %823, %825 : vector<2x1xf32>
    %827 = arith.subf %816, %821 : vector<2x1xf32>
    %828 = math.exp %827 : vector<2x1xf32>
    %829 = arith.addf %826, %828 : vector<2x1xf32>
    %830 = arith.subf %818, %821 : vector<2x1xf32>
    %831 = math.exp %830 : vector<2x1xf32>
    %832 = arith.addf %829, %831 : vector<2x1xf32>
    %833 = math.log %832 : vector<2x1xf32>
    %834 = arith.addf %821, %833 : vector<2x1xf32>
    %835 = vector.extract_strided_slice %723 {offsets = [6, 0], sizes = [2, 1], strides = [1, 1]} : vector<16x1xf32> to vector<2x1xf32>
    %836 = arith.addf %762, %835 : vector<2x1xf32>
    %837 = vector.extract_strided_slice %634 {offsets = [8, 0], sizes = [2, 1], strides = [1, 1]} : vector<16x1xf32> to vector<2x1xf32>
    %838 = arith.addf %786, %837 : vector<2x1xf32>
    %839 = vector.extract_strided_slice %545 {offsets = [10, 0], sizes = [2, 1], strides = [1, 1]} : vector<16x1xf32> to vector<2x1xf32>
    %840 = arith.addf %810, %839 : vector<2x1xf32>
    %841 = vector.extract_strided_slice %456 {offsets = [12, 0], sizes = [2, 1], strides = [1, 1]} : vector<16x1xf32> to vector<2x1xf32>
    %842 = arith.addf %834, %841 : vector<2x1xf32>
    %843 = arith.maximumf %836, %838 : vector<2x1xf32>
    %844 = arith.maximumf %843, %840 : vector<2x1xf32>
    %845 = arith.maximumf %844, %842 : vector<2x1xf32>
    %846 = arith.subf %836, %845 : vector<2x1xf32>
    %847 = math.exp %846 : vector<2x1xf32>
    %848 = arith.subf %838, %845 : vector<2x1xf32>
    %849 = math.exp %848 : vector<2x1xf32>
    %850 = arith.addf %847, %849 : vector<2x1xf32>
    %851 = arith.subf %840, %845 : vector<2x1xf32>
    %852 = math.exp %851 : vector<2x1xf32>
    %853 = arith.addf %850, %852 : vector<2x1xf32>
    %854 = arith.subf %842, %845 : vector<2x1xf32>
    %855 = math.exp %854 : vector<2x1xf32>
    %856 = arith.addf %853, %855 : vector<2x1xf32>
    %857 = math.log %856 : vector<2x1xf32>
    %858 = arith.addf %845, %857 : vector<2x1xf32>
    %859 = vector.extract_strided_slice %723 {offsets = [8, 0], sizes = [2, 1], strides = [1, 1]} : vector<16x1xf32> to vector<2x1xf32>
    %860 = arith.addf %786, %859 : vector<2x1xf32>
    %861 = vector.extract_strided_slice %634 {offsets = [10, 0], sizes = [2, 1], strides = [1, 1]} : vector<16x1xf32> to vector<2x1xf32>
    %862 = arith.addf %810, %861 : vector<2x1xf32>
    %863 = vector.extract_strided_slice %545 {offsets = [12, 0], sizes = [2, 1], strides = [1, 1]} : vector<16x1xf32> to vector<2x1xf32>
    %864 = arith.addf %834, %863 : vector<2x1xf32>
    %865 = vector.extract_strided_slice %456 {offsets = [14, 0], sizes = [2, 1], strides = [1, 1]} : vector<16x1xf32> to vector<2x1xf32>
    %866 = arith.addf %858, %865 : vector<2x1xf32>
    %867 = arith.maximumf %860, %862 : vector<2x1xf32>
    %868 = arith.maximumf %867, %864 : vector<2x1xf32>
    %869 = arith.maximumf %868, %866 : vector<2x1xf32>
    %870 = arith.subf %860, %869 : vector<2x1xf32>
    %871 = math.exp %870 : vector<2x1xf32>
    %872 = arith.subf %862, %869 : vector<2x1xf32>
    %873 = math.exp %872 : vector<2x1xf32>
    %874 = arith.addf %871, %873 : vector<2x1xf32>
    %875 = arith.subf %864, %869 : vector<2x1xf32>
    %876 = math.exp %875 : vector<2x1xf32>
    %877 = arith.addf %874, %876 : vector<2x1xf32>
    %878 = arith.subf %866, %869 : vector<2x1xf32>
    %879 = math.exp %878 : vector<2x1xf32>
    %880 = arith.addf %877, %879 : vector<2x1xf32>
    %881 = math.log %880 : vector<2x1xf32>
    %882 = arith.addf %869, %881 : vector<2x1xf32>
    %883 = tpu.concatenate %726, %732, %744, %762, %786, %810, %834, %858, %882 in 1 : vector<2x1xf32>, vector<2x1xf32>, vector<2x1xf32>, vector<2x1xf32>, vector<2x1xf32>, vector<2x1xf32>, vector<2x1xf32>, vector<2x1xf32>, vector<2x1xf32> -> vector<2x9xf32>
    %c0_148 = arith.constant 0 : index
    %c0_149 = arith.constant 0 : index
    %884 = vector.load %arg4[%c0_148, %c0_149] : memref<2x9xf32, #tpu.memory_space<vmem>>, vector<2x9xf32>
    tpu.vector_store %arg4[%c0_148, %c0_149], %883 {strides = array<i32>} : memref<2x9xf32, #tpu.memory_space<vmem>>, vector<2x9xf32>,
    return
  }
}

</mosaic_0001>

<bundles_post_ra>
// kernel: tpu_custom_call.1
= control target key start
LH: loop header
LB: loop body
LE: loop exit
PB: predicated region body
PF: predicated region fallthrough
CT: control target
= control target key end

     0   :  { %vm55_vm0 = vcmask 1041408   ;;  %vm62_vm1 = vcmask 130048   ;;  %s4016_s0 = inlined_call_operand.vmem [shape: f32[64,16], index: 0, kind: input, shape index: {}]   ;;  %s4017_s1 = inlined_call_operand.vmem [shape: s32[64,1], index: 1, kind: input, shape index: {}]   ;;  %s4018_s2 = inlined_call_operand.vmem [shape: f32[152,64], index: 2, kind: input, shape index: {}]   ;;  %s4019_s3 = inlined_call_operand.vmem [shape: f32[16,5], index: 3, kind: output, shape index: {0}]   ;;  %s4020_s4 = inlined_call_operand.hbm [shape: f32[2,9], index: 4, kind: output, shape index: {1}]  }
   0x1   :  { %v18_v0 = vld [vmem:[%s4018_s2 + $0x8] sm:$0xff]  ;;  %v17_v1 = vld [vmem:[%s4018_s2] sm:$0xff]  ;;  %v20_v5 = vld [vmem:[%s4018_s2 + $0x18] sm:$0xff] }
   0x2   :  { %v3215_v2 = vld [vmem:[%s4016_s0] sm:$0xff]  ;;  %2780 = vmatpush.msra.mxu1 %v18_v0  ;;  %v3220_v3 = vld [vmem:[%s4016_s0 + $0x8] sm:$0xff]  ;;  %82 = vmatpush.msra.mxu0 %v18_v0  ;;  %v3230_v7 = vld [vmem:[%s4018_s2 + $0x90] sm:$0xff] }
   0x3   :  { %v56_v4 = vrot.slane %v3215_v2, 6  ;;  %v57_v6 = vrot.slane %v3220_v3, 6  ;;  %178 = vmatpush.msra.mxu2 %v20_v5  ;;  %255 = vmatpush.msra.mxu3 %v20_v5 }
   0x4   :  { %10 = vsyncpa [#allocation4], 0  ;;  %2781 = vmatpush.msra.mxu1 %v17_v1  ;;  %v19_v8 = vld [vmem:[%s4018_s2 + $0x10] sm:$0xff]  ;;  %83 = vmatpush.msra.mxu0 %v17_v1  ;;  %v52_v9 = vperm.slane %v3230_v7, 6  ;;  %v3166_v12 = vmov 0.0   ;;  %v61_v13 = vperm.slane %v3230_v7, 0 }
   0x5   :  { %v58_v10 = vsel %vm55_vm0, %v56_v4, %v57_v6  ;;  %179 = vmatpush.msra.mxu2 %v19_v8  ;;  %256 = vmatpush.msra.mxu3 %v19_v8  ;;  %s3167_s29 = smov 96   ;;  %s3168_s30 = smov 16  }
   0x6   :  { %108 = vmatpush.msrb.mxu1 %v20_v5  ;;  %v60_v11 = vsel %vm55_vm0, %v52_v9, %v56_v4  ;;  %557 = vmatpush.msrb.mxu0 %v20_v5  ;;  %s3169_s5 = smov 32   ;;  %s3170_s6 = smov 80  }
   0x7   :  { %2690 = vmatmul.msk.f32.vlgmr.msra.gmra.mxu1 %vm62_vm1, %v58_v10  ;;  %2689 = vmatmul.msk.f32.vlgmr.msra.gmra.mxu0 %vm62_vm1, %v60_v11  ;;  %s3171_s23 = smov 112   ;;  %s3174_s22 = smov 127  }
   0x8   :  { %109 = vmatpush.msrb.mxu1 %v19_v8  ;;  %409 = vmatpush.msrb.mxu2 %v20_v5  ;;  %s3176_s24 = smov 1   ;;  %s3177_s25 = smov 2  }
   0x9   :  { %481 = vmatpush.msrb.mxu3 %v20_v5  ;;  %558 = vmatpush.msrb.mxu0 %v19_v8  ;;  %s3178_s28 = smov 3   ;;  %s3179_s7 = smov 4  }
   0xa   :  { %332 = vmatpush.msra.mxu1 %v20_v5  ;;  %410 = vmatpush.msrb.mxu2 %v19_v8 }
   0xb   :  { %482 = vmatpush.msrb.mxu3 %v19_v8 }
   0xc   :  { %333 = vmatpush.msra.mxu1 %v19_v8 }
   0xf   :  { %110 = vmatmul.f32.vlgmr.msrb.gmra.mxu1 %v3166_v12 }
  0x10   :  { %633 = vmatpush.msrb.mxu1 %v20_v5 }
  0x12   :  { %634 = vmatpush.msrb.mxu1 %v19_v8 }
  0x84   :  { %v88_v14 = vpop.f32.mrf.mxu1  ;;  %v85_v16 = vpop.f32.mrf.mxu0 }
  0x85   :  { %v3241_v15 = vadd.f32 %v88_v14, %v61_v13  ;;  %v3243_v17 = vadd.f32 %v85_v16, %v61_v13 }
  0x8c   :  { %v111_v18 = vpop.f32.mrf.mxu1 }
  0x8d   :  { %v114_v19 = vadd.f32 %v111_v18, %v3243_v17 }
  0x8f   :  { %2800 = vtanh.f32 %v114_v19  ;;  %v2691_v21 = vmul.f32 -1.442695, %v114_v19 }
  0x91   :  { %2802 = vpow2.f32 %v2691_v21 }
  0x95   :  { %v2801_v20 = vpop.eup %2800 }
  0x96   :  { %137 = vrot.lane.b32.xlu0 %v2801_v20, %s3167_s29 }
  0x97   :  { %v2803_v22 = vpop.eup %2802 }
  0x98   :  { %v118_v23 = vadd.f32 1.0, %v2803_v22 }
  0x9a   :  { %2804 = vrcp.f32 %v118_v23  ;;  %v130_v29 = vand.u32 2147483648, %v118_v23  ;;  %vm124_vm3 = vweird.f32 %v118_v23  ;;  %v128_v30 = vand.u32 2147483647, %v118_v23 }
  0x9c   :  { %v131_v32 = vor.u32 1.1754944e-38, %v130_v29  ;;  %vm129_vm5 = vcmp.eq.f32.partialorder %v128_v30, 8.507059e+37 }
  0xa0   :  { %v2805_v24 = vpop.eup %2804 }
  0xa1   :  { %v120_v25 = vmul.f32 %v2805_v24, %v118_v23  ;;  %vm125_vm2 = vweird.f32 %v2805_v24 }
  0xa2   :  { %vm126_vm4 = vmor %vm124_vm3, %vm125_vm2 }
  0xa3   :  { %v121_v26 = vsub.f32 1.0, %v120_v25 }
  0xa5   :  { %v122_v27 = vmul.f32 %v2805_v24, %v121_v26 }
  0xa7   :  { %v123_v28 = vadd.f32 %v2805_v24, %v122_v27 }
  0xa9   :  { %v127_v31 = vsel %vm126_vm4, %v2805_v24, %v123_v28 }
  0xaa   :  { %v132_v34 = vsel %vm129_vm5, %v131_v32, %v127_v31 }
  0xab   :  { %v135_v36 = vmul.f32 0.0, %v132_v34 }
 0x108   :  { %v138_v33 = vpop.permute.xlu0 %137 }
 0x109   :  { %v140_v35 = vmul.f32 %v138_v33, %v132_v34 }
 0x10b   :  { %142 = vrot.lane.b32.xlu0 %v140_v35, %s3168_s30 }
 0x17d   :  { %v143_v37 = vpop.permute.xlu0 %142 }
 0x17e   :  { %v145_v38 = vadd.f32 %v143_v37, %v135_v36 }
 0x180   :  { %2806 = vtanh.f32 %v145_v38  ;;  %v209_v62 = vrot.slane %v145_v38, 6 }
 0x186   :  { %v2807_v39 = vpop.eup %2806 }
 0x187   :  { %148 = vrot.lane.b32.xlu1 %v2807_v39, %s3169_s5 }
 0x1f9   :  { %v149_v40 = vpop.permute.xlu1 %148 }
 0x1fa   :  { %v3249_v41 = vmul.f32 %v149_v40, %v132_v34 }
 0x1fc   :  { %160 = vrot.lane.b32.xlu1 %v3249_v41, %s3170_s6 }
 0x26e   :  { %v161_v42 = vpop.permute.xlu1 %160 }
 0x26f   :  { %2692 = vmatmul.msk.f32.vlgmr.msra.gmra.mxu2 %vm62_vm1, %v161_v42 }
 0x2f2   :  { %v181_v43 = vpop.f32.mrf.mxu2 }
 0x2f3   :  { %v185_v44 = vrot.slane %v181_v43, 6 }
 0x2f5   :  { %v187_v45 = vadd.f32 %v185_v44, %v3243_v17 }
 0x2f7   :  { %2808 = vtanh.f32 %v187_v45  ;;  %v2693_v47 = vmul.f32 -1.442695, %v187_v45 }
 0x2f9   :  { %2810 = vpow2.f32 %v2693_v47 }
 0x2fd   :  { %v2809_v46 = vpop.eup %2808 }
 0x2fe   :  { %213 = vrot.lane.b32.xlu2 %v2809_v46, %s3167_s29 }
 0x2ff   :  { %v2811_v48 = vpop.eup %2810 }
 0x300   :  { %v191_v49 = vadd.f32 1.0, %v2811_v48 }
 0x302   :  { %2812 = vrcp.f32 %v191_v49  ;;  %v203_v55 = vand.u32 2147483648, %v191_v49  ;;  %vm197_vm7 = vweird.f32 %v191_v49  ;;  %v201_v56 = vand.u32 2147483647, %v191_v49 }
 0x304   :  { %v204_v58 = vor.u32 1.1754944e-38, %v203_v55  ;;  %vm202_vm9 = vcmp.eq.f32.partialorder %v201_v56, 8.507059e+37 }
 0x308   :  { %v2813_v50 = vpop.eup %2812 }
 0x309   :  { %v193_v51 = vmul.f32 %v2813_v50, %v191_v49  ;;  %vm198_vm6 = vweird.f32 %v2813_v50 }
 0x30a   :  { %vm199_vm8 = vmor %vm197_vm7, %vm198_vm6 }
 0x30b   :  { %v194_v52 = vsub.f32 1.0, %v193_v51 }
 0x30d   :  { %v195_v53 = vmul.f32 %v2813_v50, %v194_v52 }
 0x30f   :  { %v196_v54 = vadd.f32 %v2813_v50, %v195_v53 }
 0x311   :  { %v200_v57 = vsel %vm199_vm8, %v2813_v50, %v196_v54 }
 0x312   :  { %v205_v60 = vsel %vm202_vm9, %v204_v58, %v200_v57 }
 0x313   :  { %v211_v63 = vmul.f32 %v209_v62, %v205_v60 }
 0x358   :  { %v214_v59 = vpop.permute.xlu2 %213 }
 0x359   :  { %v216_v61 = vmul.f32 %v214_v59, %v205_v60 }
 0x35b   :  { %218 = vrot.lane.b32.xlu2 %v216_v61, %s3168_s30 }
 0x3b5   :  { %v219_v0 = vpop.permute.xlu2 %218 }
 0x3b6   :  { %v221_v1 = vadd.f32 %v219_v0, %v211_v63 }
 0x3b8   :  { %2814 = vtanh.f32 %v221_v1  ;;  %v286_v31 = vrot.slane %v221_v1, 6 }
 0x3be   :  { %v2815_v4 = vpop.eup %2814 }
 0x3bf   :  { %224 = vrot.lane.b32.xlu0 %v2815_v4, %s3169_s5 }
 0x431   :  { %v225_v5 = vpop.permute.xlu0 %224 }
 0x432   :  { %v3258_v6 = vmul.f32 %v225_v5, %v205_v60 }
 0x434   :  { %v236_v8 = vrot.slane %v3258_v6, 2 }
 0x436   :  { %237 = vrot.lane.b32.xlu1 %v236_v8, %s3170_s6 }
 0x4a8   :  { %v238_v9 = vpop.permute.xlu1 %237 }
 0x4a9   :  { %2694 = vmatmul.msk.f32.vlgmr.msra.gmra.mxu3 %vm62_vm1, %v238_v9 }
 0x52c   :  { %v258_v10 = vpop.f32.mrf.mxu3 }
 0x52d   :  { %v262_v11 = vrot.slane %v258_v10, 4 }
 0x52f   :  { %v264_v12 = vadd.f32 %v262_v11, %v3243_v17 }
 0x531   :  { %2816 = vtanh.f32 %v264_v12  ;;  %v2695_v14 = vmul.f32 -1.442695, %v264_v12 }
 0x533   :  { %2818 = vpow2.f32 %v2695_v14 }
 0x537   :  { %v2817_v13 = vpop.eup %2816 }
 0x538   :  { %290 = vrot.lane.b32.xlu2 %v2817_v13, %s3167_s29 }
 0x539   :  { %v2819_v16 = vpop.eup %2818 }
 0x53a   :  { %v268_v18 = vadd.f32 1.0, %v2819_v16 }
 0x53c   :  { %2820 = vrcp.f32 %v268_v18  ;;  %v280_v24 = vand.u32 2147483648, %v268_v18  ;;  %vm274_vm11 = vweird.f32 %v268_v18  ;;  %v278_v25 = vand.u32 2147483647, %v268_v18 }
 0x53e   :  { %v281_v27 = vor.u32 1.1754944e-38, %v280_v24  ;;  %vm279_vm13 = vcmp.eq.f32.partialorder %v278_v25, 8.507059e+37 }
 0x542   :  { %v2821_v19 = vpop.eup %2820 }
 0x543   :  { %v270_v20 = vmul.f32 %v2821_v19, %v268_v18  ;;  %vm275_vm10 = vweird.f32 %v2821_v19 }
 0x544   :  { %vm276_vm12 = vmor %vm274_vm11, %vm275_vm10 }
 0x545   :  { %v271_v21 = vsub.f32 1.0, %v270_v20 }
 0x547   :  { %v272_v22 = vmul.f32 %v2821_v19, %v271_v21 }
 0x549   :  { %v273_v23 = vadd.f32 %v2821_v19, %v272_v22 }
 0x54b   :  { %v277_v26 = vsel %vm276_vm12, %v2821_v19, %v273_v23 }
 0x54c   :  { %v282_v29 = vsel %vm279_vm13, %v281_v27, %v277_v26 }
 0x54d   :  { %v288_v32 = vmul.f32 %v286_v31, %v282_v29 }
 0x592   :  { %v291_v28 = vpop.permute.xlu2 %290 }
 0x593   :  { %v293_v30 = vmul.f32 %v291_v28, %v282_v29 }
 0x595   :  { %295 = vrot.lane.b32.xlu0 %v293_v30, %s3168_s30 }
 0x607   :  { %v296_v33 = vpop.permute.xlu0 %295 }
 0x608   :  { %v298_v34 = vadd.f32 %v296_v33, %v288_v32 }
 0x60a   :  { %2822 = vtanh.f32 %v298_v34  ;;  %v363_v59 = vrot.slane %v298_v34, 6 }
 0x610   :  { %v2823_v35 = vpop.eup %2822 }
 0x611   :  { %301 = vrot.lane.b32.xlu1 %v2823_v35, %s3169_s5 }
 0x683   :  { %v302_v36 = vpop.permute.xlu1 %301 }
 0x684   :  { %v3267_v37 = vmul.f32 %v302_v36, %v282_v29 }
 0x686   :  { %v313_v38 = vrot.slane %v3267_v37, 4 }
 0x688   :  { %314 = vrot.lane.b32.xlu2 %v313_v38, %s3170_s6 }
 0x6e2   :  { %v315_v39 = vpop.permute.xlu2 %314 }
 0x6e3   :  { %2696 = vmatmul.msk.f32.vlgmr.msra.gmra.mxu1 %vm62_vm1, %v315_v39 }
 0x760   :  { %v335_v40 = vpop.f32.mrf.mxu1 }
 0x761   :  { %v339_v42 = vrot.slane %v335_v40, 2 }
 0x763   :  { %v341_v43 = vadd.f32 %v339_v42, %v3243_v17 }
 0x765   :  { %2824 = vtanh.f32 %v341_v43  ;;  %v2697_v45 = vmul.f32 -1.442695, %v341_v43 }
 0x767   :  { %2826 = vpow2.f32 %v2697_v45 }
 0x76b   :  { %v2825_v44 = vpop.eup %2824 }
 0x76c   :  { %367 = vrot.lane.b32.xlu0 %v2825_v44, %s3167_s29 }
 0x76d   :  { %v2827_v46 = vpop.eup %2826 }
 0x76e   :  { %v345_v47 = vadd.f32 1.0, %v2827_v46 }
 0x770   :  { %2828 = vrcp.f32 %v345_v47  ;;  %v357_v53 = vand.u32 2147483648, %v345_v47  ;;  %vm351_vm15 = vweird.f32 %v345_v47  ;;  %v355_v54 = vand.u32 2147483647, %v345_v47 }
 0x772   :  { %v358_v55 = vor.u32 1.1754944e-38, %v357_v53  ;;  %vm356_vm2 = vcmp.eq.f32.partialorder %v355_v54, 8.507059e+37 }
 0x776   :  { %v2829_v48 = vpop.eup %2828 }
 0x777   :  { %v347_v49 = vmul.f32 %v2829_v48, %v345_v47  ;;  %vm352_vm14 = vweird.f32 %v2829_v48 }
 0x778   :  { %vm353_vm0 = vmor %vm351_vm15, %vm352_vm14 }
 0x779   :  { %v348_v50 = vsub.f32 1.0, %v347_v49 }
 0x77b   :  { %v349_v51 = vmul.f32 %v2829_v48, %v348_v50 }
 0x77d   :  { %v350_v52 = vadd.f32 %v2829_v48, %v349_v51 }
 0x77f   :  { %v354_v17 = vsel %vm353_vm0, %v2829_v48, %v350_v52 }
 0x780   :  { %v359_v57 = vsel %vm356_vm2, %v358_v55, %v354_v17 }
 0x781   :  { %v365_v60 = vmul.f32 %v363_v59, %v359_v57 }
 0x7de   :  { %v368_v56 = vpop.permute.xlu0 %367 }
 0x7df   :  { %v370_v58 = vmul.f32 %v368_v56, %v359_v57 }
 0x7e1   :  { %372 = vrot.lane.b32.xlu1 %v370_v58, %s3168_s30 }
 0x853   :  { %v373_v61 = vpop.permute.xlu1 %372 }
 0x854   :  { %v375_v62 = vadd.f32 %v373_v61, %v365_v60 }
 0x856   :  { %2830 = vtanh.f32 %v375_v62  ;;  %v437_v28 = vrot.slane %v375_v62, 6 }
 0x85c   :  { %v2831_v63 = vpop.eup %2830 }
 0x85d   :  { %378 = vrot.lane.b32.xlu2 %v2831_v63, %s3169_s5 }
 0x8b7   :  { %v379_v0 = vpop.permute.xlu2 %378 }
 0x8b8   :  { %v3276_v1 = vmul.f32 %v379_v0, %v359_v57 }
 0x8ba   :  { %v390_v4 = vrot.slane %v3276_v1, 6 }
 0x8bc   :  { %391 = vrot.lane.b32.xlu0 %v390_v4, %s3170_s6 }
 0x92e   :  { %v392_v5 = vpop.permute.xlu0 %391 }
 0x92f   :  { %2698 = vmatmul.msk.f32.vlgmr.msrb.gmra.mxu2 %vm62_vm1, %v392_v5 }
 0x9b2   :  { %v412_v8 = vpop.f32.mrf.mxu2 }
 0x9b3   :  { %v415_v9 = vadd.f32 %v412_v8, %v3241_v15 }
 0x9b5   :  { %2832 = vtanh.f32 %v415_v9  ;;  %v2699_v11 = vmul.f32 -1.442695, %v415_v9 }
 0x9b7   :  { %2834 = vpow2.f32 %v2699_v11 }
 0x9bb   :  { %v2833_v10 = vpop.eup %2832 }
 0x9bc   :  { %441 = vrot.lane.b32.xlu1 %v2833_v10, %s3167_s29 }
 0x9bd   :  { %v2835_v12 = vpop.eup %2834 }
 0x9be   :  { %v419_v13 = vadd.f32 1.0, %v2835_v12 }
 0x9c0   :  { %2836 = vrcp.f32 %v419_v13  ;;  %v431_v21 = vand.u32 2147483648, %v419_v13  ;;  %vm425_vm4 = vweird.f32 %v419_v13  ;;  %v429_v22 = vand.u32 2147483647, %v419_v13 }
 0x9c2   :  { %v432_v24 = vor.u32 1.1754944e-38, %v431_v21  ;;  %vm430_vm6 = vcmp.eq.f32.partialorder %v429_v22, 8.507059e+37 }
 0x9c6   :  { %v2837_v14 = vpop.eup %2836 }
 0x9c7   :  { %v421_v16 = vmul.f32 %v2837_v14, %v419_v13  ;;  %vm426_vm3 = vweird.f32 %v2837_v14 }
 0x9c8   :  { %vm427_vm5 = vmor %vm425_vm4, %vm426_vm3  ;;  %vm157_vm4 = vcmask 123904  }
 0x9c9   :  { %v422_v18 = vsub.f32 1.0, %v421_v16 }
 0x9cb   :  { %v423_v19 = vmul.f32 %v2837_v14, %v422_v18 }
 0x9cd   :  { %v424_v20 = vadd.f32 %v2837_v14, %v423_v19 }
 0x9cf   :  { %v428_v23 = vsel %vm427_vm5, %v2837_v14, %v424_v20  ;;  %vm387_vm5 = vcmask 130054  }
 0x9d0   :  { %v433_v26 = vsel %vm430_vm6, %v432_v24, %v428_v23  ;;  %vm310_vm6 = vcmask 128004  }
 0x9d1   :  { %v439_v29 = vmul.f32 %v437_v28, %v433_v26 }
 0xa2e   :  { %v442_v25 = vpop.permute.xlu1 %441 }
 0xa2f   :  { %v444_v27 = vmul.f32 %v442_v25, %v433_v26 }
 0xa31   :  { %446 = vrot.lane.b32.xlu2 %v444_v27, %s3168_s30 }
 0xa8b   :  { %v447_v30 = vpop.permute.xlu2 %446 }
 0xa8c   :  { %v449_v31 = vadd.f32 %v447_v30, %v439_v29 }
 0xa8e   :  { %2838 = vtanh.f32 %v449_v31  ;;  %v512_v56 = vrot.slane %v449_v31, 6 }
 0xa94   :  { %v2839_v32 = vpop.eup %2838 }
 0xa95   :  { %452 = vrot.lane.b32.xlu0 %v2839_v32, %s3169_s5 }
 0xb07   :  { %v453_v33 = vpop.permute.xlu0 %452 }
 0xb08   :  { %v3285_v34 = vmul.f32 %v453_v33, %v433_v26 }
 0xb0a   :  { %463 = vrot.lane.b32.xlu1 %v3285_v34, %s3170_s6 }
 0xb7c   :  { %v464_v35 = vpop.permute.xlu1 %463 }
 0xb7d   :  { %2700 = vmatmul.msk.f32.vlgmr.msrb.gmra.mxu3 %vm62_vm1, %v464_v35 }
 0xc00   :  { %v484_v36 = vpop.f32.mrf.mxu3 }
 0xc01   :  { %v488_v38 = vrot.slane %v484_v36, 6 }
 0xc03   :  { %v490_v39 = vadd.f32 %v488_v38, %v3241_v15 }
 0xc05   :  { %2840 = vtanh.f32 %v490_v39  ;;  %v2701_v42 = vmul.f32 -1.442695, %v490_v39 }
 0xc07   :  { %2842 = vpow2.f32 %v2701_v42 }
 0xc0b   :  { %v2841_v40 = vpop.eup %2840 }
 0xc0c   :  { %516 = vrot.lane.b32.xlu2 %v2841_v40, %s3167_s29 }
 0xc0d   :  { %v2843_v43 = vpop.eup %2842 }
 0xc0e   :  { %v494_v44 = vadd.f32 1.0, %v2843_v43  ;;  %v152_v43 = vmul.f32 0.1, %v3249_v41 }
 0xc10   :  { %2844 = vrcp.f32 %v494_v44  ;;  %v506_v50 = vand.u32 2147483648, %v494_v44  ;;  %vm500_vm8 = vweird.f32 %v494_v44  ;;  %v504_v51 = vand.u32 2147483647, %v494_v44 }
 0xc12   :  { %v507_v53 = vor.u32 1.1754944e-38, %v506_v50  ;;  %vm505_vm10 = vcmp.eq.f32.partialorder %v504_v51, 8.507059e+37 }
 0xc16   :  { %v2845_v45 = vpop.eup %2844 }
 0xc17   :  { %v496_v46 = vmul.f32 %v2845_v45, %v494_v44  ;;  %vm501_vm7 = vweird.f32 %v2845_v45  ;;  %v382_v44 = vmul.f32 0.1, %v3276_v1 }
 0xc18   :  { %vm502_vm9 = vmor %vm500_vm8, %vm501_vm7  ;;  %vm233_vm7 = vcmask 125954  }
 0xc19   :  { %v497_v47 = vsub.f32 1.0, %v496_v46 }
 0xc1b   :  { %v498_v48 = vmul.f32 %v2845_v45, %v497_v47 }
 0xc1d   :  { %v499_v49 = vadd.f32 %v2845_v45, %v498_v48 }
 0xc1f   :  { %v503_v52 = vsel %vm502_vm9, %v2845_v45, %v499_v49 }
 0xc20   :  { %v508_v17 = vsel %vm505_vm10, %v507_v53, %v503_v52 }
 0xc21   :  { %v514_v57 = vmul.f32 %v512_v56, %v508_v17 }
 0xc66   :  { %v517_v54 = vpop.permute.xlu2 %516 }
 0xc67   :  { %v519_v55 = vmul.f32 %v517_v54, %v508_v17 }
 0xc69   :  { %521 = vrot.lane.b32.xlu0 %v519_v55, %s3168_s30 }
 0xcdb   :  { %v522_v58 = vpop.permute.xlu0 %521 }
 0xcdc   :  { %v524_v59 = vadd.f32 %v522_v58, %v514_v57  ;;  %v228_v58 = vmul.f32 0.1, %v3258_v6 }
 0xcde   :  { %2846 = vtanh.f32 %v524_v59  ;;  %v588_v27 = vrot.slane %v524_v59, 6 }
 0xce4   :  { %v2847_v60 = vpop.eup %2846 }
 0xce5   :  { %527 = vrot.lane.b32.xlu1 %v2847_v60, %s3169_s5  ;;  %v456_v60 = vmul.f32 0.1, %v3285_v34  ;;  %v305_v34 = vmul.f32 0.1, %v3267_v37  ;;  %v29_v37 = vld [vmem:[%s4018_s2 + $0x60] sm:$0xff] }
 0xd57   :  { %v528_v61 = vpop.permute.xlu1 %527 }
 0xd58   :  { %v3294_v62 = vmul.f32 %v528_v61, %v508_v17 }
 0xd5a   :  { %v538_v63 = vrot.slane %v3294_v62, 2 }
 0xd5c   :  { %539 = vrot.lane.b32.xlu2 %v538_v63, %s3170_s6 }
 0xdb6   :  { %v540_v0 = vpop.permute.xlu2 %539 }
 0xdb7   :  { %2702 = vmatmul.msk.f32.vlgmr.msrb.gmra.mxu0 %vm62_vm1, %v540_v0 }
 0xe34   :  { %v560_v4 = vpop.f32.mrf.mxu0 }
 0xe35   :  { %v564_v5 = vrot.slane %v560_v4, 4 }
 0xe37   :  { %v566_v8 = vadd.f32 %v564_v5, %v3241_v15 }
 0xe39   :  { %2848 = vtanh.f32 %v566_v8  ;;  %v2703_v10 = vmul.f32 -1.442695, %v566_v8 }
 0xe3b   :  { %2850 = vpow2.f32 %v2703_v10  ;;  %v531_v10 = vmul.f32 0.1, %v3294_v62  ;;  %v31_v62 = vld [vmem:[%s4018_s2 + $0x70] sm:$0xff] }
 0xe3f   :  { %v2849_v9 = vpop.eup %2848 }
 0xe40   :  { %592 = vrot.lane.b32.xlu0 %v2849_v9, %s3167_s29 }
 0xe41   :  { %v2851_v11 = vpop.eup %2850 }
 0xe42   :  { %v570_v12 = vadd.f32 1.0, %v2851_v11  ;;  %v30_v11 = vld [vmem:[%s4018_s2 + $0x68] sm:$0xff] }
 0xe43   :  { %712 = vmatpush.msra.mxu2 %v30_v11 }
 0xe44   :  { %2852 = vrcp.f32 %v570_v12  ;;  %v582_v20 = vand.u32 2147483648, %v570_v12  ;;  %vm576_vm12 = vweird.f32 %v570_v12  ;;  %v580_v21 = vand.u32 2147483647, %v570_v12 }
 0xe45   :  { %713 = vmatpush.msra.mxu2 %v29_v37 }
 0xe46   :  { %v583_v23 = vor.u32 1.1754944e-38, %v582_v20  ;;  %vm581_vm14 = vcmp.eq.f32.partialorder %v580_v21, 8.507059e+37 }
 0xe4a   :  { %v2853_v13 = vpop.eup %2852 }
 0xe4b   :  { %v572_v14 = vmul.f32 %v2853_v13, %v570_v12  ;;  %vm577_vm11 = vweird.f32 %v2853_v13  ;;  %v32_v12 = vld [vmem:[%s4018_s2 + $0x78] sm:$0xff] }
 0xe4c   :  { %vm578_vm13 = vmor %vm576_vm12, %vm577_vm11  ;;  %736 = vmatpush.msra.mxu3 %v32_v12 }
 0xe4d   :  { %v573_v16 = vsub.f32 1.0, %v572_v14 }
 0xe4e   :  { %737 = vmatpush.msra.mxu3 %v31_v62 }
 0xe4f   :  { %v574_v18 = vmul.f32 %v2853_v13, %v573_v16 }
 0xe51   :  { %v575_v19 = vadd.f32 %v2853_v13, %v574_v18 }
 0xe53   :  { %v579_v22 = vsel %vm578_vm13, %v2853_v13, %v575_v19 }
 0xe54   :  { %v584_v25 = vsel %vm581_vm14, %v583_v23, %v579_v22  ;;  %v22_v23 = vld [vmem:[%s4018_s2 + $0x28] sm:$0xff] }
 0xe55   :  { %v590_v28 = vmul.f32 %v588_v27, %v584_v25  ;;  %790 = vmatpush.msra.mxu0 %v22_v23  ;;  %v691_v27 = vperm.slane %v3230_v7, 3 }
 0xeb2   :  { %v593_v24 = vpop.permute.xlu0 %592 }
 0xeb3   :  { %v595_v26 = vmul.f32 %v593_v24, %v584_v25  ;;  %v21_v24 = vld [vmem:[%s4018_s2 + $0x20] sm:$0xff] }
 0xeb4   :  { %791 = vmatpush.msra.mxu0 %v21_v24 }
 0xeb5   :  { %597 = vrot.lane.b32.xlu1 %v595_v26, %s3168_s30  ;;  %v3361_v26 = vld [vmem:[%s4018_s2 + $0x30] sm:$0xff] }
 0xf27   :  { %v598_v29 = vpop.permute.xlu1 %597 }
 0xf28   :  { %v600_v30 = vadd.f32 %v598_v29, %v590_v28  ;;  %v721_v28 = vperm.slane %v3230_v7, 4 }
 0xf2a   :  { %2854 = vtanh.f32 %v600_v30  ;;  %v664_v63 = vrot.slane %v600_v30, 6 }
 0xf30   :  { %v2855_v31 = vpop.eup %2854 }
 0xf31   :  { %603 = vrot.lane.b32.xlu2 %v2855_v31, %s3169_s5 }
 0xf8b   :  { %v604_v32 = vpop.permute.xlu2 %603 }
 0xf8c   :  { %v606_v33 = vmul.f32 %v604_v32, %v584_v25  ;;  %v3356_v25 = vld [vmem:[%s4018_s2 + $0x38] sm:$0xff] }
 0xf8d   :  { %848 = vmatpush.msra.mxu1 %v3356_v25 }
 0xf8e   :  { %v614_v35 = vrot.slane %v606_v33, 4  ;;  %v607_v45 = vmul.f32 0.1, %v606_v33 }
 0xf8f   :  { %849 = vmatpush.msra.mxu1 %v3361_v26 }
 0xf90   :  { %615 = vrot.lane.b32.xlu0 %v614_v35, %s3170_s6 }
0x1002   :  { %v616_v36 = vpop.permute.xlu0 %615 }
0x1003   :  { %2704 = vmatmul.msk.f32.vlgmr.msrb.gmra.mxu1 %vm62_vm1, %v616_v36 }
0x1080   :  { %v636_v38 = vpop.f32.mrf.mxu1 }
0x1081   :  { %v640_v39 = vrot.slane %v636_v38, 2 }
0x1083   :  { %v642_v40 = vadd.f32 %v640_v39, %v3241_v15 }
0x1085   :  { %2856 = vtanh.f32 %v642_v40  ;;  %v2705_v46 = vmul.f32 -1.442695, %v642_v40 }
0x1087   :  { %2858 = vpow2.f32 %v2705_v46 }
0x108b   :  { %v2857_v42 = vpop.eup %2856 }
0x108c   :  { %668 = vrot.lane.b32.xlu1 %v2857_v42, %s3167_s29  ;;  %v3382_v42 = vperm.slane %v3230_v7, 1 }
0x108d   :  { %v2859_v47 = vpop.eup %2858 }
0x108e   :  { %v646_v48 = vadd.f32 1.0, %v2859_v47 }
0x1090   :  { %2860 = vrcp.f32 %v646_v48  ;;  %v658_v41 = vand.u32 2147483648, %v646_v48  ;;  %vm652_vm0 = vweird.f32 %v646_v48  ;;  %v656_v53 = vand.u32 2147483647, %v646_v48 }
0x1092   :  { %v659_v54 = vor.u32 1.1754944e-38, %v658_v41  ;;  %vm657_vm3 = vcmp.eq.f32.partialorder %v656_v53, 8.507059e+37 }
0x1094   :  { %154 = vrot.lane.b32.xlu1 %v152_v43, %s3170_s6 }
0x1096   :  { %v2861_v15 = vpop.eup %2860 }
0x1097   :  { %v648_v49 = vmul.f32 %v2861_v15, %v646_v48  ;;  %vm653_vm15 = vweird.f32 %v2861_v15 }
0x1098   :  { %vm654_vm2 = vmor %vm652_vm0, %vm653_vm15 }
0x1099   :  { %v649_v50 = vsub.f32 1.0, %v648_v49 }
0x109b   :  { %v650_v51 = vmul.f32 %v2861_v15, %v649_v50 }
0x109c   :  { %384 = vrot.lane.b32.xlu1 %v382_v44, %s3170_s6 }
0x109d   :  { %v651_v52 = vadd.f32 %v2861_v15, %v650_v51 }
0x109f   :  { %v655_v1 = vsel %vm654_vm2, %v2861_v15, %v651_v52 }
0x10a0   :  { %v660_v55 = vsel %vm657_vm3, %v659_v54, %v655_v1 }
0x10a1   :  { %v666_v0 = vmul.f32 %v664_v63, %v660_v55 }
0x10a4   :  { %609 = vrot.lane.b32.xlu1 %v607_v45, %s3170_s6 }
0x10fe   :  { %v669_v17 = vpop.permute.xlu1 %668 }
0x10ff   :  { %v671_v56 = vmul.f32 %v669_v17, %v660_v55 }
0x1101   :  { %673 = vrot.lane.b32.xlu2 %v671_v56, %s3168_s30 }
0x1106   :  { %v155_v57 = vpop.permute.xlu1 %154 }
0x1107   :  { %158 = vst.msk [vmem:[#allocation2] sm:$0x3] %vm157_vm4, %v155_v57 }
0x1109   :  { %230 = vrot.lane.b32.xlu2 %v228_v58, %s3170_s6 }
0x110e   :  { %v385_v59 = vpop.permute.xlu1 %384 }
0x110f   :  { %388 = vst.msk [vmem:[#allocation2] sm:$0xc0] %vm387_vm5, %v385_v59 }
0x1111   :  { %458 = vrot.lane.b32.xlu2 %v456_v60, %s3170_s6 }
0x1116   :  { %v610_v61 = vpop.permute.xlu1 %609 }
0x1117   :  { %612 = vst.msk [vmem:[#allocation2 + $0x8] sm:$0x30] %vm310_vm6, %v610_v61 }
0x115b   :  { %v674_v4 = vpop.permute.xlu2 %673 }
0x115c   :  { %v676_v6 = vadd.f32 %v674_v4, %v666_v0 }
0x115e   :  { %2862 = vtanh.f32 %v676_v6 }
0x1163   :  { %v231_v5 = vpop.permute.xlu2 %230 }
0x1164   :  { %v2863_v8 = vpop.eup %2862  ;;  %234 = vst.msk [vmem:[#allocation2] sm:$0xc] %vm233_vm7, %v231_v5 }
0x1165   :  { %679 = vrot.lane.b32.xlu0 %v2863_v8, %s3169_s5 }
0x116b   :  { %v459_v9 = vpop.permute.xlu2 %458 }
0x116c   :  { %461 = vst.msk [vmem:[#allocation2 + $0x8] sm:$0x3] %vm157_vm4, %v459_v9 }
0x116d   :  { %307 = vrot.lane.b32.xlu0 %v305_v34, %s3170_s6 }
0x1175   :  { %533 = vrot.lane.b32.xlu0 %v531_v10, %s3170_s6 }
0x11d7   :  { %v680_v13 = vpop.permute.xlu0 %679 }
0x11d8   :  { %v682_v14 = vmul.f32 %v680_v13, %v660_v55 }
0x11da   :  { %v683_v16 = vmul.f32 0.1, %v682_v14 }
0x11dc   :  { %685 = vrot.lane.b32.xlu2 %v683_v16, %s3170_s6 }
0x11df   :  { %v308_v18 = vpop.permute.xlu0 %307 }
0x11e0   :  { %311 = vst.msk [vmem:[#allocation2] sm:$0x30] %vm310_vm6, %v308_v18 }
0x11e7   :  { %v534_v19 = vpop.permute.xlu0 %533  ;;  %v689_v20 = vld [vmem:[#allocation2] sm:$0xff] }
0x11e8   :  { %536 = vst.msk [vmem:[#allocation2 + $0x8] sm:$0xc] %vm233_vm7, %v534_v19  ;;  %2706 = vmatmul.msk.f32.vlgmr.msra.gmra.mxu2 %vm62_vm1, %v689_v20  ;;  %2708 = vmatmul.msk.f32.vlgmr.msra.gmra.mxu3 %vm62_vm1, %v689_v20  ;;  %v3398_v20 = vld [vmem:[%s4018_s2 + $0x58] sm:$0xff] }
0x11e9   :  { %955 = vmatpush.msrb.mxu2 %v3398_v20 }
0x1236   :  { %v686_v21 = vpop.permute.xlu2 %685 }
0x1237   :  { %688 = vst.msk [vmem:[#allocation2 + $0x8] sm:$0xc0] %vm387_vm5, %v686_v21  ;;  %v3403_v21 = vld [vmem:[%s4018_s2 + $0x50] sm:$0xff] }
0x1238   :  { %956 = vmatpush.msrb.mxu2 %v3403_v21 }
0x123a   :  { %1168 = vmatpush.msra.mxu2 %v3356_v25 }
0x123c   :  { %1169 = vmatpush.msra.mxu2 %v3361_v26 }
0x123e   :  { %v690_v22 = vld [vmem:[#allocation2 + $0x8] sm:$0xff] }
0x123f   :  { %2707 = vmatmul.msk.f32.gmra.mxu2 %vm62_vm1, %v690_v22  ;;  %2709 = vmatmul.msk.f32.gmra.mxu3 %vm62_vm1, %v690_v22 }
0x126b   :  { %v715_v29 = vpop.f32.mrf.mxu2  ;;  %v739_v30 = vpop.f32.mrf.mxu3 }
0x126c   :  { %v716_v31 = vadd.f32 %v715_v29, %v691_v27  ;;  %v740_v32 = vadd.f32 %v739_v30, %v721_v28 }
0x126e   :  { %2864 = vtanh.f32 %v740_v32  ;;  %2710 = vmatmul.msk.f32.vlgmr.msra.gmra.mxu0 %vm62_vm1, %v716_v31  ;;  %v3419_v31 = vld [vmem:[%s4018_s2 + $0x48] sm:$0xff]  ;;  %v3424_v32 = vld [vmem:[%s4018_s2 + $0x40] sm:$0xff] }
0x126f   :  { %988 = vmatpush.msrb.mxu3 %v3419_v31 }
0x1271   :  { %989 = vmatpush.msrb.mxu3 %v3424_v32 }
0x1273   :  { %1267 = vmatpush.msra.mxu3 %v3398_v20 }
0x1274   :  { %v3368_v33 = vpop.eup %2864 }
0x1275   :  { %2720 = vmatmul.msk.f32.vlgmr.msra.gmra.mxu1 %vm62_vm1, %v3368_v33  ;;  %1268 = vmatpush.msra.mxu3 %v3403_v21 }
0x12c2   :  { %v718_v35 = vpop.f32.mrf.mxu2  ;;  %v742_v36 = vpop.f32.mrf.mxu3 }
0x12c3   :  { %v719_v38 = vadd.f32 %v718_v35, %v691_v27  ;;  %v743_v39 = vadd.f32 %v742_v36, %v721_v28 }
0x12c5   :  { %2866 = vtanh.f32 %v743_v39  ;;  %2711 = vmatmul.msk.f32.gmra.mxu0 %vm62_vm1, %v719_v38 }
0x12cb   :  { %v3373_v40 = vpop.eup %2866 }
0x12cc   :  { %2721 = vmatmul.msk.f32.gmra.mxu1 %vm62_vm1, %v3373_v40 }
0x12cd   :  { %2712 = vmatmul.msk.f32.gmra.mxu0 %vm62_vm1, %v3215_v2 }
0x12d5   :  { %2713 = vmatmul.msk.f32.gmra.mxu0 %vm62_vm1, %v3220_v3 }
0x12eb   :  { %v793_v43 = vpop.f32.mrf.mxu0 }
0x12ec   :  { %v794_v44 = vadd.f32 %v793_v43, %v3382_v42 }
0x12f2   :  { %v851_v45 = vpop.f32.mrf.mxu1 }
0x12f3   :  { %v857_v46 = vadd.f32 %v851_v45, %v794_v44 }
0x12f5   :  { %2868 = vtanh.f32 %v857_v46  ;;  %v2722_v48 = vmul.f32 -1.442695, %v857_v46  ;;  %v3136_v46 = vld [vmem:[%s4018_s2 + $0x90] sm:$0xff] }
0x12f7   :  { %2870 = vpow2.f32 %v2722_v48 }
0x12fb   :  { %v2869_v47 = vpop.eup %2868 }
0x12fc   :  { %903 = vrot.lane.b32.xlu0 %v2869_v47, %s3167_s29  ;;  %v3442_v47 = vperm.slane %v3136_v46, 2 }
0x12fd   :  { %v2871_v3 = vpop.eup %2870 }
0x12fe   :  { %v865_v7 = vadd.f32 1.0, %v2871_v3 }
0x1300   :  { %v878_v17 = vand.u32 2147483648, %v865_v7  ;;  %vm872_vm9 = vweird.f32 %v865_v7  ;;  %v876_v55 = vand.u32 2147483647, %v865_v7 }
0x1302   :  { %v879_v57 = vor.u32 1.1754944e-38, %v878_v17  ;;  %vm877_vm11 = vcmp.eq.f32.partialorder %v876_v55, 8.507059e+37 }
0x1342   :  { %v796_v15 = vpop.f32.mrf.mxu0 }
0x1343   :  { %v797_v2 = vadd.f32 %v796_v15, %v3382_v42 }
0x1349   :  { %v854_v49 = vpop.f32.mrf.mxu1 }
0x134a   :  { %v858_v50 = vadd.f32 %v854_v49, %v797_v2  ;;  %v799_v44 = vpop.f32.mrf.mxu0 }
0x134b   :  { %v800_v45 = vadd.f32 %v799_v44, %v3382_v42 }
0x134c   :  { %2872 = vtanh.f32 %v858_v50  ;;  %v2723_v61 = vmul.f32 -1.442695, %v858_v50 }
0x134d   :  { %2874 = vrcp.f32 %v865_v7 }
0x134e   :  { %2876 = vpow2.f32 %v2723_v61 }
0x1352   :  { %v2873_v51 = vpop.eup %2872 }
0x1353   :  { %905 = vrot.lane.b32.xlu1 %v2873_v51, %s3167_s29  ;;  %v2875_v52 = vpop.eup %2874 }
0x1354   :  { %v868_v41 = vmul.f32 %v2875_v52, %v865_v7  ;;  %vm873_vm8 = vweird.f32 %v2875_v52  ;;  %v2877_v63 = vpop.eup %2876 }
0x1355   :  { %vm874_vm10 = vmor %vm872_vm9, %vm873_vm8  ;;  %v866_v0 = vadd.f32 1.0, %v2877_v63 }
0x1356   :  { %v869_v53 = vsub.f32 1.0, %v868_v41  ;;  %v802_v41 = vpop.f32.mrf.mxu0 }
0x1357   :  { %2878 = vrcp.f32 %v866_v0  ;;  %v893_v9 = vand.u32 2147483648, %v866_v0  ;;  %vm887_vm13 = vweird.f32 %v866_v0  ;;  %v891_v10 = vand.u32 2147483647, %v866_v0 }
0x1358   :  { %v870_v1 = vmul.f32 %v2875_v52, %v869_v53  ;;  %v803_v53 = vadd.f32 %v802_v41, %v3382_v42 }
0x1359   :  { %v894_v12 = vor.u32 1.1754944e-38, %v893_v9  ;;  %vm892_vm15 = vcmp.eq.f32.partialorder %v891_v10, 8.507059e+37 }
0x135a   :  { %v871_v54 = vadd.f32 %v2875_v52, %v870_v1 }
0x135c   :  { %v875_v56 = vsel %vm874_vm10, %v2875_v52, %v871_v54 }
0x135d   :  { %v880_v59 = vsel %vm877_vm11, %v879_v57, %v875_v56  ;;  %v2879_v4 = vpop.eup %2878 }
0x135e   :  { %v883_v6 = vmul.f32 %v2879_v4, %v866_v0  ;;  %vm888_vm12 = vweird.f32 %v2879_v4  ;;  %v899_v14 = vmul.f32 0.0, %v880_v59 }
0x135f   :  { %vm889_vm14 = vmor %vm887_vm13, %vm888_vm12 }
0x1360   :  { %v884_v5 = vsub.f32 1.0, %v883_v6 }
0x1362   :  { %v885_v8 = vmul.f32 %v2879_v4, %v884_v5 }
0x1364   :  { %v886_v34 = vadd.f32 %v2879_v4, %v885_v8 }
0x1366   :  { %v890_v11 = vsel %vm889_vm14, %v2879_v4, %v886_v34 }
0x1367   :  { %v895_v62 = vsel %vm892_vm15, %v894_v12, %v890_v11 }
0x1368   :  { %v900_v22 = vmul.f32 0.0, %v895_v62 }
0x136e   :  { %v904_v58 = vpop.permute.xlu0 %903 }
0x136f   :  { %v909_v60 = vmul.f32 %v904_v58, %v880_v59 }
0x1371   :  { %913 = vrot.lane.b32.xlu2 %v909_v60, %s3168_s30 }
0x13c5   :  { %v906_v37 = vpop.permute.xlu1 %905 }
0x13c6   :  { %v910_v13 = vmul.f32 %v906_v37, %v895_v62 }
0x13c8   :  { %915 = vrot.lane.b32.xlu0 %v910_v13, %s3168_s30 }
0x13cb   :  { %v914_v16 = vpop.permute.xlu2 %913 }
0x13cc   :  { %v3390_v18 = vadd.f32 %v914_v16, %v899_v14 }
0x13ce   :  { %2880 = vtanh.f32 %v3390_v18 }
0x13d0   :  { %933 = vrot.lane.b32.xlu0 %v3368_v33, %s3171_s23 }
0x13d4   :  { %v2881_v19 = vpop.eup %2880 }
0x13d5   :  { %925 = vrot.lane.b32.xlu1 %v2881_v19, %s3169_s5 }
0x143a   :  { %v916_v23 = vpop.permute.xlu0 %915 }
0x143b   :  { %v3409_v24 = vadd.f32 %v916_v23, %v900_v22 }
0x143d   :  { %2882 = vtanh.f32 %v3409_v24 }
0x1442   :  { %v934_v27 = vpop.permute.xlu0 %933 }
0x1443   :  { %v2883_v28 = vpop.eup %2882  ;;  %2724 = vmatmul.msk.f32.vlgmr.msrb.gmra.mxu2 %vm62_vm1, %v934_v27 }
0x1444   :  { %927 = vrot.lane.b32.xlu2 %v2883_v28, %s3169_s5 }
0x1447   :  { %v926_v29 = vpop.permute.xlu1 %925 }
0x1448   :  { %v931_v30 = vmul.f32 %v926_v29, %v880_v59 }
0x144a   :  { %966 = vrot.lane.b32.xlu1 %v931_v30, %s3170_s6 }
0x144c   :  { %935 = vrot.lane.b32.xlu2 %v3373_v40, %s3171_s23  ;;  %s3175_s23 = smov 126  }
0x149e   :  { %v928_v33 = vpop.permute.xlu2 %927 }
0x149f   :  { %v932_v35 = vmul.f32 %v928_v33, %v895_v62 }
0x14a1   :  { %968 = vrot.lane.b32.xlu0 %v932_v35, %s3170_s6 }
0x14a6   :  { %v936_v36 = vpop.permute.xlu2 %935 }
0x14a7   :  { %2725 = vmatmul.msk.f32.gmra.mxu2 %vm62_vm1, %v936_v36 }
0x14bc   :  { %v967_v38 = vpop.permute.xlu1 %966 }
0x14bd   :  { %2726 = vmatmul.msk.f32.vlgmr.msrb.gmra.mxu3 %vm62_vm1, %v967_v38  ;;  %2732 = vmatmul.msk.f32.vlgmr.msra.gmra.mxu2 %vm62_vm1, %v967_v38 }
0x14be   :  { %1482 = vmatpush.msrb.mxu3 %v3356_v25 }
0x14c0   :  { %1483 = vmatpush.msrb.mxu3 %v3361_v26 }
0x14c6   :  { %v958_v40 = vpop.f32.mrf.mxu2 }
0x1513   :  { %v969_v39 = vpop.permute.xlu0 %968 }
0x1514   :  { %2727 = vmatmul.msk.f32.gmra.mxu3 %vm62_vm1, %v969_v39  ;;  %2733 = vmatmul.msk.f32.gmra.mxu2 %vm62_vm1, %v969_v39 }
0x152a   :  { %v961_v43 = vpop.f32.mrf.mxu2 }
0x1540   :  { %v991_v48 = vpop.f32.mrf.mxu3  ;;  %v1171_v15 = vpop.f32.mrf.mxu2 }
0x1541   :  { %v992_v2 = vadd.f32 %v991_v48, %v958_v40  ;;  %v1177_v49 = vadd.f32 %v1171_v15, %v800_v45 }
0x1543   :  { %v998_v50 = vadd.f32 %v3442_v47, %v992_v2  ;;  %2884 = vtanh.f32 %v1177_v49  ;;  %v2734_v51 = vmul.f32 -1.442695, %v1177_v49 }
0x1545   :  { %2886 = vtanh.f32 %v998_v50  ;;  %v2728_v52 = vmul.f32 -1.442695, %v998_v50 }
0x1546   :  { %2888 = vpow2.f32 %v2734_v51 }
0x1547   :  { %2890 = vpow2.f32 %v2728_v52 }
0x1549   :  { %v2885_v3 = vpop.eup %2884 }
0x154a   :  { %1223 = vrot.lane.b32.xlu0 %v2885_v3, %s3167_s29 }
0x154b   :  { %v2887_v7 = vpop.eup %2886 }
0x154c   :  { %1044 = vrot.lane.b32.xlu1 %v2887_v7, %s3167_s29  ;;  %v2889_v56 = vpop.eup %2888 }
0x154d   :  { %v2891_v58 = vpop.eup %2890  ;;  %v1185_v59 = vadd.f32 1.0, %v2889_v56 }
0x154e   :  { %v1006_v60 = vadd.f32 1.0, %v2891_v58 }
0x154f   :  { %v1198_v12 = vand.u32 2147483648, %v1185_v59  ;;  %vm1192_vm2 = vweird.f32 %v1185_v59  ;;  %v1196_v37 = vand.u32 2147483647, %v1185_v59 }
0x1550   :  { %v1019_v13 = vand.u32 2147483648, %v1006_v60  ;;  %vm1013_vm5 = vweird.f32 %v1006_v60  ;;  %v1017_v16 = vand.u32 2147483647, %v1006_v60 }
0x1551   :  { %v1199_v19 = vor.u32 1.1754944e-38, %v1198_v12  ;;  %vm1197_vm7 = vcmp.eq.f32.partialorder %v1196_v37, 8.507059e+37 }
0x1552   :  { %v1020_v28 = vor.u32 1.1754944e-38, %v1019_v13  ;;  %vm1018_vm8 = vcmp.eq.f32.partialorder %v1017_v16, 8.507059e+37 }
0x1597   :  { %v994_v1 = vpop.f32.mrf.mxu3  ;;  %v1174_v54 = vpop.f32.mrf.mxu2 }
0x1598   :  { %v995_v17 = vadd.f32 %v994_v1, %v961_v43  ;;  %v1178_v55 = vadd.f32 %v1174_v54, %v803_v53 }
0x159a   :  { %v999_v57 = vadd.f32 %v3442_v47, %v995_v17  ;;  %2892 = vtanh.f32 %v1178_v55  ;;  %v2735_v40 = vmul.f32 -1.442695, %v1178_v55 }
0x159c   :  { %2894 = vtanh.f32 %v999_v57  ;;  %v2729_v36 = vmul.f32 -1.442695, %v999_v57 }
0x159d   :  { %2896 = vrcp.f32 %v1185_v59 }
0x159e   :  { %2898 = vrcp.f32 %v1006_v60 }
0x159f   :  { %2900 = vpow2.f32 %v2729_v36 }
0x15a0   :  { %v2893_v61 = vpop.eup %2892 }
0x15a1   :  { %1225 = vrot.lane.b32.xlu1 %v2893_v61, %s3167_s29 }
0x15a2   :  { %v2895_v63 = vpop.eup %2894 }
0x15a3   :  { %1046 = vrot.lane.b32.xlu2 %v2895_v63, %s3167_s29  ;;  %v2897_v0 = vpop.eup %2896 }
0x15a4   :  { %v2899_v4 = vpop.eup %2898  ;;  %v1188_v6 = vmul.f32 %v2897_v0, %v1185_v59  ;;  %vm1193_vm0 = vweird.f32 %v2897_v0 }
0x15a5   :  { %v1009_v5 = vmul.f32 %v2899_v4, %v1006_v60  ;;  %vm1014_vm3 = vweird.f32 %v2899_v4  ;;  %vm1194_vm4 = vmor %vm1192_vm2, %vm1193_vm0  ;;  %v2901_v38 = vpop.eup %2900 }
0x15a6   :  { %v1189_v8 = vsub.f32 1.0, %v1188_v6  ;;  %vm1015_vm6 = vmor %vm1013_vm5, %vm1014_vm3  ;;  %v1007_v39 = vadd.f32 1.0, %v2901_v38  ;;  %v38_v38 = vld [vmem:[%s4016_s0 + $0x10] sm:$0xff] }
0x15a7   :  { %v1010_v34 = vsub.f32 1.0, %v1009_v5  ;;  %2714 = vmatmul.msk.f32.gmra.mxu0 %vm62_vm1, %v38_v38 }
0x15a8   :  { %v1190_v9 = vmul.f32 %v2897_v0, %v1189_v8  ;;  %2902 = vrcp.f32 %v1007_v39  ;;  %v1034_v49 = vand.u32 2147483648, %v1007_v39  ;;  %vm1028_vm10 = vweird.f32 %v1007_v39 }
0x15a9   :  { %v1011_v10 = vmul.f32 %v2899_v4, %v1010_v34  ;;  %2904 = vpow2.f32 %v2735_v40  ;;  %v1032_v50 = vand.u32 2147483647, %v1007_v39 }
0x15aa   :  { %v1191_v11 = vadd.f32 %v2897_v0, %v1190_v9  ;;  %v1035_v7 = vor.u32 1.1754944e-38, %v1034_v49 }
0x15ab   :  { %v1012_v62 = vadd.f32 %v2899_v4, %v1011_v10  ;;  %vm1033_vm12 = vcmp.eq.f32.partialorder %v1032_v50, 8.507059e+37 }
0x15ac   :  { %v1195_v14 = vsel %vm1194_vm4, %v2897_v0, %v1191_v11 }
0x15ad   :  { %v1016_v22 = vsel %vm1015_vm6, %v2899_v4, %v1012_v62  ;;  %v3451_v27 = vsel %vm1197_vm7, %v1199_v19, %v1195_v14 }
0x15ae   :  { %v3454_v33 = vsel %vm1018_vm8, %v1020_v28, %v1016_v22  ;;  %v2903_v43 = vpop.eup %2902  ;;  %v1219_v8 = vmul.f32 %v3451_v27, %v3390_v18  ;;  %v34_v28 = vld [vmem:[%s4018_s2 + $0x88] sm:$0xff] }
0x15af   :  { %v1024_v44 = vmul.f32 %v2903_v43, %v1007_v39  ;;  %v2905_v46 = vpop.eup %2904  ;;  %vm1029_vm9 = vweird.f32 %v2903_v43  ;;  %v1040_v0 = vmul.f32 0.0, %v3454_v33  ;;  %1099 = vmatpush.msrb.mxu1 %v34_v28  ;;  %1409 = vmatpush.msrb.mxu2 %v34_v28  ;;  %v39_v39 = vld [vmem:[%s4016_s0 + $0x18] sm:$0xff] }
0x15b0   :  { %v1186_v15 = vadd.f32 1.0, %v2905_v46  ;;  %vm1030_vm11 = vmor %vm1028_vm10, %vm1029_vm9  ;;  %2037 = vmatpush.msrb.mxu0 %v34_v28 }
0x15b1   :  { %v1025_v45 = vsub.f32 1.0, %v1024_v44  ;;  %2715 = vmatmul.msk.f32.gmra.mxu0 %vm62_vm1, %v39_v39 }
0x15b2   :  { %2906 = vrcp.f32 %v1186_v15  ;;  %v1213_v56 = vand.u32 2147483648, %v1186_v15  ;;  %vm1207_vm14 = vweird.f32 %v1186_v15  ;;  %v1211_v57 = vand.u32 2147483647, %v1186_v15 }
0x15b3   :  { %v1026_v48 = vmul.f32 %v2903_v43, %v1025_v45 }
0x15b4   :  { %v1214_v59 = vor.u32 1.1754944e-38, %v1213_v56  ;;  %vm1212_vm0 = vcmp.eq.f32.partialorder %v1211_v57, 8.507059e+37 }
0x15b5   :  { %v1027_v2 = vadd.f32 %v2903_v43, %v1026_v48 }
0x15b7   :  { %v1031_v3 = vsel %vm1030_vm11, %v2903_v43, %v1027_v2 }
0x15b8   :  { %v2907_v51 = vpop.eup %2906  ;;  %v3459_v41 = vsel %vm1033_vm12, %v1035_v7, %v1031_v3 }
0x15b9   :  { %v1203_v1 = vmul.f32 %v2907_v51, %v1186_v15  ;;  %vm1208_vm13 = vweird.f32 %v2907_v51  ;;  %v1041_v62 = vmul.f32 0.0, %v3459_v41 }
0x15ba   :  { %vm1209_vm15 = vmor %vm1207_vm14, %vm1208_vm13 }
0x15bb   :  { %v1204_v54 = vsub.f32 1.0, %v1203_v1 }
0x15bc   :  { %v1224_v23 = vpop.permute.xlu0 %1223 }
0x15bd   :  { %v1229_v29 = vmul.f32 %v1224_v23, %v3451_v27  ;;  %v1205_v17 = vmul.f32 %v2907_v51, %v1204_v54 }
0x15be   :  { %v1045_v30 = vpop.permute.xlu1 %1044 }
0x15bf   :  { %v1050_v35 = vmul.f32 %v1045_v30, %v3454_v33  ;;  %1233 = vrot.lane.b32.xlu1 %v1229_v29, %s3168_s30  ;;  %v1206_v55 = vadd.f32 %v2907_v51, %v1205_v17  ;;  %v33_v29 = vld [vmem:[%s4018_s2 + $0x80] sm:$0xff] }
0x15c0   :  { %1100 = vmatpush.msrb.mxu1 %v33_v29  ;;  %1410 = vmatpush.msrb.mxu2 %v33_v29 }
0x15c1   :  { %1054 = vrot.lane.b32.xlu2 %v1050_v35, %s3168_s30  ;;  %v1210_v58 = vsel %vm1209_vm15, %v2907_v51, %v1206_v55  ;;  %2038 = vmatpush.msrb.mxu0 %v33_v29 }
0x15c2   :  { %v1215_v61 = vsel %vm1212_vm0, %v1214_v59, %v1210_v58  ;;  %1300 = vmatpush.msra.mxu1 %v3419_v31  ;;  %1614 = vmatpush.msra.mxu2 %v3419_v31 }
0x15c3   :  { %v1220_v11 = vmul.f32 %v1215_v61, %v3409_v24  ;;  %2351 = vmatpush.msra.mxu0 %v34_v28 }
0x15c4   :  { %1301 = vmatpush.msra.mxu1 %v3424_v32  ;;  %1615 = vmatpush.msra.mxu2 %v3424_v32 }
0x15c5   :  { %2352 = vmatpush.msra.mxu0 %v33_v29 }
0x15fd   :  { %v1047_v52 = vpop.permute.xlu2 %1046 }
0x15fe   :  { %v1051_v53 = vmul.f32 %v1047_v52, %v3459_v41 }
0x1600   :  { %1056 = vrot.lane.b32.xlu0 %v1051_v53, %s3168_s30 }
0x1613   :  { %v1226_v60 = vpop.permute.xlu1 %1225 }
0x1614   :  { %v1230_v63 = vmul.f32 %v1226_v60, %v1215_v61 }
0x1616   :  { %1235 = vrot.lane.b32.xlu2 %v1230_v63, %s3168_s30 }
0x161b   :  { %v1055_v4 = vpop.permute.xlu2 %1054 }
0x161c   :  { %v3465_v6 = vadd.f32 %v1055_v4, %v1040_v0 }
0x161e   :  { %2908 = vtanh.f32 %v3465_v6 }
0x1624   :  { %v2909_v5 = vpop.eup %2908  ;;  %v805_v49 = vpop.f32.mrf.mxu0 }
0x1625   :  { %1066 = vrot.lane.b32.xlu0 %v2909_v5, %s3169_s5  ;;  %v806_v3 = vadd.f32 %v805_v49, %v3382_v42 }
0x1631   :  { %v1234_v34 = vpop.permute.xlu1 %1233 }
0x1632   :  { %v3471_v9 = vadd.f32 %v1234_v34, %v1219_v8 }
0x1634   :  { %2910 = vtanh.f32 %v3471_v9 }
0x163a   :  { %v2911_v10 = vpop.eup %2910 }
0x163b   :  { %1245 = vrot.lane.b32.xlu2 %v2911_v10, %s3169_s5 }
0x1670   :  { %v1236_v12 = vpop.permute.xlu2 %1235 }
0x1671   :  { %v3476_v37 = vadd.f32 %v1236_v12, %v1220_v11 }
0x1672   :  { %v1057_v13 = vpop.permute.xlu0 %1056 }
0x1673   :  { %2912 = vtanh.f32 %v3476_v37  ;;  %v3480_v14 = vadd.f32 %v1057_v13, %v1041_v62 }
0x1675   :  { %2914 = vtanh.f32 %v3480_v14 }
0x1679   :  { %v2913_v18 = vpop.eup %2912 }
0x167a   :  { %1247 = vrot.lane.b32.xlu0 %v2913_v18, %s3169_s5 }
0x167b   :  { %v2915_v16 = vpop.eup %2914 }
0x167c   :  { %1068 = vrot.lane.b32.xlu1 %v2915_v16, %s3169_s5 }
0x1695   :  { %v1246_v19 = vpop.permute.xlu2 %1245 }
0x1696   :  { %v1251_v24 = vmul.f32 %v1246_v19, %v3451_v27 }
0x1697   :  { %v1067_v22 = vpop.permute.xlu0 %1066 }
0x1698   :  { %v1072_v23 = vmul.f32 %v1067_v22, %v3454_v33  ;;  %1278 = vrot.lane.b32.xlu0 %v1251_v24, %s3170_s6 }
0x169a   :  { %1077 = vrot.lane.b32.xlu1 %v1072_v23, %s3170_s6 }
0x16ec   :  { %v1248_v27 = vpop.permute.xlu0 %1247 }
0x16ed   :  { %v1252_v30 = vmul.f32 %v1248_v27, %v1215_v61 }
0x16ee   :  { %v1069_v33 = vpop.permute.xlu1 %1068 }
0x16ef   :  { %v1073_v35 = vmul.f32 %v1069_v33, %v3459_v41  ;;  %1280 = vrot.lane.b32.xlu1 %v1252_v30, %s3170_s6  ;;  %v808_v41 = vpop.f32.mrf.mxu0 }
0x16f0   :  { %v809_v17 = vadd.f32 %v808_v41, %v3382_v42 }
0x16f1   :  { %1079 = vrot.lane.b32.xlu2 %v1073_v35, %s3170_s6 }
0x170a   :  { %v1279_v43 = vpop.permute.xlu0 %1278 }
0x170c   :  { %v1078_v36 = vpop.permute.xlu1 %1077 }
0x170d   :  { %2730 = vmatmul.msk.f32.vlgmr.msrb.gmra.mxu1 %vm62_vm1, %v1078_v36  ;;  %2736 = vmatmul.msk.f32.vlgmr.msra.gmra.mxu3 %vm62_vm1, %v1078_v36 }
0x170e   :  { %1581 = vmatpush.msrb.mxu1 %v3398_v20  ;;  %1723 = vmatpush.msra.mxu3 %v34_v28 }
0x1710   :  { %1582 = vmatpush.msrb.mxu1 %v3403_v21  ;;  %1724 = vmatpush.msra.mxu3 %v33_v29 }
0x174b   :  { %v1080_v40 = vpop.permute.xlu2 %1079 }
0x174c   :  { %2731 = vmatmul.msk.f32.gmra.mxu1 %vm62_vm1, %v1080_v40  ;;  %2737 = vmatmul.msk.f32.gmra.mxu3 %vm62_vm1, %v1080_v40 }
0x1754   :  { %2738 = vmatmul.msk.f32.vlgmr.msra.gmra.mxu1 %vm62_vm1, %v1279_v43  ;;  %2744 = vmatmul.msk.f32.vlgmr.msrb.gmra.mxu3 %vm62_vm1, %v1279_v43 }
0x1755   :  { %1796 = vmatpush.msra.mxu1 %v3356_v25  ;;  %1928 = vmatpush.msrb.mxu3 %v3419_v31 }
0x1757   :  { %1797 = vmatpush.msra.mxu1 %v3361_v26  ;;  %1929 = vmatpush.msrb.mxu3 %v3424_v32 }
0x1761   :  { %v1281_v44 = vpop.permute.xlu1 %1280 }
0x1762   :  { %2739 = vmatmul.msk.f32.gmra.mxu1 %vm62_vm1, %v1281_v44  ;;  %2745 = vmatmul.msk.f32.gmra.mxu3 %vm62_vm1, %v1281_v44 }
0x178a   :  { %v3524_v45 = vpop.f32.mrf.mxu1 }
0x1790   :  { %v1270_v46 = vpop.f32.mrf.mxu3 }
0x17c9   :  { %v3526_v48 = vpop.f32.mrf.mxu1 }
0x17cf   :  { %v1273_v15 = vpop.f32.mrf.mxu3 }
0x17d1   :  { %v1303_v2 = vpop.f32.mrf.mxu1 }
0x17d2   :  { %v1304_v50 = vadd.f32 %v1303_v2, %v1270_v46 }
0x17d4   :  { %v1309_v31 = vadd.f32 %v1304_v50, %v3442_v47 }
0x17d6   :  { %2916 = vtanh.f32 %v1309_v31  ;;  %v2740_v59 = vmul.f32 -1.442695, %v1309_v31 }
0x17d7   :  { %v1485_v32 = vpop.f32.mrf.mxu3 }
0x17d8   :  { %v1491_v7 = vadd.f32 %v1485_v32, %v806_v3 }
0x17da   :  { %2918 = vtanh.f32 %v1491_v7  ;;  %v2746_v8 = vmul.f32 -1.442695, %v1491_v7 }
0x17dc   :  { %v2917_v51 = vpop.eup %2916 }
0x17dd   :  { %1355 = vrot.lane.b32.xlu2 %v2917_v51, %s3167_s29 }
0x17df   :  { %v1306_v52 = vpop.f32.mrf.mxu1 }
0x17e0   :  { %v2919_v53 = vpop.eup %2918  ;;  %v1307_v1 = vadd.f32 %v1306_v52, %v1273_v15 }
0x17e1   :  { %1537 = vrot.lane.b32.xlu1 %v2919_v53, %s3167_s29 }
0x17e2   :  { %v1310_v54 = vadd.f32 %v1307_v1, %v3442_v47 }
0x17e4   :  { %2920 = vtanh.f32 %v1310_v54  ;;  %v2741_v62 = vmul.f32 -1.442695, %v1310_v54 }
0x17e5   :  { %v1488_v55 = vpop.f32.mrf.mxu3 }
0x17e6   :  { %v1492_v56 = vadd.f32 %v1488_v55, %v809_v17 }
0x17e8   :  { %2922 = vtanh.f32 %v1492_v56  ;;  %v2747_v63 = vmul.f32 -1.442695, %v1492_v56 }
0x17e9   :  { %2924 = vpow2.f32 %v2740_v59 }
0x17ea   :  { %v2921_v57 = vpop.eup %2920 }
0x17eb   :  { %1357 = vrot.lane.b32.xlu0 %v2921_v57, %s3167_s29 }
0x17ee   :  { %v2923_v58 = vpop.eup %2922 }
0x17ef   :  { %1539 = vrot.lane.b32.xlu2 %v2923_v58, %s3167_s29  ;;  %v2925_v60 = vpop.eup %2924 }
0x17f0   :  { %v1317_v61 = vadd.f32 1.0, %v2925_v60 }
0x17f2   :  { %2926 = vrcp.f32 %v1317_v61  ;;  %v1330_v18 = vand.u32 2147483648, %v1317_v61  ;;  %vm1324_vm3 = vweird.f32 %v1317_v61  ;;  %v1328_v16 = vand.u32 2147483647, %v1317_v61 }
0x17f3   :  { %2928 = vpow2.f32 %v2747_v63 }
0x17f4   :  { %2930 = vpow2.f32 %v2746_v8  ;;  %v1331_v23 = vor.u32 1.1754944e-38, %v1330_v18  ;;  %vm1329_vm5 = vcmp.eq.f32.partialorder %v1328_v16, 8.507059e+37 }
0x17f8   :  { %v2927_v0 = vpop.eup %2926 }
0x17f9   :  { %v1320_v4 = vmul.f32 %v2927_v0, %v1317_v61  ;;  %v2929_v5 = vpop.eup %2928  ;;  %vm1325_vm2 = vweird.f32 %v2927_v0 }
0x17fa   :  { %v1500_v10 = vadd.f32 1.0, %v2929_v5  ;;  %v2931_v12 = vpop.eup %2930  ;;  %vm1326_vm4 = vmor %vm1324_vm3, %vm1325_vm2 }
0x17fb   :  { %v1321_v34 = vsub.f32 1.0, %v1320_v4  ;;  %v1499_v24 = vadd.f32 1.0, %v2931_v12 }
0x17fc   :  { %2932 = vrcp.f32 %v1500_v10  ;;  %v1527_v44 = vand.u32 2147483648, %v1500_v10  ;;  %vm1521_vm7 = vweird.f32 %v1500_v10  ;;  %v1525_v46 = vand.u32 2147483647, %v1500_v10 }
0x17fd   :  { %v1322_v11 = vmul.f32 %v2927_v0, %v1321_v34  ;;  %2934 = vpow2.f32 %v2741_v62  ;;  %v1512_v41 = vand.u32 2147483648, %v1499_v24  ;;  %vm1506_vm11 = vweird.f32 %v1499_v24 }
0x17fe   :  { %2936 = vrcp.f32 %v1499_v24  ;;  %v1528_v50 = vor.u32 1.1754944e-38, %v1527_v44  ;;  %vm1526_vm9 = vcmp.eq.f32.partialorder %v1525_v46, 8.507059e+37  ;;  %v1510_v53 = vand.u32 2147483647, %v1499_v24 }
0x17ff   :  { %v1323_v13 = vadd.f32 %v2927_v0, %v1322_v11  ;;  %v1513_v17 = vor.u32 1.1754944e-38, %v1512_v41 }
0x1800   :  { %vm1511_vm13 = vcmp.eq.f32.partialorder %v1510_v53, 8.507059e+37 }
0x1801   :  { %v1327_v22 = vsel %vm1326_vm4, %v2927_v0, %v1323_v13 }
0x1802   :  { %v2933_v19 = vpop.eup %2932  ;;  %v3536_v27 = vsel %vm1329_vm5, %v1331_v23, %v1327_v22 }
0x1803   :  { %v1517_v28 = vmul.f32 %v2933_v19, %v1500_v10  ;;  %v2935_v33 = vpop.eup %2934  ;;  %vm1522_vm6 = vweird.f32 %v2933_v19  ;;  %v1351_v34 = vmul.f32 %v3536_v27, %v3465_v6 }
0x1804   :  { %v2937_v36 = vpop.eup %2936  ;;  %v1318_v38 = vadd.f32 1.0, %v2935_v33  ;;  %vm1523_vm8 = vmor %vm1521_vm7, %vm1522_vm6 }
0x1805   :  { %v1518_v35 = vsub.f32 1.0, %v1517_v28  ;;  %v1502_v40 = vmul.f32 %v2937_v36, %v1499_v24  ;;  %vm1507_vm10 = vweird.f32 %v2937_v36 }
0x1806   :  { %2938 = vrcp.f32 %v1318_v38  ;;  %vm1508_vm12 = vmor %vm1506_vm11, %vm1507_vm10  ;;  %v1345_v60 = vand.u32 2147483648, %v1318_v38  ;;  %vm1339_vm15 = vweird.f32 %v1318_v38  ;;  %v1343_v61 = vand.u32 2147483647, %v1318_v38 }
0x1807   :  { %v1519_v39 = vmul.f32 %v2933_v19, %v1518_v35  ;;  %v1503_v15 = vsub.f32 1.0, %v1502_v40 }
0x1808   :  { %v1346_v0 = vor.u32 1.1754944e-38, %v1345_v60  ;;  %vm1344_vm2 = vcmp.eq.f32.partialorder %v1343_v61, 8.507059e+37 }
0x1809   :  { %v1520_v43 = vadd.f32 %v2933_v19, %v1519_v39  ;;  %v1504_v31 = vmul.f32 %v2937_v36, %v1503_v15 }
0x180b   :  { %v1524_v2 = vsel %vm1523_vm8, %v2933_v19, %v1520_v43  ;;  %v1505_v52 = vadd.f32 %v2937_v36, %v1504_v31  ;;  %v41_v43 = vld [vmem:[%s4016_s0 + $0x28] sm:$0xff] }
0x180c   :  { %v2939_v49 = vpop.eup %2938  ;;  %v3540_v32 = vsel %vm1526_vm9, %v1528_v50, %v1524_v2 }
0x180d   :  { %v1335_v51 = vmul.f32 %v2939_v49, %v1318_v38  ;;  %v1509_v54 = vsel %vm1508_vm12, %v2937_v36, %v1505_v52  ;;  %vm1340_vm14 = vweird.f32 %v2939_v49  ;;  %v1534_v6 = vmul.f32 %v3540_v32, %v3476_v37 }
0x180e   :  { %v1514_v56 = vsel %vm1511_vm13, %v1513_v17, %v1509_v54  ;;  %vm1341_vm0 = vmor %vm1339_vm15, %vm1340_vm14 }
0x180f   :  { %v1336_v1 = vsub.f32 1.0, %v1335_v51  ;;  %v1533_v12 = vmul.f32 %v1514_v56, %v3471_v9 }
0x1811   :  { %v1337_v55 = vmul.f32 %v2939_v49, %v1336_v1 }
0x1813   :  { %v1338_v59 = vadd.f32 %v2939_v49, %v1337_v55 }
0x1815   :  { %v1342_v63 = vsel %vm1341_vm0, %v2939_v49, %v1338_v59 }
0x1816   :  { %v1347_v5 = vsel %vm1344_vm2, %v1346_v0, %v1342_v63 }
0x1817   :  { %v1352_v22 = vmul.f32 %v1347_v5, %v3480_v14 }
0x1837   :  { %v1356_v29 = vpop.permute.xlu2 %1355 }
0x1838   :  { %v1361_v30 = vmul.f32 %v1356_v29, %v3536_v27 }
0x183a   :  { %1365 = vrot.lane.b32.xlu0 %v1361_v30, %s3168_s30 }
0x1849   :  { %v1540_v3 = vpop.permute.xlu2 %1539 }
0x184a   :  { %v1544_v7 = vmul.f32 %v1540_v3, %v3540_v32 }
0x184c   :  { %1549 = vrot.lane.b32.xlu0 %v1544_v7, %s3168_s30 }
0x1853   :  { %v1538_v57 = vpop.permute.xlu1 %1537 }
0x1854   :  { %v1543_v58 = vmul.f32 %v1538_v57, %v1514_v56 }
0x1856   :  { %1547 = vrot.lane.b32.xlu2 %v1543_v58, %s3168_s30 }
0x185d   :  { %v1358_v4 = vpop.permute.xlu0 %1357 }
0x185e   :  { %v1362_v8 = vmul.f32 %v1358_v4, %v1347_v5 }
0x1860   :  { %1367 = vrot.lane.b32.xlu1 %v1362_v8, %s3168_s30 }
0x18ac   :  { %v1366_v10 = vpop.permute.xlu0 %1365 }
0x18ad   :  { %v3548_v11 = vadd.f32 %v1366_v10, %v1351_v34 }
0x18af   :  { %2940 = vtanh.f32 %v3548_v11 }
0x18b0   :  { %v1548_v62 = vpop.permute.xlu2 %1547 }
0x18b1   :  { %v3552_v13 = vadd.f32 %v1548_v62, %v1533_v12 }
0x18b3   :  { %2942 = vtanh.f32 %v3552_v13 }
0x18b5   :  { %v2941_v18 = vpop.eup %2940 }
0x18b6   :  { %1377 = vrot.lane.b32.xlu1 %v2941_v18, %s3169_s5 }
0x18b9   :  { %v2943_v16 = vpop.eup %2942 }
0x18ba   :  { %1559 = vrot.lane.b32.xlu0 %v2943_v16, %s3169_s5 }
0x18be   :  { %v1550_v19 = vpop.permute.xlu0 %1549 }
0x18bf   :  { %v3559_v24 = vadd.f32 %v1550_v19, %v1534_v6 }
0x18c1   :  { %2944 = vtanh.f32 %v3559_v24 }
0x18c7   :  { %v2945_v9 = vpop.eup %2944 }
0x18c8   :  { %1561 = vrot.lane.b32.xlu1 %v2945_v9, %s3169_s5 }
0x18d2   :  { %v1368_v23 = vpop.permute.xlu1 %1367 }
0x18d3   :  { %v3564_v28 = vadd.f32 %v1368_v23, %v1352_v22 }
0x18d5   :  { %2946 = vtanh.f32 %v3564_v28 }
0x18db   :  { %v2947_v29 = vpop.eup %2946 }
0x18dc   :  { %1379 = vrot.lane.b32.xlu2 %v2947_v29, %s3169_s5 }
0x1928   :  { %v1378_v30 = vpop.permute.xlu1 %1377 }
0x1929   :  { %v1383_v37 = vmul.f32 %v1378_v30, %v3536_v27  ;;  %v40_v27 = vld [vmem:[%s4016_s0 + $0x20] sm:$0xff] }
0x192a   :  { %2716 = vmatmul.msk.f32.gmra.mxu0 %vm62_vm1, %v40_v27 }
0x192b   :  { %1387 = vrot.lane.b32.xlu2 %v1383_v37, %s3170_s6 }
0x192c   :  { %v1560_v33 = vpop.permute.xlu0 %1559 }
0x192d   :  { %v1565_v35 = vmul.f32 %v1560_v33, %v1514_v56 }
0x192f   :  { %1592 = vrot.lane.b32.xlu1 %v1565_v35, %s3170_s6 }
0x1932   :  { %2717 = vmatmul.msk.f32.gmra.mxu0 %vm62_vm1, %v41_v43 }
0x1936   :  { %v1380_v36 = vpop.permute.xlu2 %1379 }
0x1937   :  { %v1384_v38 = vmul.f32 %v1380_v36, %v1347_v5 }
0x1939   :  { %1389 = vrot.lane.b32.xlu0 %v1384_v38, %s3170_s6 }
0x193a   :  { %v1562_v14 = vpop.permute.xlu1 %1561 }
0x193b   :  { %v1566_v39 = vmul.f32 %v1562_v14, %v3540_v32 }
0x193d   :  { %1594 = vrot.lane.b32.xlu2 %v1566_v39, %s3170_s6 }
0x1985   :  { %v1388_v40 = vpop.permute.xlu2 %1387 }
0x1986   :  { %2742 = vmatmul.msk.f32.vlgmr.msrb.gmra.mxu2 %vm62_vm1, %v1388_v40  ;;  %2748 = vmatmul.msk.f32.vlgmr.msrb.gmra.mxu1 %vm62_vm1, %v1388_v40 }
0x1987   :  { %1895 = vmatpush.msrb.mxu2 %v3398_v20  ;;  %2110 = vmatpush.msrb.mxu1 %v3356_v25 }
0x1989   :  { %1896 = vmatpush.msrb.mxu2 %v3403_v21  ;;  %2111 = vmatpush.msrb.mxu1 %v3361_v26 }
0x1997   :  { %v1595_v26 = vpop.permute.xlu2 %1594 }
0x19a1   :  { %v1593_v25 = vpop.permute.xlu1 %1592 }
0x19a7   :  { %v811_v49 = vpop.f32.mrf.mxu0 }
0x19a8   :  { %v812_v50 = vadd.f32 %v811_v49, %v3382_v42 }
0x19ab   :  { %v1390_v44 = vpop.permute.xlu0 %1389 }
0x19ac   :  { %2743 = vmatmul.msk.f32.gmra.mxu2 %vm62_vm1, %v1390_v44  ;;  %2749 = vmatmul.msk.f32.gmra.mxu1 %vm62_vm1, %v1390_v44 }
0x19b4   :  { %2750 = vmatmul.msk.f32.vlgmr.msra.gmra.mxu2 %vm62_vm1, %v1593_v25  ;;  %2756 = vmatmul.msk.f32.vlgmr.msra.gmra.mxu1 %vm62_vm1, %v1593_v25 }
0x19b5   :  { %2209 = vmatpush.msra.mxu2 %v3398_v20 }
0x19b7   :  { %2210 = vmatpush.msra.mxu2 %v3403_v21 }
0x19bc   :  { %2751 = vmatmul.msk.f32.gmra.mxu2 %vm62_vm1, %v1595_v26  ;;  %2757 = vmatmul.msk.f32.gmra.mxu1 %vm62_vm1, %v1595_v26 }
0x1a03   :  { %v1584_v46 = vpop.f32.mrf.mxu1 }
0x1a09   :  { %v3596_v15 = vpop.f32.mrf.mxu2 }
0x1a29   :  { %v1587_v2 = vpop.f32.mrf.mxu1 }
0x1a2f   :  { %v3599_v31 = vpop.f32.mrf.mxu2 }
0x1a31   :  { %v1799_v3 = vpop.f32.mrf.mxu1 }
0x1a32   :  { %v1805_v32 = vadd.f32 %v1799_v3, %v812_v50 }
0x1a34   :  { %2948 = vtanh.f32 %v1805_v32  ;;  %v2758_v17 = vmul.f32 -1.442695, %v1805_v32 }
0x1a37   :  { %v1617_v20 = vpop.f32.mrf.mxu2 }
0x1a38   :  { %v1618_v7 = vadd.f32 %v1617_v20, %v1584_v46 }
0x1a3a   :  { %v2949_v21 = vpop.eup %2948  ;;  %v1623_v51 = vadd.f32 %v1618_v7, %v3442_v47  ;;  %v814_v7 = vpop.f32.mrf.mxu0 }
0x1a3b   :  { %1851 = vrot.lane.b32.xlu2 %v2949_v21, %s3167_s29 }
0x1a3c   :  { %2950 = vtanh.f32 %v1623_v51  ;;  %v2752_v60 = vmul.f32 -1.442695, %v1623_v51 }
0x1a3f   :  { %v1620_v52 = vpop.f32.mrf.mxu2 }
0x1a40   :  { %v1621_v41 = vadd.f32 %v1620_v52, %v1587_v2  ;;  %v815_v52 = vadd.f32 %v814_v7, %v3382_v42 }
0x1a42   :  { %v2951_v53 = vpop.eup %2950  ;;  %v1624_v1 = vadd.f32 %v1621_v41, %v3442_v47  ;;  %v1802_v41 = vpop.f32.mrf.mxu1 }
0x1a43   :  { %1669 = vrot.lane.b32.xlu0 %v2951_v53, %s3167_s29  ;;  %v1806_v53 = vadd.f32 %v1802_v41, %v815_v52 }
0x1a44   :  { %2952 = vtanh.f32 %v1624_v1  ;;  %v2753_v4 = vmul.f32 -1.442695, %v1624_v1 }
0x1a45   :  { %2954 = vpow2.f32 %v2758_v17 }
0x1a4a   :  { %v2953_v54 = vpop.eup %2952 }
0x1a4b   :  { %1671 = vrot.lane.b32.xlu1 %v2953_v54, %s3167_s29  ;;  %v2955_v55 = vpop.eup %2954 }
0x1a4c   :  { %v1813_v56 = vadd.f32 1.0, %v2955_v55 }
0x1a4e   :  { %2956 = vrcp.f32 %v1813_v56  ;;  %v1826_v0 = vand.u32 2147483648, %v1813_v56  ;;  %vm1820_vm4 = vweird.f32 %v1813_v56  ;;  %v1824_v5 = vand.u32 2147483647, %v1813_v56 }
0x1a4f   :  { %2958 = vpow2.f32 %v2752_v60 }
0x1a50   :  { %v1827_v10 = vor.u32 1.1754944e-38, %v1826_v0  ;;  %2960 = vpow2.f32 %v2753_v4  ;;  %vm1825_vm6 = vcmp.eq.f32.partialorder %v1824_v5, 8.507059e+37 }
0x1a54   :  { %v2957_v57 = vpop.eup %2956 }
0x1a55   :  { %v1816_v58 = vmul.f32 %v2957_v57, %v1813_v56  ;;  %vm1821_vm3 = vweird.f32 %v2957_v57  ;;  %v2959_v8 = vpop.eup %2958 }
0x1a56   :  { %vm1822_vm5 = vmor %vm1820_vm4, %vm1821_vm3  ;;  %v1631_v12 = vadd.f32 1.0, %v2959_v8  ;;  %v2961_v6 = vpop.eup %2960 }
0x1a57   :  { %v1817_v59 = vsub.f32 1.0, %v1816_v58  ;;  %v1632_v19 = vadd.f32 1.0, %v2961_v6 }
0x1a58   :  { %2962 = vrcp.f32 %v1631_v12  ;;  %v1644_v36 = vand.u32 2147483648, %v1631_v12  ;;  %vm1638_vm8 = vweird.f32 %v1631_v12  ;;  %v1642_v38 = vand.u32 2147483647, %v1631_v12 }
0x1a59   :  { %v1818_v61 = vmul.f32 %v2957_v57, %v1817_v59  ;;  %2964 = vrcp.f32 %v1632_v19  ;;  %v1659_v26 = vand.u32 2147483648, %v1632_v19  ;;  %vm1653_vm12 = vweird.f32 %v1632_v19 }
0x1a5a   :  { %v1645_v40 = vor.u32 1.1754944e-38, %v1644_v36  ;;  %vm1643_vm10 = vcmp.eq.f32.partialorder %v1642_v38, 8.507059e+37  ;;  %v1657_v46 = vand.u32 2147483647, %v1632_v19  ;;  %v3138_v36 = vld [vmem:[%s4018_s2 + $0x40] sm:$0xff] }
0x1a5b   :  { %v1819_v63 = vadd.f32 %v2957_v57, %v1818_v61  ;;  %v1660_v49 = vor.u32 1.1754944e-38, %v1659_v26  ;;  %v2759_v61 = vmul.f32 -1.442695, %v1806_v53 }
0x1a5c   :  { %vm1658_vm14 = vcmp.eq.f32.partialorder %v1657_v46, 8.507059e+37 }
0x1a5d   :  { %v1823_v34 = vsel %vm1822_vm5, %v2957_v57, %v1819_v63 }
0x1a5e   :  { %v3606_v18 = vsel %vm1825_vm6, %v1827_v10, %v1823_v34  ;;  %v2963_v9 = vpop.eup %2962 }
0x1a5f   :  { %v1634_v22 = vmul.f32 %v2963_v9, %v1631_v12  ;;  %v2965_v29 = vpop.eup %2964  ;;  %vm1639_vm7 = vweird.f32 %v2963_v9  ;;  %v1847_v20 = vmul.f32 %v3606_v18, %v3552_v13 }
0x1a60   :  { %v1649_v37 = vmul.f32 %v2965_v29, %v1632_v19  ;;  %vm1640_vm9 = vmor %vm1638_vm8, %vm1639_vm7  ;;  %vm1654_vm11 = vweird.f32 %v2965_v29 }
0x1a61   :  { %v1635_v23 = vsub.f32 1.0, %v1634_v22  ;;  %vm1655_vm13 = vmor %vm1653_vm12, %vm1654_vm11 }
0x1a62   :  { %v1650_v35 = vsub.f32 1.0, %v1649_v37 }
0x1a63   :  { %v1636_v30 = vmul.f32 %v2963_v9, %v1635_v23 }
0x1a64   :  { %v1651_v39 = vmul.f32 %v2965_v29, %v1650_v35  ;;  %v3137_v35 = vld [vmem:[%s4018_s2 + $0x48] sm:$0xff] }
0x1a65   :  { %v1637_v33 = vadd.f32 %v2963_v9, %v1636_v30 }
0x1a66   :  { %v1652_v25 = vadd.f32 %v2965_v29, %v1651_v39 }
0x1a67   :  { %v1641_v14 = vsel %vm1640_vm9, %v2963_v9, %v1637_v33 }
0x1a68   :  { %v1646_v43 = vsel %vm1643_vm10, %v1645_v40, %v1641_v14  ;;  %v1656_v2 = vsel %vm1655_vm13, %v2965_v29, %v1652_v25 }
0x1a69   :  { %v1661_v3 = vsel %vm1658_vm14, %v1660_v49, %v1656_v2  ;;  %v1665_v17 = vmul.f32 %v1646_v43, %v3548_v11 }
0x1a6a   :  { %v1666_v56 = vmul.f32 %v1661_v3, %v3564_v28 }
0x1a95   :  { %v1852_v62 = vpop.permute.xlu2 %1851 }
0x1a96   :  { %v1857_v16 = vmul.f32 %v1852_v62, %v3606_v18 }
0x1a98   :  { %1861 = vrot.lane.b32.xlu2 %v1857_v16, %s3168_s30 }
0x1ab5   :  { %v1670_v27 = vpop.permute.xlu0 %1669 }
0x1ab6   :  { %v1675_v44 = vmul.f32 %v1670_v27, %v1646_v43 }
0x1ab8   :  { %1679 = vrot.lane.b32.xlu0 %v1675_v44, %s3168_s30 }
0x1abd   :  { %v1672_v50 = vpop.permute.xlu1 %1671 }
0x1abe   :  { %v1676_v32 = vmul.f32 %v1672_v50, %v1661_v3 }
0x1ac0   :  { %1681 = vrot.lane.b32.xlu1 %v1676_v32, %s3168_s30 }
0x1af2   :  { %v1862_v21 = vpop.permute.xlu2 %1861 }
0x1af3   :  { %v3614_v51 = vadd.f32 %v1862_v21, %v1847_v20 }
0x1af5   :  { %2966 = vtanh.f32 %v3614_v51 }
0x1af6   :  { %2968 = vtanh.f32 %v1806_v53 }
0x1afb   :  { %v2967_v1 = vpop.eup %2966 }
0x1afc   :  { %1873 = vrot.lane.b32.xlu2 %v2967_v1, %s3169_s5  ;;  %v2969_v54 = vpop.eup %2968 }
0x1b04   :  { %1853 = vrot.lane.b32.xlu2 %v2969_v54, %s3167_s29 }
0x1b2a   :  { %v1680_v13 = vpop.permute.xlu0 %1679 }
0x1b2b   :  { %v3621_v55 = vadd.f32 %v1680_v13, %v1665_v17 }
0x1b2d   :  { %2970 = vtanh.f32 %v3621_v55 }
0x1b32   :  { %v1682_v57 = vpop.permute.xlu1 %1681 }
0x1b33   :  { %v2971_v58 = vpop.eup %2970  ;;  %v3625_v59 = vadd.f32 %v1682_v57, %v1666_v56 }
0x1b34   :  { %1691 = vrot.lane.b32.xlu0 %v2971_v58, %s3169_s5 }
0x1b35   :  { %2972 = vtanh.f32 %v3625_v59 }
0x1b36   :  { %2974 = vpow2.f32 %v2759_v61 }
0x1b3b   :  { %v2973_v60 = vpop.eup %2972 }
0x1b3c   :  { %1693 = vrot.lane.b32.xlu1 %v2973_v60, %s3169_s5  ;;  %v2975_v11 = vpop.eup %2974 }
0x1b3d   :  { %v1814_v63 = vadd.f32 1.0, %v2975_v11 }
0x1b3f   :  { %2976 = vrcp.f32 %v1814_v63  ;;  %v1841_v19 = vand.u32 2147483648, %v1814_v63  ;;  %vm1835_vm0 = vweird.f32 %v1814_v63  ;;  %v1839_v9 = vand.u32 2147483647, %v1814_v63 }
0x1b41   :  { %v1842_v29 = vor.u32 1.1754944e-38, %v1841_v19  ;;  %vm1840_vm3 = vcmp.eq.f32.partialorder %v1839_v9, 8.507059e+37 }
0x1b45   :  { %v2977_v0 = vpop.eup %2976 }
0x1b46   :  { %v1831_v4 = vmul.f32 %v2977_v0, %v1814_v63  ;;  %vm1836_vm15 = vweird.f32 %v2977_v0 }
0x1b47   :  { %vm1837_vm2 = vmor %vm1835_vm0, %vm1836_vm15 }
0x1b48   :  { %v1832_v28 = vsub.f32 1.0, %v1831_v4 }
0x1b4a   :  { %v1833_v10 = vmul.f32 %v2977_v0, %v1832_v28 }
0x1b4c   :  { %v1834_v16 = vadd.f32 %v2977_v0, %v1833_v10 }
0x1b4e   :  { %v1838_v22 = vsel %vm1837_vm2, %v2977_v0, %v1834_v16 }
0x1b4f   :  { %v1843_v30 = vsel %vm1840_vm3, %v1842_v29, %v1838_v22 }
0x1b50   :  { %v1848_v39 = vmul.f32 %v1843_v30, %v3559_v24  ;;  %v43_v24 = vld [vmem:[%s4016_s0 + $0x38] sm:$0xff] }
0x1b56   :  { %v1874_v34 = vpop.permute.xlu2 %1873 }
0x1b57   :  { %v1879_v62 = vmul.f32 %v1874_v34, %v3606_v18  ;;  %v42_v18 = vld [vmem:[%s4016_s0 + $0x30] sm:$0xff]  ;;  %s3180_s0 = smov [#allocation3]  }
0x1b58   :  { %2718 = vmatmul.msk.f32.gmra.mxu0 %vm62_vm1, %v42_v18  ;;  %s2676_s10 = sshll.u32 %s3180_s0, 4  ;;  %s2677_s10 = int_to_ptr.vmem [resolvable:$true] %s2676_s10 }
0x1b5e   :  { %v1854_v23 = vpop.permute.xlu2 %1853 }
0x1b5f   :  { %v1858_v37 = vmul.f32 %v1854_v23, %v1843_v30 }
0x1b60   :  { %2719 = vmatmul.msk.f32.gmra.mxu0 %vm62_vm1, %v43_v24 }
0x1ba6   :  { %v1692_v5 = vpop.permute.xlu0 %1691 }
0x1ba7   :  { %v1697_v8 = vmul.f32 %v1692_v5, %v1646_v43 }
0x1ba9   :  { %1701 = vrot.lane.b32.xlu0 %v1697_v8, %s3170_s6 }
0x1bae   :  { %v1694_v12 = vpop.permute.xlu1 %1693 }
0x1baf   :  { %v1698_v6 = vmul.f32 %v1694_v12, %v1661_v3 }
0x1bb1   :  { %1703 = vrot.lane.b32.xlu1 %v1698_v6, %s3170_s6  ;;  %1906 = vrot.lane.b32.xlu0 %v1879_v62, %s3170_s6 }
0x1bb9   :  { %1863 = vrot.lane.b32.xlu1 %v1858_v37, %s3168_s30 }
0x1bd5   :  { %v817_v26 = vpop.f32.mrf.mxu0 }
0x1bd6   :  { %v818_v46 = vadd.f32 %v817_v26, %v3382_v42 }
0x1bdd   :  { %v820_v26 = vpop.f32.mrf.mxu0 }
0x1bde   :  { %v821_v24 = vadd.f32 %v820_v26, %v3382_v42 }
0x1c1b   :  { %v1702_v33 = vpop.permute.xlu0 %1701 }
0x1c1c   :  { %2754 = vmatmul.msk.f32.vlgmr.msra.gmra.mxu3 %vm62_vm1, %v1702_v33  ;;  %2760 = vmatmul.msk.f32.vlgmr.msrb.gmra.mxu2 %vm62_vm1, %v1702_v33 }
0x1c1d   :  { %2242 = vmatpush.msra.mxu3 %v3137_v35 }
0x1c1f   :  { %2243 = vmatpush.msra.mxu3 %v3138_v36 }
0x1c23   :  { %v1704_v38 = vpop.permute.xlu1 %1703  ;;  %v1907_v14 = vpop.permute.xlu0 %1906 }
0x1c24   :  { %2755 = vmatmul.msk.f32.gmra.mxu3 %vm62_vm1, %v1704_v38  ;;  %2761 = vmatmul.msk.f32.gmra.mxu2 %vm62_vm1, %v1704_v38 }
0x1c25   :  { %2768 = vmatmul.msk.f32.vlgmr.msrb.gmra.mxu1 %vm62_vm1, %v1907_v14 }
0x1c2b   :  { %v1864_v40 = vpop.permute.xlu1 %1863 }
0x1c2c   :  { %v3651_v27 = vadd.f32 %v1864_v40, %v1848_v39  ;;  %2762 = vmatmul.msk.f32.vlgmr.msrb.gmra.mxu3 %vm62_vm1, %v1907_v14 }
0x1c2e   :  { %2978 = vtanh.f32 %v3651_v27 }
0x1c34   :  { %v2979_v43 = vpop.eup %2978 }
0x1c35   :  { %1875 = vrot.lane.b32.xlu2 %v2979_v43, %s3169_s5 }
0x1c8f   :  { %v1876_v44 = vpop.permute.xlu2 %1875 }
0x1c90   :  { %v1880_v25 = vmul.f32 %v1876_v44, %v1843_v30 }
0x1c92   :  { %1908 = vrot.lane.b32.xlu0 %v1880_v25, %s3170_s6 }
0x1c9f   :  { %v3658_v2 = vpop.f32.mrf.mxu3  ;;  %v1898_v20 = vpop.f32.mrf.mxu2 }
0x1ca2   :  { %v2113_v49 = vpop.f32.mrf.mxu1 }
0x1ca3   :  { %v2119_v50 = vadd.f32 %v2113_v49, %v818_v46 }
0x1ca5   :  { %2980 = vtanh.f32 %v2119_v50  ;;  %v2770_v53 = vmul.f32 -1.442695, %v2119_v50 }
0x1ca7   :  { %v3664_v3 = vpop.f32.mrf.mxu3  ;;  %v1901_v14 = vpop.f32.mrf.mxu2 }
0x1cab   :  { %v2981_v32 = vpop.eup %2980 }
0x1cac   :  { %2165 = vrot.lane.b32.xlu2 %v2981_v32, %s3167_s29 }
0x1caf   :  { %v1931_v7 = vpop.f32.mrf.mxu3 }
0x1cb0   :  { %v1932_v21 = vadd.f32 %v1931_v7, %v1898_v20 }
0x1cb2   :  { %v1937_v52 = vadd.f32 %v1932_v21, %v3442_v47 }
0x1cb4   :  { %2982 = vtanh.f32 %v1937_v52  ;;  %v2764_v60 = vmul.f32 -1.442695, %v1937_v52 }
0x1cb5   :  { %2984 = vpow2.f32 %v2770_v53 }
0x1cba   :  { %v2983_v41 = vpop.eup %2982 }
0x1cbb   :  { %1983 = vrot.lane.b32.xlu1 %v2983_v41, %s3167_s29  ;;  %v2985_v1 = vpop.eup %2984 }
0x1cbc   :  { %v2127_v54 = vadd.f32 1.0, %v2985_v1 }
0x1cbe   :  { %2986 = vrcp.f32 %v2127_v54  ;;  %v2140_v61 = vand.u32 2147483648, %v2127_v54  ;;  %vm2134_vm5 = vweird.f32 %v2127_v54  ;;  %v2138_v11 = vand.u32 2147483647, %v2127_v54 }
0x1cbf   :  { %2988 = vpow2.f32 %v2764_v60 }
0x1cc0   :  { %v2141_v4 = vor.u32 1.1754944e-38, %v2140_v61  ;;  %vm2139_vm7 = vcmp.eq.f32.partialorder %v2138_v11, 8.507059e+37 }
0x1cc4   :  { %v2987_v17 = vpop.eup %2986 }
0x1cc5   :  { %v2130_v13 = vmul.f32 %v2987_v17, %v2127_v54  ;;  %vm2135_vm4 = vweird.f32 %v2987_v17  ;;  %v2989_v34 = vpop.eup %2988 }
0x1cc6   :  { %vm2136_vm6 = vmor %vm2134_vm5, %vm2135_vm4  ;;  %v1945_v10 = vadd.f32 1.0, %v2989_v34 }
0x1cc7   :  { %v2131_v56 = vsub.f32 1.0, %v2130_v13 }
0x1cc8   :  { %2990 = vrcp.f32 %v1945_v10  ;;  %v1958_v9 = vand.u32 2147483648, %v1945_v10  ;;  %vm1952_vm9 = vweird.f32 %v1945_v10  ;;  %v1956_v22 = vand.u32 2147483647, %v1945_v10 }
0x1cc9   :  { %v2132_v57 = vmul.f32 %v2987_v17, %v2131_v56 }
0x1cca   :  { %v1959_v29 = vor.u32 1.1754944e-38, %v1958_v9  ;;  %vm1957_vm11 = vcmp.eq.f32.partialorder %v1956_v22, 8.507059e+37 }
0x1ccb   :  { %v2133_v58 = vadd.f32 %v2987_v17, %v2132_v57 }
0x1ccd   :  { %v2137_v63 = vsel %vm2136_vm6, %v2987_v17, %v2133_v58 }
0x1cce   :  { %v3671_v28 = vsel %vm2139_vm7, %v2141_v4, %v2137_v63  ;;  %v2991_v12 = vpop.eup %2990 }
0x1ccf   :  { %v1948_v62 = vmul.f32 %v2991_v12, %v1945_v10  ;;  %vm1953_vm8 = vweird.f32 %v2991_v12  ;;  %v2161_v33 = vmul.f32 %v3671_v28, %v3614_v51 }
0x1cd0   :  { %vm1954_vm10 = vmor %vm1952_vm9, %vm1953_vm8 }
0x1cd1   :  { %v1949_v16 = vsub.f32 1.0, %v1948_v62 }
0x1cd3   :  { %v1950_v6 = vmul.f32 %v2991_v12, %v1949_v16 }
0x1cd5   :  { %v1951_v19 = vadd.f32 %v2991_v12, %v1950_v6 }
0x1cd7   :  { %v1955_v23 = vsel %vm1954_vm10, %v2991_v12, %v1951_v19 }
0x1cd8   :  { %v3675_v37 = vsel %vm1957_vm11, %v1959_v29, %v1955_v23 }
0x1cd9   :  { %v1979_v25 = vmul.f32 %v3675_v37, %v3621_v55 }
0x1d04   :  { %v1909_v0 = vpop.permute.xlu0 %1908 }
0x1d05   :  { %2763 = vmatmul.msk.f32.gmra.mxu3 %vm62_vm1, %v1909_v0  ;;  %2769 = vmatmul.msk.f32.gmra.mxu1 %vm62_vm1, %v1909_v0 }
0x1d06   :  { %v2166_v5 = vpop.permute.xlu2 %2165 }
0x1d07   :  { %v2171_v8 = vmul.f32 %v2166_v5, %v3671_v28 }
0x1d09   :  { %2175 = vrot.lane.b32.xlu1 %v2171_v8, %s3168_s30 }
0x1d2d   :  { %v1984_v30 = vpop.permute.xlu1 %1983 }
0x1d2e   :  { %v1989_v18 = vmul.f32 %v1984_v30, %v3675_v37 }
0x1d30   :  { %1993 = vrot.lane.b32.xlu0 %v1989_v18, %s3168_s30 }
0x1d7b   :  { %v2176_v35 = vpop.permute.xlu1 %2175 }
0x1d7c   :  { %v2181_v36 = vadd.f32 %v2176_v35, %v2161_v33 }
0x1d7e   :  { %2992 = vtanh.f32 %v2181_v36 }
0x1d82   :  { %v2116_v49 = vpop.f32.mrf.mxu1 }
0x1d83   :  { %v2120_v50 = vadd.f32 %v2116_v49, %v821_v24 }
0x1d84   :  { %v2993_v38 = vpop.eup %2992 }
0x1d85   :  { %2187 = vrot.lane.b32.xlu0 %v2993_v38, %s3169_s5  ;;  %v2771_v55 = vmul.f32 -1.442695, %v2120_v50 }
0x1d88   :  { %v1934_v39 = vpop.f32.mrf.mxu3 }
0x1d89   :  { %v1935_v40 = vadd.f32 %v1934_v39, %v1901_v14 }
0x1d8b   :  { %v1938_v43 = vadd.f32 %v1935_v40, %v3442_v47 }
0x1d8d   :  { %2994 = vtanh.f32 %v1938_v43  ;;  %v2765_v7 = vmul.f32 -1.442695, %v1938_v43 }
0x1d93   :  { %v2995_v44 = vpop.eup %2994 }
0x1d94   :  { %1985 = vrot.lane.b32.xlu1 %v2995_v44, %s3167_s29 }
0x1da2   :  { %v1994_v51 = vpop.permute.xlu0 %1993 }
0x1da3   :  { %v3686_v46 = vadd.f32 %v1994_v51, %v1979_v25 }
0x1da5   :  { %2996 = vtanh.f32 %v3686_v46 }
0x1da6   :  { %2998 = vtanh.f32 %v2120_v50 }
0x1da7   :  { %3000 = vpow2.f32 %v2765_v7 }
0x1da8   :  { %3002 = vpow2.f32 %v2771_v55 }
0x1dab   :  { %v2997_v32 = vpop.eup %2996 }
0x1dac   :  { %2005 = vrot.lane.b32.xlu2 %v2997_v32, %s3169_s5  ;;  %v2999_v20 = vpop.eup %2998 }
0x1dad   :  { %v3001_v21 = vpop.eup %3000 }
0x1dae   :  { %v1946_v52 = vadd.f32 1.0, %v3001_v21  ;;  %v3003_v41 = vpop.eup %3002 }
0x1daf   :  { %v2128_v42 = vadd.f32 1.0, %v3003_v41 }
0x1db0   :  { %3004 = vrcp.f32 %v1946_v52  ;;  %v1973_v11 = vand.u32 2147483648, %v1946_v52  ;;  %vm1967_vm13 = vweird.f32 %v1946_v52  ;;  %v1971_v63 = vand.u32 2147483647, %v1946_v52 }
0x1db1   :  { %3006 = vrcp.f32 %v2128_v42  ;;  %v2155_v16 = vand.u32 2147483648, %v2128_v42  ;;  %vm2149_vm2 = vweird.f32 %v2128_v42  ;;  %v2153_v6 = vand.u32 2147483647, %v2128_v42 }
0x1db2   :  { %v1974_v5 = vor.u32 1.1754944e-38, %v1973_v11  ;;  %vm1972_vm15 = vcmp.eq.f32.partialorder %v1971_v63, 8.507059e+37 }
0x1db3   :  { %v2156_v9 = vor.u32 1.1754944e-38, %v2155_v16  ;;  %vm2154_vm4 = vcmp.eq.f32.partialorder %v2153_v6, 8.507059e+37 }
0x1db4   :  { %2167 = vrot.lane.b32.xlu2 %v2999_v20, %s3167_s29 }
0x1db6   :  { %v3005_v53 = vpop.eup %3004 }
0x1db7   :  { %v1963_v1 = vmul.f32 %v3005_v53, %v1946_v52  ;;  %v3007_v13 = vpop.eup %3006  ;;  %vm1968_vm12 = vweird.f32 %v3005_v53 }
0x1db8   :  { %v2145_v58 = vmul.f32 %v3007_v13, %v2128_v42  ;;  %vm1969_vm14 = vmor %vm1967_vm13, %vm1968_vm12  ;;  %vm2150_vm0 = vweird.f32 %v3007_v13 }
0x1db9   :  { %v1964_v17 = vsub.f32 1.0, %v1963_v1  ;;  %vm2151_vm3 = vmor %vm2149_vm2, %vm2150_vm0 }
0x1dba   :  { %v2146_v61 = vsub.f32 1.0, %v2145_v58 }
0x1dbb   :  { %v1965_v57 = vmul.f32 %v3005_v53, %v1964_v17 }
0x1dbc   :  { %v2147_v4 = vmul.f32 %v3007_v13, %v2146_v61 }
0x1dbd   :  { %v1966_v60 = vadd.f32 %v3005_v53, %v1965_v57 }
0x1dbe   :  { %v2148_v62 = vadd.f32 %v3007_v13, %v2147_v4 }
0x1dbf   :  { %v1970_v0 = vsel %vm1969_vm14, %v3005_v53, %v1966_v60 }
0x1dc0   :  { %v1975_v34 = vsel %vm1972_vm15, %v1974_v5, %v1970_v0  ;;  %v2152_v19 = vsel %vm2151_vm3, %v3007_v13, %v2148_v62 }
0x1dc1   :  { %v2157_v22 = vsel %vm2154_vm4, %v2156_v9, %v2152_v19  ;;  %v1980_v30 = vmul.f32 %v1975_v34, %v3625_v59 }
0x1dc2   :  { %v2162_v38 = vmul.f32 %v2157_v22, %v3651_v27 }
0x1df7   :  { %v2188_v54 = vpop.permute.xlu0 %2187 }
0x1df8   :  { %v2193_v56 = vmul.f32 %v2188_v54, %v3671_v28 }
0x1dfa   :  { %2220 = vrot.lane.b32.xlu1 %v2193_v56, %s3170_s6 }
0x1e06   :  { %v1986_v8 = vpop.permute.xlu1 %1985  ;;  %v2006_v10 = vpop.permute.xlu2 %2005 }
0x1e07   :  { %v1990_v12 = vmul.f32 %v1986_v8, %v1975_v34  ;;  %v2011_v28 = vmul.f32 %v2006_v10, %v3675_v37  ;;  %v3139_v10 = vld [vmem:[%s4018_s2 + $0x90] sm:$0xff] }
0x1e09   :  { %1995 = vrot.lane.b32.xlu2 %v1990_v12, %s3168_s30  ;;  %2015 = vrot.lane.b32.xlu0 %v2011_v28, %s3170_s6 }
0x1e0e   :  { %v2168_v23 = vpop.permute.xlu2 %2167 }
0x1e0f   :  { %v2172_v29 = vmul.f32 %v2168_v23, %v2157_v22 }
0x1e11   :  { %2177 = vrot.lane.b32.xlu0 %v2172_v29, %s3168_s30 }
0x1e63   :  { %v1996_v37 = vpop.permute.xlu2 %1995 }
0x1e64   :  { %v3699_v18 = vadd.f32 %v1996_v37, %v1980_v30 }
0x1e66   :  { %3008 = vtanh.f32 %v3699_v18 }
0x1e6c   :  { %v3009_v33 = vpop.eup %3008  ;;  %v2221_v35 = vpop.permute.xlu1 %2220 }
0x1e6d   :  { %2774 = vmatmul.msk.f32.vlgmr.msra.gmra.mxu3 %vm62_vm1, %v2221_v35  ;;  %2007 = vrot.lane.b32.xlu1 %v3009_v33, %s3169_s5 }
0x1e7b   :  { %v2016_v36 = vpop.permute.xlu0 %2015 }
0x1e7c   :  { %2766 = vmatmul.msk.f32.vlgmr.msrb.gmra.mxu0 %vm62_vm1, %v2016_v36  ;;  %2772 = vmatmul.msk.f32.vlgmr.msra.gmra.mxu2 %vm62_vm1, %v2016_v36 }
0x1e83   :  { %v2178_v14 = vpop.permute.xlu0 %2177 }
0x1e84   :  { %v2182_v59 = vadd.f32 %v2178_v14, %v2162_v38 }
0x1e86   :  { %3010 = vtanh.f32 %v2182_v59  ;;  %v3172_v59 = vmov 0  }
0x1e87   :  { %2797 = vset.pattern.permute.xlu2 %v3172_v59  ;;  %2798 = vset.pattern.permute.xlu0 %v3172_v59 }
0x1e88   :  { %2799 = vset.pattern.permute.xlu1 %v3172_v59  ;;  %v50_v59 = vld [vmem:[%s4017_s1 + $0x30] sm:$0xff] }
0x1e8c   :  { %v3011_v39 = vpop.eup %3010 }
0x1e8d   :  { %2189 = vrot.lane.b32.xlu2 %v3011_v39, %s3169_s5 }
0x1edf   :  { %v2008_v40 = vpop.permute.xlu1 %2007 }
0x1ee0   :  { %v2012_v43 = vmul.f32 %v2008_v40, %v1975_v34 }
0x1ee2   :  { %2017 = vrot.lane.b32.xlu0 %v2012_v43, %s3170_s6 }
0x1ee7   :  { %v2190_v44 = vpop.permute.xlu2 %2189 }
0x1ee8   :  { %v2194_v25 = vmul.f32 %v2190_v44, %v2157_v22 }
0x1eea   :  { %2222 = vrot.lane.b32.xlu1 %v2194_v25, %s3170_s6 }
0x1ef0   :  { %v2245_v26 = vpop.f32.mrf.mxu3 }
0x1eff   :  { %v2212_v51 = vpop.f32.mrf.mxu2 }
0x1f00   :  { %v2246_v24 = vadd.f32 %v2245_v26, %v2212_v51 }
0x1f02   :  { %v2251_v49 = vadd.f32 %v2246_v24, %v3442_v47  ;;  %v44_v24 = vld [vmem:[%s4017_s1] sm:$0xff] }
0x1f04   :  { %3012 = vtanh.f32 %v2251_v49  ;;  %v2776_v50 = vmul.f32 -1.442695, %v2251_v49 }
0x1f06   :  { %3014 = vpow2.f32 %v2776_v50 }
0x1f0a   :  { %v3013_v27 = vpop.eup %3012 }
0x1f0b   :  { %2297 = vrot.lane.b32.xlu2 %v3013_v27, %s3167_s29 }
0x1f0c   :  { %v3015_v32 = vpop.eup %3014 }
0x1f0d   :  { %v2259_v20 = vadd.f32 1.0, %v3015_v32 }
0x1f0f   :  { %3016 = vrcp.f32 %v2259_v20  ;;  %v2272_v1 = vand.u32 2147483648, %v2259_v20  ;;  %vm2266_vm6 = vweird.f32 %v2259_v20  ;;  %v2270_v54 = vand.u32 2147483647, %v2259_v20 }
0x1f11   :  { %v2273_v13 = vor.u32 1.1754944e-38, %v2272_v1  ;;  %vm2271_vm8 = vcmp.eq.f32.partialorder %v2270_v54, 8.507059e+37  ;;  %v823_v54 = vlaneseq }
0x1f15   :  { %v3017_v7 = vpop.eup %3016 }
0x1f16   :  { %v2262_v55 = vmul.f32 %v3017_v7, %v2259_v20  ;;  %vm2267_vm5 = vweird.f32 %v3017_v7 }
0x1f17   :  { %vm2268_vm7 = vmor %vm2266_vm6, %vm2267_vm5 }
0x1f18   :  { %v2263_v52 = vsub.f32 1.0, %v2262_v55 }
0x1f1a   :  { %v2264_v41 = vmul.f32 %v3017_v7, %v2263_v52 }
0x1f1c   :  { %v2265_v53 = vadd.f32 %v3017_v7, %v2264_v41 }
0x1f1e   :  { %v2269_v17 = vsel %vm2268_vm7, %v3017_v7, %v2265_v53  ;;  %vm2412_vm7 = vcmask 7168  }
0x1f1f   :  { %v2274_v56 = vsel %vm2271_vm8, %v2273_v13, %v2269_v17  ;;  %vm2418_vm8 = vcmask 23552  }
0x1f20   :  { %v2293_v60 = vmul.f32 %v2274_v56, %v3686_v46  ;;  %v3723_v46 = vperm.slane %v3139_v10, 5 }
0x1f22   :  { %v1103_v12 = vadd.f32 %v3524_v45, %v3723_v46  ;;  %v1413_v39 = vadd.f32 %v3596_v15, %v3723_v46  ;;  %v1727_v20 = vadd.f32 %v3658_v2, %v3723_v46  ;;  %v3747_v2 = vand.u32 127, %v823_v54 }
0x1f24   :  { %v1108_v28 = vsel %vm62_vm1, %v1103_v12, -inf  ;;  %v1418_v40 = vsel %vm62_vm1, %v1413_v39, -inf  ;;  %v1732_v7 = vsel %vm62_vm1, %v1727_v20, -inf }
0x1f54   :  { %v2018_v21 = vpop.permute.xlu0 %2017 }
0x1f55   :  { %2767 = vmatmul.msk.f32.gmra.mxu0 %vm62_vm1, %v2018_v21  ;;  %2773 = vmatmul.msk.f32.gmra.mxu2 %vm62_vm1, %v2018_v21 }
0x1f5c   :  { %v2223_v42 = vpop.permute.xlu1 %2222 }
0x1f5d   :  { %2775 = vmatmul.msk.f32.gmra.mxu3 %vm62_vm1, %v2223_v42  ;;  %v2040_v42 = vpop.f32.mrf.mxu0 }
0x1f5e   :  { %v2041_v53 = vadd.f32 %v2040_v42, %v3723_v46 }
0x1f60   :  { %v2046_v17 = vsel %vm62_vm1, %v2041_v53, -inf }
0x1f65   :  { %v2298_v57 = vpop.permute.xlu2 %2297 }
0x1f66   :  { %v2303_v58 = vmul.f32 %v2298_v57, %v2274_v56 }
0x1f68   :  { %2307 = vrot.lane.b32.xlu0 %v2303_v58, %s3168_s30 }
0x1fd8   :  { %v2215_v63 = vpop.f32.mrf.mxu2 }
0x1fda   :  { %v2308_v61 = vpop.permute.xlu0 %2307 }
0x1fdb   :  { %v2313_v11 = vadd.f32 %v2308_v61, %v2293_v60 }
0x1fdd   :  { %3018 = vtanh.f32 %v2313_v11  ;;  %v46_v11 = vld [vmem:[%s4017_s1 + $0x10] sm:$0xff] }
0x1fe0   :  { %v2248_v0 = vpop.f32.mrf.mxu3 }
0x1fe1   :  { %v2249_v4 = vadd.f32 %v2248_v0, %v2215_v63  ;;  %v48_v63 = vld [vmem:[%s4017_s1 + $0x20] sm:$0xff] }
0x1fe3   :  { %v3019_v5 = vpop.eup %3018  ;;  %v2252_v8 = vadd.f32 %v2249_v4, %v3442_v47 }
0x1fe4   :  { %2319 = vrot.lane.b32.xlu1 %v3019_v5, %s3169_s5  ;;  %v1106_v5 = vadd.f32 %v3526_v48, %v3723_v46 }
0x1fe5   :  { %3020 = vtanh.f32 %v2252_v8  ;;  %v2777_v62 = vmul.f32 -1.442695, %v2252_v8 }
0x1fe6   :  { %v1111_v8 = vsel %vm62_vm1, %v1106_v5, -inf }
0x1fe7   :  { %3022 = vpow2.f32 %v2777_v62 }
0x1feb   :  { %v3021_v34 = vpop.eup %3020 }
0x1fec   :  { %2299 = vrot.lane.b32.xlu2 %v3021_v34, %s3167_s29 }
0x1fed   :  { %v3023_v47 = vpop.eup %3022 }
0x1fee   :  { %v2260_v16 = vadd.f32 1.0, %v3023_v47 }
0x1ff0   :  { %3024 = vrcp.f32 %v2260_v16  ;;  %v2287_v29 = vand.u32 2147483648, %v2260_v16  ;;  %vm2281_vm10 = vweird.f32 %v2260_v16  ;;  %v2285_v30 = vand.u32 2147483647, %v2260_v16 }
0x1ff2   :  { %v2288_v45 = vor.u32 1.1754944e-38, %v2287_v29  ;;  %vm2286_vm12 = vcmp.eq.f32.partialorder %v2285_v30, 8.507059e+37 }
0x1ff6   :  { %v3025_v6 = vpop.eup %3024 }
0x1ff7   :  { %v2277_v19 = vmul.f32 %v3025_v6, %v2260_v16  ;;  %vm2282_vm9 = vweird.f32 %v3025_v6 }
0x1ff8   :  { %vm2283_vm11 = vmor %vm2281_vm10, %vm2282_vm9  ;;  %vm2415_vm9 = vcmask 15360   ;;  %vm2424_vm10 = vcmask 39936  }
0x1ff9   :  { %v2278_v9 = vsub.f32 1.0, %v2277_v19 }
0x1ffb   :  { %v2279_v22 = vmul.f32 %v3025_v6, %v2278_v9 }
0x1ffd   :  { %v2280_v23 = vadd.f32 %v3025_v6, %v2279_v22 }
0x1fff   :  { %v2284_v37 = vsel %vm2283_vm11, %v3025_v6, %v2280_v23  ;;  %v2043_v23 = vpop.f32.mrf.mxu0  ;;  %vm2421_vm11 = vcmask 31744  }
0x2000   :  { %v2289_v35 = vsel %vm2286_vm12, %v2288_v45, %v2284_v37 }
0x2001   :  { %v2294_v49 = vmul.f32 %v2289_v35, %v3699_v18 }
0x2015   :  { %1109 = vmax.xlane.f32.xlu2 %v1108_v28 }
0x2046   :  { %v2300_v33 = vpop.permute.xlu2 %2299 }
0x2047   :  { %v2304_v36 = vmul.f32 %v2300_v33, %v2289_v35 }
0x2049   :  { %2309 = vrot.lane.b32.xlu1 %v2304_v36, %s3168_s30  ;;  %s2678_s30 = sshll.u32 %s4020_s4, 4  ;;  %s2679_s30 = int_to_ptr.hbm [resolvable:$true] %s2678_s30 }
0x2056   :  { %v2320_v38 = vpop.permute.xlu1 %2319 }
0x2057   :  { %v2325_v14 = vmul.f32 %v2320_v38, %v2274_v56 }
0x2059   :  { %2329 = vrot.lane.b32.xlu0 %v2325_v14, %s3170_s6  ;;  %v1416_v14 = vadd.f32 %v3599_v31, %v3723_v46 }
0x2083   :  { %1419 = vmax.xlane.f32.xlu0 %v1418_v40  ;;  %v1421_v40 = vsel %vm62_vm1, %v1416_v14, -inf }
0x2088   :  { %v1110_v43 = vpop.xlane.xlu2 %1109 }
0x2089   :  { %v1114_v44 = vsub.f32 %v1103_v12, %v1110_v43  ;;  %v45_v43 = vld [vmem:[%s4017_s1 + $0x8] sm:$0xff] }
0x208b   :  { %v1116_v25 = vmul.f32 1.442695, %v1114_v44 }
0x208d   :  { %3026 = vpow2.f32 %v1116_v25  ;;  %v2044_v25 = vadd.f32 %v2043_v23, %v3723_v46 }
0x208f   :  { %v2049_v31 = vsel %vm62_vm1, %v2044_v25, -inf }
0x2093   :  { %v3027_v26 = vpop.eup %3026 }
0x2094   :  { %v1120_v51 = vsel %vm62_vm1, %v3027_v26, 0.0 }
0x2095   :  { %1121 = vadd.xlane.f32.xlu2 %v1120_v51 }
0x20ad   :  { %1133 = vperm.xlu2 %2797, %v44_v24  }
0x20bb   :  { %v2310_v27 = vpop.permute.xlu1 %2309 }
0x20bc   :  { %v2314_v15 = vadd.f32 %v2310_v27, %v2294_v49 }
0x20be   :  { %3028 = vtanh.f32 %v2314_v15 }
0x20c4   :  { %v3029_v50 = vpop.eup %3028 }
0x20c5   :  { %2321 = vrot.lane.b32.xlu1 %v3029_v50, %s3169_s5 }
0x20cb   :  { %v2330_v32 = vpop.permute.xlu0 %2329 }
0x20cc   :  { %2778 = vmatmul.msk.f32.vlgmr.msra.gmra.mxu0 %vm62_vm1, %v2330_v32 }
0x20ef   :  { %1733 = vmax.xlane.f32.xlu1 %v1732_v7 }
0x20f6   :  { %v1420_v55 = vpop.xlane.xlu0 %1419 }
0x20f7   :  { %v1424_v21 = vsub.f32 %v1413_v39, %v1420_v55 }
0x20f9   :  { %v1426_v52 = vmul.f32 1.442695, %v1424_v21 }
0x20fb   :  { %3030 = vpow2.f32 %v1426_v52  ;;  %v1730_v52 = vadd.f32 %v3664_v3, %v3723_v46 }
0x2101   :  { %v3031_v18 = vpop.eup %3030 }
0x2102   :  { %v1430_v41 = vsel %vm62_vm1, %v3031_v18, 0.0  ;;  %v1735_v18 = vsel %vm62_vm1, %v1730_v52, -inf }
0x2103   :  { %1431 = vadd.xlane.f32.xlu0 %v1430_v41 }
0x2108   :  { %v1122_v1 = vpop.xlane.xlu2 %1121 }
0x2109   :  { %3032 = vlog2.f32 %v1122_v1 }
0x210b   :  { %2047 = vmax.xlane.f32.xlu0 %v2046_v17 }
0x210f   :  { %v3033_v13 = vpop.eup %3032 }
0x2110   :  { %v1127_v56 = vmul.f32 0.6931472, %v3033_v13  ;;  %v1134_v57 = vpop.permute.xlu2 %1133 }
0x2111   :  { %vm1138_vm13 = vcmp.eq.s32.totalorder %v3747_v2, %v1134_v57 }
0x2112   :  { %v1130_v58 = vsub.f32 %v1114_v44, %v1127_v56 }
0x2114   :  { %v1140_v60 = vsel %vm1138_vm13, %v1130_v58, 0.0  ;;  %vm2661_vm13 = vcmask 48128  }
0x2115   :  { %v1142_v61 = vsel %vm62_vm1, %v1140_v60, 0.0 }
0x2116   :  { %1143 = vadd.xlane.f32.xlu1 %v1142_v61 }
0x211f   :  { %1447 = vperm.xlu0 %2798, %v46_v11  }
0x2127   :  { %1761 = vperm.xlu0 %2798, %v48_v63  }
0x2137   :  { %v2322_v0 = vpop.permute.xlu1 %2321 }
0x2138   :  { %v2326_v4 = vmul.f32 %v2322_v0, %v2289_v35 }
0x213a   :  { %2331 = vrot.lane.b32.xlu1 %v2326_v4, %s3170_s6 }
0x2149   :  { %v2354_v35 = vpop.f32.mrf.mxu0 }
0x214a   :  { %v3769_v36 = vadd.f32 %v2354_v35, %v3723_v46 }
0x214c   :  { %v2360_v38 = vsel %vm62_vm1, %v3769_v36, -inf }
0x2151   :  { %1112 = vmax.xlane.f32.xlu0 %v1111_v8 }
0x2162   :  { %v1734_v34 = vpop.xlane.xlu1 %1733 }
0x2163   :  { %v1738_v10 = vsub.f32 %v1727_v20, %v1734_v34 }
0x2165   :  { %v1740_v12 = vmul.f32 1.442695, %v1738_v10 }
0x2167   :  { %3034 = vpow2.f32 %v1740_v12 }
0x216d   :  { %v3035_v28 = vpop.eup %3034 }
0x216e   :  { %v1744_v62 = vsel %vm62_vm1, %v3035_v28, 0.0 }
0x216f   :  { %1745 = vadd.xlane.f32.xlu2 %v1744_v62 }
0x2176   :  { %v1432_v47 = vpop.xlane.xlu0 %1431 }
0x217e   :  { %v2048_v16 = vpop.xlane.xlu0 %2047 }
0x217f   :  { %v2052_v6 = vsub.f32 %v2041_v53, %v2048_v16 }
0x2181   :  { %v2054_v19 = vmul.f32 1.442695, %v2052_v6 }
0x2183   :  { %3036 = vpow2.f32 %v2054_v19 }
0x2184   :  { %3038 = vlog2.f32 %v1432_v47 }
0x2189   :  { %v3037_v9 = vpop.eup %3036  ;;  %v1144_v39 = vpop.xlane.xlu1 %1143 }
0x218a   :  { %v3039_v22 = vpop.eup %3038  ;;  %v2058_v48 = vsel %vm62_vm1, %v3037_v9, 0.0 }
0x218b   :  { %2059 = vadd.xlane.f32.xlu1 %v2058_v48  ;;  %v1437_v29 = vmul.f32 0.6931472, %v3039_v22  ;;  %v51_v48 = vld [vmem:[%s4017_s1 + $0x38] sm:$0xff] }
0x218d   :  { %v3763_v30 = vsub.f32 %v1424_v21, %v1437_v29 }
0x218f   :  { %v3813_v47 = vadd.f32 %v3763_v30, %v1144_v39 }
0x2191   :  { %v1448_v37 = vpop.permute.xlu0 %1447  ;;  %v2428_v19 = vsub.f32 %v3813_v47, %v3813_v47 }
0x2192   :  { %vm1452_vm14 = vcmp.eq.s32.totalorder %v3747_v2, %v1448_v37 }
0x2193   :  { %v1454_v45 = vsel %vm1452_vm14, %v3763_v30, 0.0  ;;  %v2429_v9 = vmul.f32 1.442695, %v2428_v19  ;;  %vm2663_vm14 = vcmask 56320  }
0x2194   :  { %v1456_v33 = vsel %vm62_vm1, %v1454_v45, 0.0 }
0x2195   :  { %1457 = vadd.xlane.f32.xlu2 %v1456_v33 }
0x2199   :  { %v1762_v26 = vpop.permute.xlu0 %1761 }
0x219a   :  { %vm1766_vm15 = vcmp.eq.s32.totalorder %v3747_v2, %v1762_v26 }
0x219d   :  { %2361 = vmax.xlane.f32.xlu2 %v2360_v38 }
0x21a4   :  { %2075 = vperm.xlu1 %2799, %v50_v59  }
0x21a5   :  { %1422 = vmax.xlane.f32.xlu2 %v1421_v40 }
0x21ac   :  { %1136 = vperm.xlu1 %2799, %v45_v43   ;;  %v2332_v44 = vpop.permute.xlu1 %2331 }
0x21ad   :  { %2779 = vmatmul.msk.f32.gmra.mxu0 %vm62_vm1, %v2332_v44 }
0x21c4   :  { %v1113_v24 = vpop.xlane.xlu0 %1112 }
0x21c5   :  { %v3785_v49 = vsub.f32 %v1106_v5, %v1113_v24  ;;  %v47_v5 = vld [vmem:[%s4017_s1 + $0x18] sm:$0xff] }
0x21c7   :  { %v1118_v15 = vmul.f32 1.442695, %v3785_v49 }
0x21d6   :  { %2050 = vmax.xlane.f32.xlu1 %v2049_v31 }
0x21e2   :  { %v1746_v51 = vpop.xlane.xlu2 %1745 }
0x21e3   :  { %3040 = vlog2.f32 %v1746_v51 }
0x21e4   :  { %3042 = vpow2.f32 %v1118_v15 }
0x21e9   :  { %v3041_v27 = vpop.eup %3040 }
0x21ea   :  { %v1751_v50 = vmul.f32 0.6931472, %v3041_v27  ;;  %v3043_v55 = vpop.eup %3042 }
0x21eb   :  { %v1123_v21 = vsel %vm62_vm1, %v3043_v55, 0.0 }
0x21ec   :  { %v1754_v32 = vsub.f32 %v1738_v10, %v1751_v50 }
0x21ee   :  { %v1768_v20 = vsel %vm1766_vm15, %v1754_v32, 0.0  ;;  %vm2665_vm15 = vcmask 64512  }
0x21ef   :  { %v1770_v7 = vsel %vm62_vm1, %v1768_v20, 0.0 }
0x21f0   :  { %1771 = vadd.xlane.f32.xlu2 %v1770_v7 }
0x21f8   :  { %1124 = vadd.xlane.f32.xlu2 %v1123_v21  ;;  %v49_v21 = vld [vmem:[%s4017_s1 + $0x28] sm:$0xff]  ;;  %s3173_s1 = smov 125  }
0x21fe   :  { %v2060_v41 = vpop.xlane.xlu1 %2059 }
0x21ff   :  { %3044 = vlog2.f32 %v2060_v41 }
0x2200   :  { %1736 = vmax.xlane.f32.xlu2 %v1735_v18 }
0x2205   :  { %v3045_v17 = vpop.eup %3044 }
0x2206   :  { %v2065_v56 = vmul.f32 0.6931472, %v3045_v17 }
0x2208   :  { %v1458_v42 = vpop.xlane.xlu2 %1457  ;;  %v3796_v57 = vsub.f32 %v2052_v6, %v2065_v56 }
0x2209   :  { %v1466_v53 = vadd.f32 %v1458_v42, %v1144_v39 }
0x220b   :  { %v3794_v1 = vadd.f32 %v1754_v32, %v1466_v53 }
0x2210   :  { %v2362_v13 = vpop.xlane.xlu2 %2361 }
0x2211   :  { %v3828_v38 = vsub.f32 %v3769_v36, %v2362_v13  ;;  %v2435_v36 = vrot.slane %v3813_v47, 2 }
0x2213   :  { %v2368_v39 = vmul.f32 1.442695, %v3828_v38 }
0x2216   :  { %v2076_v58 = vpop.permute.xlu1 %2075 }
0x2217   :  { %vm2080_vm0 = vcmp.eq.s32.totalorder %v3747_v2, %v2076_v58 }
0x2218   :  { %v2082_v60 = vsel %vm2080_vm0, %v3796_v57, 0.0  ;;  %v1423_v3 = vpop.xlane.xlu2 %1422  ;;  %vm2667_vm0 = vcmask 66560  }
0x2219   :  { %v3800_v61 = vsub.f32 %v1416_v14, %v1423_v3  ;;  %v2084_v11 = vsel %vm62_vm1, %v2082_v60, 0.0  ;;  %v2450_v3 = vrot.slane %v3794_v1, 2 }
0x221a   :  { %2085 = vadd.xlane.f32.xlu2 %v2084_v11 }
0x221b   :  { %v1428_v63 = vmul.f32 1.442695, %v3800_v61 }
0x221d   :  { %3046 = vpow2.f32 %v1428_v63 }
0x221e   :  { %v1137_v8 = vpop.permute.xlu1 %1136 }
0x221f   :  { %vm1139_vm2 = vcmp.eq.s32.totalorder %v3747_v2, %v1137_v8 }
0x2223   :  { %v3047_v0 = vpop.eup %3046 }
0x2224   :  { %v1433_v4 = vsel %vm62_vm1, %v3047_v0, 0.0 }
0x2225   :  { %1434 = vadd.xlane.f32.xlu0 %v1433_v4  ;;  %v2453_v4 = vrot.slane %v3813_v47, 4 }
0x2232   :  { %1450 = vperm.xlu2 %2797, %v47_v5  }
0x2249   :  { %v2051_v34 = vpop.xlane.xlu1 %2050 }
0x224a   :  { %v3808_v10 = vsub.f32 %v2044_v25, %v2051_v34 }
0x224c   :  { %v2056_v12 = vmul.f32 1.442695, %v3808_v10 }
0x224e   :  { %3048 = vpow2.f32 %v2056_v12 }
0x2254   :  { %v3049_v28 = vpop.eup %3048 }
0x2255   :  { %v2061_v62 = vsel %vm62_vm1, %v3049_v28, 0.0 }
0x2256   :  { %2062 = vadd.xlane.f32.xlu1 %v2061_v62 }
0x2263   :  { %v1772_v16 = vpop.xlane.xlu2 %1771 }
0x2264   :  { %v3815_v6 = vadd.f32 %v1772_v16, %v1466_v53  ;;  %v2357_v16 = vpop.f32.mrf.mxu0 }
0x2266   :  { %v3856_v63 = vadd.f32 %v3796_v57, %v3815_v6  ;;  %v3866_v57 = vadd.f32 %v2357_v16, %v3723_v46 }
0x226b   :  { %v1125_v22 = vpop.xlane.xlu2 %1124 }
0x226c   :  { %3050 = vlog2.f32 %v1125_v22  ;;  %v2363_v22 = vsel %vm62_vm1, %v3866_v57, -inf }
0x226d   :  { %3052 = vpow2.f32 %v2429_v9 }
0x226f   :  { %2078 = vperm.xlu1 %2799, %v51_v48  }
0x2272   :  { %v3051_v23 = vpop.eup %3050 }
0x2273   :  { %v3053_v29 = vpop.eup %3052  ;;  %v1129_v37 = vmul.f32 0.6931472, %v3051_v23  ;;  %v1737_v30 = vpop.xlane.xlu2 %1736 }
0x2274   :  { %v3822_v45 = vsub.f32 %v1730_v52, %v1737_v30  ;;  %3054 = vlog2.f32 %v3053_v29 }
0x2275   :  { %v1131_v33 = vsub.f32 %v3785_v49, %v1129_v37 }
0x2276   :  { %v1742_v35 = vmul.f32 1.442695, %v3822_v45 }
0x2277   :  { %v1141_v14 = vsel %vm1139_vm2, %v1131_v33, 0.0 }
0x2278   :  { %3056 = vpow2.f32 %v1742_v35  ;;  %v1145_v59 = vsel %vm62_vm1, %v1141_v14, 0.0 }
0x2279   :  { %1146 = vadd.xlane.f32.xlu0 %v1145_v59  ;;  %3058 = vpow2.f32 %v2368_v39 }
0x227a   :  { %v3055_v40 = vpop.eup %3054 }
0x227b   :  { %v2432_v25 = vmul.f32 0.6931472, %v3055_v40 }
0x227d   :  { %v3834_v31 = vadd.f32 %v2432_v25, %v3813_v47 }
0x227e   :  { %v3057_v43 = vpop.eup %3056 }
0x227f   :  { %v1747_v44 = vsel %vm62_vm1, %v3057_v43, 0.0  ;;  %v3059_v26 = vpop.eup %3058  ;;  %v2437_v51 = vadd.f32 %v2435_v36, %v3834_v31  ;;  %v2473_v43 = vrot.slane %v3856_v63, 2 }
0x2280   :  { %v2372_v24 = vsel %vm62_vm1, %v3059_v26, 0.0 }
0x2281   :  { %1748 = vadd.xlane.f32.xlu0 %v1747_v44  ;;  %v2438_v49 = vmax.f32 %v3794_v1, %v2437_v51 }
0x2283   :  { %v2439_v15 = vsub.f32 %v3794_v1, %v2438_v49  ;;  %v2442_v32 = vsub.f32 %v2437_v51, %v2438_v49  ;;  %v2476_v51 = vrot.slane %v3794_v1, 4 }
0x2285   :  { %v2440_v20 = vmul.f32 1.442695, %v2439_v15  ;;  %v2443_v7 = vmul.f32 1.442695, %v2442_v32 }
0x2287   :  { %3060 = vpow2.f32 %v2440_v20 }
0x2288   :  { %3062 = vpow2.f32 %v2443_v7 }
0x2289   :  { %2373 = vadd.xlane.f32.xlu0 %v2372_v24  ;;  %v2475_v24 = vadd.f32 %v2473_v43, %v3834_v31 }
0x228d   :  { %v2086_v27 = vpop.xlane.xlu2 %2085  ;;  %v3061_v52 = vpop.eup %3060 }
0x228e   :  { %v3842_v50 = vadd.f32 %v2086_v27, %v3815_v6  ;;  %v3063_v18 = vpop.eup %3062  ;;  %v2479_v27 = vrot.slane %v3813_v47, 6 }
0x228f   :  { %v2445_v42 = vadd.f32 %v3063_v18, %v3061_v52 }
0x2295   :  { %v1451_v53 = vpop.permute.xlu2 %1450 }
0x2296   :  { %vm1453_vm3 = vcmp.eq.s32.totalorder %v3747_v2, %v1451_v53 }
0x2298   :  { %v1435_v55 = vpop.xlane.xlu0 %1434 }
0x2299   :  { %3064 = vlog2.f32 %v1435_v55 }
0x229a   :  { %3066 = vlog2.f32 %v2445_v42 }
0x229d   :  { %1764 = vperm.xlu0 %2798, %v49_v21  }
0x229f   :  { %v3065_v41 = vpop.eup %3064 }
0x22a0   :  { %v1439_v17 = vmul.f32 0.6931472, %v3065_v41  ;;  %v3067_v60 = vpop.eup %3066 }
0x22a1   :  { %v2447_v11 = vmul.f32 0.6931472, %v3067_v60 }
0x22a2   :  { %v3848_v13 = vsub.f32 %v3800_v61, %v1439_v17  ;;  %v2452_v61 = vadd.f32 %v2450_v3, %v3834_v31 }
0x22a3   :  { %v3858_v0 = vadd.f32 %v2447_v11, %v2438_v49 }
0x22a4   :  { %v1455_v56 = vsel %vm1453_vm3, %v3848_v13, 0.0  ;;  %v2456_v5 = vmax.f32 %v3856_v63, %v2452_v61 }
0x22a5   :  { %v1459_v58 = vsel %vm62_vm1, %v1455_v56, 0.0  ;;  %v2455_v8 = vadd.f32 %v2453_v4, %v3858_v0  ;;  %v2478_v32 = vadd.f32 %v2476_v51, %v3858_v0 }
0x22a6   :  { %1460 = vadd.xlane.f32.xlu2 %v1459_v58 }
0x22a7   :  { %v2457_v34 = vmax.f32 %v2456_v5, %v2455_v8 }
0x22a9   :  { %v2458_v12 = vsub.f32 %v3856_v63, %v2457_v34  ;;  %v2461_v28 = vsub.f32 %v2452_v61, %v2457_v34  ;;  %v2465_v9 = vsub.f32 %v2455_v8, %v2457_v34 }
0x22ab   :  { %v2459_v62 = vmul.f32 1.442695, %v2458_v12  ;;  %v2462_v19 = vmul.f32 1.442695, %v2461_v28  ;;  %v2466_v6 = vmul.f32 1.442695, %v2465_v9 }
0x22ac   :  { %v824_v9 = vshrl.u32 %v823_v54, 7 }
0x22ad   :  { %3068 = vpow2.f32 %v2459_v62 }
0x22ae   :  { %3070 = vpow2.f32 %v2462_v19 }
0x22af   :  { %3072 = vpow2.f32 %v2466_v6 }
0x22b3   :  { %v3069_v48 = vpop.eup %3068 }
0x22b4   :  { %v3071_v23 = vpop.eup %3070 }
0x22b5   :  { %v2464_v29 = vadd.f32 %v3071_v23, %v3069_v48  ;;  %v3073_v37 = vpop.eup %3072  ;;  %v3908_v23 = vadd.s32 8, %v824_v9 }
0x22b7   :  { %v2468_v30 = vadd.f32 %v3073_v37, %v2464_v29  ;;  %v2510_v29 = vrot.slane %v3794_v1, 6  ;;  %vm1463_vm6 = vcmp.lt.s32.totalorder %v3908_v23, 14  ;;  %vm2091_vm12 = vcmp.lt.s32.totalorder %v3908_v23, 10 }
0x22b9   :  { %3074 = vlog2.f32 %v2468_v30 }
0x22bf   :  { %v3075_v33 = vpop.eup %3074 }
0x22c0   :  { %v2470_v46 = vmul.f32 0.6931472, %v3075_v33 }
0x22c2   :  { %v3872_v35 = vadd.f32 %v2470_v46, %v2457_v34 }
0x22c4   :  { %v2481_v7 = vadd.f32 %v2479_v27, %v3872_v35 }
0x22c7   :  { %2364 = vmax.xlane.f32.xlu0 %v2363_v22 }
0x22c9   :  { %v2063_v25 = vpop.xlane.xlu1 %2062 }
0x22db   :  { %2629 = vrot.lane.b32.xlu0 %v3834_v31, %s3173_s1 }
0x22e1   :  { %v2079_v53 = vpop.permute.xlu1 %2078 }
0x22e2   :  { %vm2081_vm5 = vcmp.eq.s32.totalorder %v3747_v2, %v2079_v53  ;;  %v2538_v53 = vrot.slane %v3856_v63, 6 }
0x22e3   :  { %2637 = vrot.lane.b32.xlu0 %v3872_v35, %s3174_s22 }
0x22eb   :  { %2390 = vrot.lane.b32.xlu0 %v3813_v47, %s3173_s1 }
0x22ec   :  { %v3878_v14 = vpop.xlane.xlu0 %1146 }
0x22ed   :  { %v3913_v33 = vadd.f32 %v3848_v13, %v3878_v14 }
0x22f3   :  { %2398 = vrot.lane.b32.xlu0 %v3794_v1, %s3175_s23 }
0x22f4   :  { %v1749_v59 = vpop.xlane.xlu0 %1748 }
0x22fc   :  { %v2374_v39 = vpop.xlane.xlu0 %2373 }
0x22fd   :  { %3076 = vlog2.f32 %v2374_v39 }
0x22fe   :  { %3078 = vlog2.f32 %v1749_v59  ;;  %v2512_v59 = vadd.f32 %v2510_v29, %v3872_v35 }
0x22ff   :  { %3080 = vlog2.f32 %v2063_v25 }
0x2303   :  { %v3077_v40 = vpop.eup %3076 }
0x2304   :  { %v2379_v44 = vmul.f32 0.6931472, %v3077_v40  ;;  %v3079_v36 = vpop.eup %3078 }
0x2305   :  { %v1753_v20 = vmul.f32 0.6931472, %v3079_v36 }
0x2306   :  { %v2382_v26 = vsub.f32 %v3828_v38, %v2379_v44  ;;  %v3081_v38 = vpop.eup %3080 }
0x2307   :  { %v1755_v52 = vsub.f32 %v3822_v45, %v1753_v20  ;;  %v2067_v47 = vmul.f32 0.6931472, %v3081_v38 }
0x2308   :  { %v3887_v49 = vadd.f32 %v2382_v26, %v3842_v50 }
0x2309   :  { %v3899_v45 = vsub.f32 %v3808_v10, %v2067_v47  ;;  %v2507_v10 = vrot.slane %v3856_v63, 4 }
0x230a   :  { %v2482_v15 = vmax.f32 %v3887_v49, %v2475_v24  ;;  %v2504_v19 = vrot.slane %v3887_v49, 2 }
0x230b   :  { %v2083_v4 = vsel %vm2081_vm5, %v3899_v45, 0.0  ;;  %v2509_v22 = vadd.f32 %v2507_v10, %v3858_v0 }
0x230c   :  { %v2483_v55 = vmax.f32 %v2482_v15, %v2478_v32  ;;  %v2087_v8 = vsel %vm62_vm1, %v2083_v4, 0.0  ;;  %v2506_v6 = vadd.f32 %v2504_v19, %v3834_v31 }
0x230e   :  { %v2484_v21 = vmax.f32 %v2483_v55, %v2481_v7  ;;  %v2514_v30 = vmax.f32 %v2506_v6, %v2509_v22 }
0x230f   :  { %v1765_v18 = vpop.permute.xlu0 %1764 }
0x2310   :  { %vm1767_vm4 = vcmp.eq.s32.totalorder %v3747_v2, %v1765_v18  ;;  %v2485_v50 = vsub.f32 %v3887_v49, %v2484_v21  ;;  %v2488_v41 = vsub.f32 %v2475_v24, %v2484_v21  ;;  %v2492_v42 = vsub.f32 %v2478_v32, %v2484_v21 }
0x2311   :  { %v1769_v17 = vsel %vm1767_vm4, %v1755_v52, 0.0  ;;  %v2496_v56 = vsub.f32 %v2481_v7, %v2484_v21  ;;  %v2515_v39 = vmax.f32 %v2514_v30, %v2512_v59 }
0x2312   :  { %v1773_v58 = vsel %vm62_vm1, %v1769_v17, 0.0  ;;  %v2486_v60 = vmul.f32 1.442695, %v2485_v50  ;;  %v2489_v3 = vmul.f32 1.442695, %v2488_v41 }
0x2313   :  { %1774 = vadd.xlane.f32.xlu2 %v1773_v58  ;;  %v2493_v11 = vmul.f32 1.442695, %v2492_v42  ;;  %v2497_v61 = vmul.f32 1.442695, %v2496_v56  ;;  %v2535_v42 = vrot.slane %v3887_v49, 4  ;;  %v2540_v58 = vadd.f32 %v2538_v53, %v3872_v35 }
0x2314   :  { %3082 = vpow2.f32 %v2486_v60 }
0x2315   :  { %3084 = vpow2.f32 %v2489_v3  ;;  %v2537_v17 = vadd.f32 %v2535_v42, %v3858_v0 }
0x2316   :  { %3086 = vpow2.f32 %v2493_v11  ;;  %v2542_v11 = vrot.slane %v3913_v33, 2 }
0x2317   :  { %3088 = vpow2.f32 %v2497_v61  ;;  %v2545_v61 = vmax.f32 %v2537_v17, %v2540_v58 }
0x2319   :  { %v1461_v54 = vpop.xlane.xlu2 %1460 }
0x231a   :  { %v3083_v5 = vpop.eup %3082  ;;  %v1465_v1 = vsel %vm1463_vm6, %v1461_v54, 0.0 }
0x231b   :  { %v3085_v34 = vpop.eup %3084  ;;  %2088 = vadd.xlane.f32.xlu2 %v2087_v8  ;;  %v3924_v13 = vadd.f32 %v1465_v1, %v3878_v14 }
0x231c   :  { %v2491_v12 = vadd.f32 %v3085_v34, %v3083_v5  ;;  %v3087_v28 = vpop.eup %3086 }
0x231d   :  { %v3089_v16 = vpop.eup %3088  ;;  %v1757_v27 = vadd.f32 %v1755_v52, %v3924_v13 }
0x231e   :  { %v2495_v62 = vadd.f32 %v3087_v28, %v2491_v12 }
0x231f   :  { %v3931_v32 = vsel %vm1463_vm6, %v1757_v27, -1000000.0 }
0x2320   :  { %v2499_v2 = vadd.f32 %v3089_v16, %v2495_v62  ;;  %v2601_v54 = vrot.slane %v3931_v32, 4 }
0x2322   :  { %3090 = vlog2.f32 %v2499_v2 }
0x2328   :  { %v3091_v48 = vpop.eup %3090 }
0x2329   :  { %v2501_v37 = vmul.f32 0.6931472, %v3091_v48 }
0x232b   :  { %v3915_v46 = vadd.f32 %v2501_v37, %v2484_v21 }
0x232d   :  { %v2513_v31 = vadd.f32 %v3915_v46, %v3913_v33  ;;  %v2541_v60 = vadd.f32 %v3915_v46, %v3931_v32 }
0x232f   :  { %v2516_v40 = vmax.f32 %v2515_v39, %v2513_v31  ;;  %v2546_v5 = vmax.f32 %v2545_v61, %v2541_v60 }
0x2331   :  { %v2517_v43 = vsub.f32 %v2506_v6, %v2516_v40  ;;  %v2520_v44 = vsub.f32 %v2509_v22, %v2516_v40  ;;  %v2524_v25 = vsub.f32 %v2512_v59, %v2516_v40  ;;  %v2528_v26 = vsub.f32 %v2513_v31, %v2516_v40 }
0x2333   :  { %2633 = vrot.lane.b32.xlu2 %v3858_v0, %s3175_s23  ;;  %v2518_v36 = vmul.f32 1.442695, %v2517_v43  ;;  %v2521_v51 = vmul.f32 1.442695, %v2520_v44  ;;  %v2525_v24 = vmul.f32 1.442695, %v2524_v25 }
0x2334   :  { %v2529_v15 = vmul.f32 1.442695, %v2528_v26  ;;  %v2566_v25 = vrot.slane %v3887_v49, 6 }
0x2335   :  { %3092 = vpow2.f32 %v2518_v36 }
0x2336   :  { %3094 = vpow2.f32 %v2521_v51  ;;  %v2570_v51 = vrot.slane %v3931_v32, 2 }
0x2337   :  { %3096 = vpow2.f32 %v2525_v24  ;;  %v2568_v24 = vadd.f32 %v2566_v25, %v3872_v35 }
0x2338   :  { %3098 = vpow2.f32 %v2529_v15 }
0x233a   :  { %v2365_v20 = vpop.xlane.xlu0 %2364 }
0x233b   :  { %v3093_v14 = vpop.eup %3092  ;;  %v3934_v7 = vsub.f32 %v3866_v57, %v2365_v20  ;;  %2400 = vrot.lane.b32.xlu2 %v3931_v32, %s3175_s23 }
0x233c   :  { %v3095_v55 = vpop.eup %3094 }
0x233d   :  { %v2370_v38 = vmul.f32 1.442695, %v3934_v7  ;;  %v2523_v21 = vadd.f32 %v3095_v55, %v3093_v14  ;;  %v3097_v52 = vpop.eup %3096 }
0x233e   :  { %v3099_v50 = vpop.eup %3098 }
0x233f   :  { %3100 = vpow2.f32 %v2370_v38  ;;  %v2527_v18 = vadd.f32 %v3097_v52, %v2523_v21 }
0x2341   :  { %v2531_v41 = vadd.f32 %v3099_v50, %v2527_v18 }
0x2343   :  { %2406 = vrot.lane.b32.xlu2 %v3856_v63, %s3174_s22  ;;  %3102 = vlog2.f32 %v2531_v41 }
0x2345   :  { %v3101_v57 = vpop.eup %3100 }
0x2346   :  { %v2375_v47 = vsel %vm62_vm1, %v3101_v57, 0.0  ;;  %vm1777_vm1 = vcmp.lt.s32.totalorder %v3908_v23, 12 }
0x2347   :  { %2376 = vadd.xlane.f32.xlu1 %v2375_v47 }
0x2349   :  { %v3103_v56 = vpop.eup %3102 }
0x234a   :  { %v2533_v3 = vmul.f32 0.6931472, %v3103_v56 }
0x234c   :  { %v3949_v4 = vadd.f32 %v2533_v3, %v2516_v40 }
0x234d   :  { %v2630_v1 = vpop.permute.xlu0 %2629 }
0x234e   :  { %v2544_v8 = vadd.f32 %v2542_v11, %v3949_v4  ;;  %2641 = vrot.lane.b32.xlu2 %v3949_v4, %s3176_s24  ;;  %v2572_v20 = vadd.f32 %v2570_v51, %v3949_v4  ;;  %v2656_v35 = vsel %vm2412_vm7, 0.0, %v2630_v1 }
0x2350   :  { %v2547_v63 = vmax.f32 %v2546_v5, %v2544_v8 }
0x2352   :  { %v2548_v0 = vsub.f32 %v2537_v17, %v2547_v63  ;;  %v2551_v34 = vsub.f32 %v2540_v58, %v2547_v63  ;;  %v2555_v12 = vsub.f32 %v2541_v60, %v2547_v63  ;;  %v2559_v28 = vsub.f32 %v2544_v8, %v2547_v63 }
0x2354   :  { %v2549_v62 = vmul.f32 1.442695, %v2548_v0  ;;  %v2552_v16 = vmul.f32 1.442695, %v2551_v34  ;;  %v2556_v2 = vmul.f32 1.442695, %v2555_v12 }
0x2355   :  { %v2560_v19 = vmul.f32 1.442695, %v2559_v28  ;;  %v2638_v14 = vpop.permute.xlu0 %2637 }
0x2356   :  { %3104 = vpow2.f32 %v2549_v62 }
0x2357   :  { %3106 = vpow2.f32 %v2552_v16 }
0x2358   :  { %3108 = vpow2.f32 %v2556_v2 }
0x2359   :  { %3110 = vpow2.f32 %v2560_v19 }
0x235c   :  { %v3105_v10 = vpop.eup %3104 }
0x235d   :  { %v3107_v9 = vpop.eup %3106  ;;  %v2391_v56 = vpop.permute.xlu0 %2390 }
0x235e   :  { %v2554_v6 = vadd.f32 %v3107_v9, %v3105_v10  ;;  %v3109_v22 = vpop.eup %3108  ;;  %v2413_v34 = vsel %vm2412_vm7, -1000000.0, %v2391_v56 }
0x235f   :  { %v3111_v29 = vpop.eup %3110 }
0x2360   :  { %2392 = vrot.lane.b32.xlu1 %v3913_v33, %s3173_s1  ;;  %v2558_v48 = vadd.f32 %v3109_v22, %v2554_v6 }
0x2362   :  { %v2562_v37 = vadd.f32 %v3111_v29, %v2558_v48 }
0x2364   :  { %3112 = vlog2.f32 %v2562_v37 }
0x2365   :  { %v2399_v8 = vpop.permute.xlu0 %2398 }
0x2366   :  { %v2416_v28 = vsel %vm2415_vm9, %v2413_v34, %v2399_v8 }
0x236a   :  { %v3113_v30 = vpop.eup %3112 }
0x236b   :  { %v2564_v59 = vmul.f32 0.6931472, %v3113_v30 }
0x236d   :  { %v2565_v31 = vadd.f32 %v2564_v59, %v2547_v63 }
0x236f   :  { %v3956_v39 = vadd.f32 %v2601_v54, %v2565_v31  ;;  %2645 = vrot.lane.b32.xlu2 %v2565_v31, %s3177_s25 }
0x2386   :  { %v1775_v40 = vpop.xlane.xlu2 %1774 }
0x2387   :  { %v1779_v43 = vsel %vm1777_vm1, %v1775_v40, 0.0  ;;  %v2604_v40 = vrot.slane %v3913_v33, 6 }
0x2388   :  { %v3960_v44 = vadd.f32 %v1779_v43, %v3924_v13  ;;  %v2573_v13 = vrot.slane %v3913_v33, 4 }
0x238a   :  { %v2071_v26 = vadd.f32 %v3899_v45, %v3960_v44  ;;  %v2575_v38 = vadd.f32 %v2573_v13, %v2565_v31 }
0x238c   :  { %v3965_v36 = vsel %vm1777_vm1, %v2071_v26, -1000000.0 }
0x238d   :  { %v2569_v27 = vadd.f32 %v3915_v46, %v3965_v36  ;;  %v2598_v30 = vrot.slane %v3965_v36, 2 }
0x238e   :  { %v2089_v15 = vpop.xlane.xlu2 %2088 }
0x238f   :  { %v2576_v55 = vmax.f32 %v2568_v24, %v2569_v27  ;;  %v2093_v48 = vsel %vm2091_vm12, %v2089_v15, 0.0  ;;  %v2600_v31 = vadd.f32 %v2598_v30, %v3949_v4 }
0x2390   :  { %v2095_v29 = vadd.f32 %v2093_v48, %v3960_v44 }
0x2391   :  { %v2577_v21 = vmax.f32 %v2576_v55, %v2572_v20 }
0x2393   :  { %v2578_v45 = vmax.f32 %v2577_v21, %v2575_v38 }
0x2395   :  { %v2579_v52 = vsub.f32 %v2568_v24, %v2578_v45  ;;  %v2582_v18 = vsub.f32 %v2569_v27, %v2578_v45  ;;  %v2586_v32 = vsub.f32 %v2572_v20, %v2578_v45  ;;  %v2590_v41 = vsub.f32 %v2575_v38, %v2578_v45 }
0x2396   :  { %v2634_v50 = vpop.permute.xlu2 %2633 }
0x2397   :  { %v2580_v42 = vmul.f32 1.442695, %v2579_v52  ;;  %v2583_v57 = vmul.f32 1.442695, %v2582_v18  ;;  %v2657_v47 = vsel %vm2415_vm9, %v2656_v35, %v2634_v50  ;;  %v2587_v17 = vmul.f32 1.442695, %v2586_v32 }
0x2398   :  { %v3976_v53 = vsel %vm2418_vm8, %v2657_v47, %v2638_v14  ;;  %v2591_v58 = vmul.f32 1.442695, %v2590_v41 }
0x2399   :  { %3114 = vpow2.f32 %v2580_v42  ;;  %v2659_v56 = vsel %vm2421_vm11, %v3976_v53, %v3915_v46 }
0x239a   :  { %3116 = vpow2.f32 %v2583_v57 }
0x239b   :  { %3118 = vpow2.f32 %v2587_v17 }
0x239c   :  { %3120 = vpow2.f32 %v2591_v58 }
0x239e   :  { %v3978_v60 = vpop.permute.xlu2 %2400 }
0x239f   :  { %v3115_v3 = vpop.eup %3114 }
0x23a0   :  { %v3117_v11 = vpop.eup %3116 }
0x23a1   :  { %v2585_v61 = vadd.f32 %v3117_v11, %v3115_v3  ;;  %v3119_v5 = vpop.eup %3118 }
0x23a2   :  { %v3121_v0 = vpop.eup %3120 }
0x23a3   :  { %v2589_v63 = vadd.f32 %v3119_v5, %v2585_v61 }
0x23a5   :  { %v2593_v12 = vadd.f32 %v3121_v0, %v2589_v63 }
0x23a6   :  { %v2407_v62 = vpop.permute.xlu2 %2406 }
0x23a7   :  { %v2419_v16 = vsel %vm2418_vm8, %v2416_v28, %v2407_v62  ;;  %3122 = vlog2.f32 %v2593_v12 }
0x23a8   :  { %v2422_v2 = vsel %vm2421_vm11, %v2419_v16, %v3887_v49 }
0x23a9   :  { %2425 = vst.msk [vmem:[%s4019_s3] sm:$0xff] %vm2424_vm10, %v2422_v2 }
0x23ad   :  { %v3123_v19 = vpop.eup %3122 }
0x23ae   :  { %v2595_v10 = vmul.f32 0.6931472, %v3123_v19  ;;  %v2642_v47 = vpop.permute.xlu2 %2641 }
0x23af   :  { %v2660_v58 = vsel %vm2424_vm10, %v2659_v56, %v2642_v47 }
0x23b0   :  { %v2596_v9 = vadd.f32 %v2595_v10, %v2578_v45 }
0x23b2   :  { %2649 = vrot.lane.b32.xlu0 %v2596_v9, %s3178_s28  ;;  %v2606_v25 = vadd.f32 %v2604_v40, %v2596_v9 }
0x23ba   :  { %2408 = vrot.lane.b32.xlu0 %v3965_v36, %s3174_s22  ;;  %v2377_v6 = vpop.xlane.xlu1 %2376 }
0x23bb   :  { %3124 = vlog2.f32 %v2377_v6 }
0x23c1   :  { %v3125_v22 = vpop.eup %3124 }
0x23c2   :  { %v2381_v49 = vmul.f32 0.6931472, %v3125_v22 }
0x23c4   :  { %v2383_v37 = vsub.f32 %v3934_v7, %v2381_v49 }
0x23c6   :  { %v2385_v59 = vadd.f32 %v2383_v37, %v2095_v29 }
0x23c8   :  { %v2387_v54 = vsel %vm2091_vm12, %v2385_v59, -1000000.0 }
0x23c9   :  { %v2597_v1 = vadd.f32 %v3915_v46, %v2387_v54  ;;  %v2646_v17 = vpop.permute.xlu2 %2645 }
0x23cb   :  { %v2607_v43 = vmax.f32 %v2597_v1, %v2600_v31 }
0x23cd   :  { %v2608_v23 = vmax.f32 %v2607_v43, %v3956_v39 }
0x23cf   :  { %v2609_v26 = vmax.f32 %v2608_v23, %v2606_v25 }
0x23d1   :  { %v2610_v51 = vsub.f32 %v2597_v1, %v2609_v26  ;;  %v2613_v24 = vsub.f32 %v2600_v31, %v2609_v26  ;;  %v2617_v44 = vsub.f32 %v3956_v39, %v2609_v26  ;;  %v2621_v7 = vsub.f32 %v2606_v25, %v2609_v26 }
0x23d2   :  { %v2393_v32 = vpop.permute.xlu1 %2392 }
0x23d3   :  { %v2611_v27 = vmul.f32 1.442695, %v2610_v51  ;;  %v2614_v36 = vmul.f32 1.442695, %v2613_v24  ;;  %v2618_v15 = vmul.f32 1.442695, %v2617_v44 }
0x23d4   :  { %v2622_v4 = vmul.f32 1.442695, %v2621_v7  ;;  %v2414_v35 = vsel %vm2412_vm7, -1000000.0, %v2393_v32 }
0x23d5   :  { %3126 = vpow2.f32 %v2611_v27  ;;  %v2417_v50 = vsel %vm2415_vm9, %v2414_v35, %v3978_v60  ;;  %v2662_v60 = vsel %vm2661_vm13, %v2660_v58, %v2646_v17 }
0x23d6   :  { %3128 = vpow2.f32 %v2614_v36 }
0x23d7   :  { %3130 = vpow2.f32 %v2618_v15 }
0x23d8   :  { %3132 = vpow2.f32 %v2622_v4 }
0x23db   :  { %v3127_v20 = vpop.eup %3126 }
0x23dc   :  { %v3129_v33 = vpop.eup %3128 }
0x23dd   :  { %v2616_v14 = vadd.f32 %v3129_v33, %v3127_v20  ;;  %v3131_v13 = vpop.eup %3130 }
0x23de   :  { %v3133_v38 = vpop.eup %3132 }
0x23df   :  { %v2620_v55 = vadd.f32 %v3131_v13, %v2616_v14 }
0x23e1   :  { %v2624_v21 = vadd.f32 %v3133_v38, %v2620_v55 }
0x23e3   :  { %3134 = vlog2.f32 %v2624_v21 }
0x23e9   :  { %v3135_v45 = vpop.eup %3134 }
0x23ea   :  { %v2626_v52 = vmul.f32 0.6931472, %v3135_v45 }
0x23ec   :  { %v2627_v39 = vadd.f32 %v2626_v52, %v2609_v26 }
0x23ee   :  { %2653 = vrot.lane.b32.xlu2 %v2627_v39, %s3179_s7 }
0x2424   :  { %v2650_v18 = vpop.permute.xlu0 %2649 }
0x2425   :  { %v2664_v3 = vsel %vm2663_vm14, %v2662_v60, %v2650_v18 }
0x242c   :  { %v2409_v41 = vpop.permute.xlu0 %2408 }
0x242d   :  { %v2420_v42 = vsel %vm2418_vm8, %v2417_v50, %v2409_v41 }
0x242e   :  { %v2423_v57 = vsel %vm2421_vm11, %v2420_v42, %v2387_v54 }
0x242f   :  { %2426 = vst.msk [vmem:[%s4019_s3 + $0x8] sm:$0xff] %vm2424_vm10, %v2423_v57 }
0x2448   :  { %v2654_v11 = vpop.permute.xlu2 %2653 }
0x2449   :  { %v2666_v61 = vsel %vm2665_vm15, %v2664_v3, %v2654_v11 }
0x244a   :  { %2668 = vst.msk [vmem:[#allocation3] sm:$0x3] %vm2667_vm0, %v2666_v61 }
0x244b   :  { %2681 = dma.vmem_to_hbm [thread:$0]  %s2677_s10, 32, %s2679_s30, [#allocation4]  }
0x244c   :  { %3164 = dma.done.wait [#allocation4], 32  }
0x244d   :  { %3165 = vsyncadd [#allocation4], 4294967264 }
0x244e   :  { %2688 = vsyncpa [#allocation4], 1 }

</bundles_post_ra>
